<compile_context>
chip_gen: v6e
topology: v6e:2x2x1
jax: 0.10.0
libtpu: 0.0.40
codegen_flags: <defaults>
</compile_context>

<pallas_src>
import math

import jax
import jax.numpy as jnp
from jax import lax
from jax.experimental import pallas as pl
from jax.experimental.pallas import tpu as pltpu

BN_EPS = 1e-5
LANE = 128
SUBLANE = 8


def _round_up(n, m):
    return ((n + m - 1) // m) * m


def _pad2(W, rows, cols):
    """Zero-pad a 2-D array up to [rows, cols]."""
    Wp = jnp.zeros((rows, cols), W.dtype)
    return Wp.at[: W.shape[0], : W.shape[1]].set(W)


# ---------------------------------------------------------------------------
# Block plan (mirrors DenoisingDenseUNetClass.init_layers / forward)
# ---------------------------------------------------------------------------
def build_block_plan(D, L, pos_emb_dim, h_dims, z_dim):
    """List of (name, in_dims_tuple, out_dim) in forward order.

    in_dims_tuple has 1 entry for a plain input, or 2 entries (skip, dec) for
    blocks whose torch input is cat([skip, dec], dim=1)."""
    x_dim = D * L
    nL = len(h_dims)
    plan = []
    h_prev = x_dim
    for i, h in enumerate(h_dims):
        plan.append(("Enc_%02d" % i, (h_prev,), h))
        h_prev = h
    plan.append(("Enc_%02d" % nL, (h_dims[-1],), z_dim))
    plan.append(("Map", (z_dim,), z_dim))
    rev = h_dims[::-1]
    enc_path_dims = [x_dim] + list(h_dims) + [z_dim]   # dims of enc_paths[k]
    plan.append(("Dec_00", (z_dim,), rev[0]))
    for i in range(1, nL):
        skip_dim = enc_path_dims[nL - (i - 1)]
        plan.append(("Dec_%02d" % i, (skip_dim, rev[i - 1]), rev[i]))
    plan.append(("Dec_%02d" % nL, (enc_path_dims[1], rev[nL - 1]), x_dim))
    plan.append(("Out", (x_dim, x_dim), x_dim))
    return plan


def compute_pe_offsets(plan):
    """Per-block (lane_offset, out_pad) into the fused pe_all matmul result."""
    offs, off = [], 0
    for (_n, _ins, od) in plan:
        odp = _round_up(od, LANE)
        offs.append((off, odp))
        off += odp
    return offs, off


# ---------------------------------------------------------------------------
# Deterministic parameter construction (unpadded, torch-Linear-style init)
# ---------------------------------------------------------------------------
def _linear_params(key, in_dim, out_dim):
    kw, kb = jax.random.split(key)
    bound = 1.0 / math.sqrt(in_dim)
    W = jax.random.uniform(kw, (in_dim, out_dim), jnp.float32, -bound, bound)
    b = jax.random.uniform(kb, (out_dim,), jnp.float32, -bound, bound)
    return W, b


def _dense_block_params(key, in_dim, out_dim, pos_emb_dim):
    k1, k2, k3 = jax.random.split(key, 3)
    W1, b1 = _linear_params(k1, in_dim, out_dim)
    W2, b2 = _linear_params(k2, out_dim, out_dim)
    Wp, bp = _linear_params(k3, pos_emb_dim, out_dim)
    ones = jnp.ones((out_dim,), jnp.float32)
    zeros = jnp.zeros((out_dim,), jnp.float32)
    return dict(W1=W1, b1=b1, W2=W2, b2=b2, Wp=Wp, bp=bp,
                g1=ones, bt1=zeros, g2=ones, bt2=zeros)


def init_unet_params(key, D, L, pos_emb_dim, h_dims, z_dim):
    plan = build_block_plan(D, L, pos_emb_dim, h_dims, z_dim)
    keys = jax.random.split(key, len(plan) + 1)
    params = {}
    for k, (name, in_dims, out_dim) in zip(keys[:-1], plan):
        params[name] = _dense_block_params(k, sum(in_dims), out_dim, pos_emb_dim)
    Wpe, bpe = _linear_params(keys[-1], pos_emb_dim, pos_emb_dim)
    params["Pos_Emb_W"] = Wpe
    params["Pos_Emb_b"] = bpe
    return params, plan


# ---------------------------------------------------------------------------
# Pack / pad parameters for the fused kernel
# ---------------------------------------------------------------------------
def pack_params_for_kernel(raw_params, plan, pos_emb_dim):
    pos_pad = _round_up(pos_emb_dim, LANE)
    flat = [
        _pad2(raw_params["Pos_Emb_W"], pos_pad, pos_pad).astype(jnp.bfloat16),
        _pad2(raw_params["Pos_Emb_b"][None, :], 1, pos_pad).astype(jnp.float32),
    ]
    wp_cols = []
    per_block = []
    for (name, in_dims, out_dim) in plan:
        p = raw_params[name]
        out_pad = _round_up(out_dim, LANE)
        if len(in_dims) == 1:
            W1 = _pad2(p["W1"], _round_up(in_dims[0], LANE), out_pad)
        else:
            # cat([skip, dec]) input: keep W1 as a single [skip_pad+dec_pad, out_pad]
            # matrix; the kernel lane-concats the padded parts and does one matmul.
            d_skip, d_dec = in_dims
            W1 = jnp.concatenate(
                [_pad2(p["W1"][:d_skip], _round_up(d_skip, LANE), out_pad),
                 _pad2(p["W1"][d_skip:], _round_up(d_dec, LANE), out_pad)], axis=0)
        wp_cols.append(_pad2(p["Wp"], pos_pad, out_pad))
        W2 = _pad2(p["W2"], out_pad, out_pad)
        V = jnp.zeros((8, out_pad), jnp.float32)
        V = V.at[0, :out_dim].set(p["b1"])
        V = V.at[1, :out_dim].set(p["g1"])
        V = V.at[2, :out_dim].set(p["bt1"])
        V = V.at[3, :out_dim].set(p["bp"])
        V = V.at[4, :out_dim].set(p["b2"])
        V = V.at[5, :out_dim].set(p["g2"])
        V = V.at[6, :out_dim].set(p["bt2"])
        per_block.extend([W1.astype(jnp.bfloat16), W2.astype(jnp.bfloat16), V])
    flat.append(jnp.concatenate(wp_cols, axis=1).astype(jnp.bfloat16))  # Wp_cat
    flat.extend(per_block)
    return flat


# ---------------------------------------------------------------------------
# Fused single-kernel U-Net forward
# ---------------------------------------------------------------------------
def make_unet_kernel(plan, n_hdims, B, B_pad, pos_emb_dim, pos_pad, pe_offsets,
                     T=1000):
    nL = n_hdims
    half = pos_emb_dim // 2
    neg_scale = -math.log(T) / (half - 1)

    def kernel(*refs):
        out_ref = refs[-1]
        it = iter(refs[:-1])
        t_ref = next(it)
        x_ref = next(it)
        Wpe = next(it)
        bpe = next(it)
        Wp_cat = next(it)

        if B_pad > B:
            row_mask = lax.broadcasted_iota(jnp.int32, (B_pad, 1), 0) < B
        else:
            row_mask = None
        inv_B = jnp.float32(1.0 / B)

        def bn(h, g, bt):
            # Single-pass batch-stat BatchNorm1d (biased variance, like torch).
            hm = jnp.where(row_mask, h, 0.0) if row_mask is not None else h
            s1 = jnp.sum(hm, axis=0, keepdims=True)
            s2 = jnp.sum(hm * h, axis=0, keepdims=True)
            mu = s1 * inv_B
            var = jnp.maximum(s2 * inv_B - mu * mu, 0.0)
            return (h - mu) * lax.rsqrt(var + BN_EPS) * g + bt

        # ---- sinusoidal timestep embedding, computed in-kernel (EUP) ----
        steps = t_ref[...]                                       # [B_pad, 1] f32
        col = lax.broadcasted_iota(jnp.int32, (B_pad, pos_pad), 1)
        jm = jnp.where(col < half, col, col - half).astype(jnp.float32)
        freq = jnp.exp(jm * jnp.float32(neg_scale))
        arg = steps * freq                                       # [B_pad, pos_pad]
        sin_emb = jnp.where(col < half, jnp.sin(arg), jnp.cos(arg))
        sin_emb = jnp.where(col < 2 * half, sin_emb, 0.0)        # zero pad lanes

        # ---- Pos_Emb MLP: relu(sin_emb @ Wpe + bpe) ----
        pe = jnp.dot(sin_emb.astype(jnp.bfloat16), Wpe[...],
                     preferred_element_type=jnp.float32) + bpe[...]
        pe = jnp.maximum(pe, 0.0)
        # One wide matmul for ALL blocks' positional projections.
        pe_all = jnp.dot(pe.astype(jnp.bfloat16), Wp_cat[...],
                         preferred_element_type=jnp.float32)     # [B_pad, sum(out_pad)]

        def block(parts, pe_b, W1, W2, Vv):
            # DenseBlockClass.forward with batch-stat BatchNorm1d.
            xin = parts[0] if len(parts) == 1 else jnp.concatenate(parts, axis=-1)
            h = jnp.dot(xin, W1[...], preferred_element_type=jnp.float32) + Vv[0:1, :]
            h = jnp.maximum(h, 0.0)
            h = bn(h, Vv[1:2, :], Vv[2:3, :])
            h = h + pe_b + Vv[3:4, :]
            h = jnp.dot(h.astype(jnp.bfloat16), W2[...],
                        preferred_element_type=jnp.float32) + Vv[4:5, :]
            h = jnp.maximum(h, 0.0)
            h = bn(h, Vv[5:6, :], Vv[6:7, :])
            return h

        # Collect per-block args (pe slice, weight refs, bias/BN vector).
        block_args = []
        for bi, (_name, _in_dims, _out_dim) in enumerate(plan):
            W1 = next(it)
            W2 = next(it)
            V = next(it)
            off, odp = pe_offsets[bi]
            block_args.append((pe_all[:, off:off + odp], W1, W2, V[...]))

        bi = 0
        net_bf = x_ref[...].astype(jnp.bfloat16)   # matmul-LHS copies live in bf16
        enc_paths = [net_bf]
        for _ in range(nL + 1):                    # Enc_00 .. Enc_{nL}
            net = block((net_bf,), *block_args[bi]); bi += 1
            net_bf = net.astype(jnp.bfloat16)
            enc_paths.append(net_bf)
        net = block((net_bf,), *block_args[bi]); bi += 1          # Map
        net_bf = net.astype(jnp.bfloat16)

        parts = (net_bf,)
        for h_idx in range(nL + 1):                # Dec_00 .. Dec_{nL}
            net = block(parts, *block_args[bi]); bi += 1
            net_bf = net.astype(jnp.bfloat16)
            parts = (enc_paths[nL - h_idx], net_bf)   # == cat([skip, net], dim=1)
        net = block(parts, *block_args[bi]); bi += 1               # Out

        out_ref[...] = net.astype(out_ref.dtype)

    return kernel


def _vmem_ceiling_bytes():
    cap = 64 * 2 ** 20                     # safe fallback = v7x per-TC VMEM
    try:
        info = pltpu.get_tpu_info()
        cap = int(getattr(info, "vmem_capacity_bytes", cap))
    except Exception:
        pass
    return (cap * 4) // 5                  # leave 20% headroom for compiler scratch


def unet_forward_pallas(flat_params, plan, x, t, *, pos_emb_dim, h_dims):
    B, x_dim = x.shape
    B_pad = _round_up(B, SUBLANE)
    x_pad = _round_up(x_dim, LANE)
    pos_pad = _round_up(pos_emb_dim, LANE)
    out_dim = plan[-1][2]
    out_pad = _round_up(out_dim, LANE)

    t_p = jnp.zeros((B_pad, 1), jnp.float32).at[:B, 0].set(
        t.reshape(-1).astype(jnp.float32))
    x_p = jnp.zeros((B_pad, x_pad), jnp.float32).at[:B, :x_dim].set(x)

    pe_offsets, total_out_pad = compute_pe_offsets(plan)
    kernel = make_unet_kernel(plan, len(h_dims), B, B_pad,
                              pos_emb_dim, pos_pad, pe_offsets)

    inputs = (t_p, x_p) + tuple(flat_params)

    # ---- cost estimate + explicitly sized VMEM budget ----
    total_in_bytes = sum(int(a.size) * a.dtype.itemsize for a in inputs)
    out_bytes = B_pad * out_pad * 4
    flops = 2 * B_pad * pos_pad * pos_pad + 2 * B_pad * pos_pad * total_out_pad
    trans = 3 * B_pad * pos_pad            # exp + sin + cos
    max_out_pad = 0
    for (_name, in_dims, od) in plan:
        odp = _round_up(od, LANE)
        max_out_pad = max(max_out_pad, odp)
        k1 = sum(_round_up(d, LANE) for d in in_dims)
        flops += 2 * B_pad * (k1 + odp) * odp
        trans += 2 * odp                   # 2 rsqrt per block
    act_bytes = B_pad * 4 * (total_out_pad + pos_pad
                             + (len(plan) + 3) * max_out_pad * 2 + x_pad)
    needed = total_in_bytes + 2 * out_bytes + act_bytes + (4 << 20)
    vmem_limit = int(min(_vmem_ceiling_bytes(), max(32 * 2 ** 20, needed)))

    out = pl.pallas_call(
        kernel,
        out_shape=jax.ShapeDtypeStruct((B_pad, out_pad), jnp.float32),
        in_specs=[pl.BlockSpec(memory_space=pltpu.MemorySpace.VMEM)] * len(inputs),
        out_specs=pl.BlockSpec(memory_space=pltpu.MemorySpace.VMEM),
        compiler_params=pltpu.CompilerParams(vmem_limit_bytes=vmem_limit),
        cost_estimate=pl.CostEstimate(flops=flops, transcendentals=trans,
                                      bytes_accessed=total_in_bytes + out_bytes),
    )(*inputs)
    return out[:B, :x_dim]


# ---------------------------------------------------------------------------
# Pure-JAX reference (torch-literal flow, same bf16 weight/activation rounding)
# ---------------------------------------------------------------------------
def sin_position_embeddings(steps, dim, T=1000):
    half = dim // 2
    scale = math.log(T) / (half - 1)
    freqs = jnp.exp(jnp.arange(half, dtype=jnp.float32) * -scale)   # [half]
    emb = steps[:, None] * freqs[None, :]                           # [B, half]
    return jnp.concatenate([jnp.sin(emb), jnp.cos(emb)], axis=-1)   # [B, dim]


def _bn_ref(h, g, bt):
    mu = jnp.mean(h, axis=0, keepdims=True)
    var = jnp.mean((h - mu) ** 2, axis=0, keepdims=True)
    return (h - mu) * lax.rsqrt(var + BN_EPS) * g + bt


def _dense_block_ref(x, pe, p):
    h = jnp.dot(x.astype(jnp.bfloat16), p["W1"].astype(jnp.bfloat16),
                preferred_element_type=jnp.float32) + p["b1"]
    h = jnp.maximum(h, 0.0)
    h = _bn_ref(h, p["g1"], p["bt1"])
    h = h + jnp.dot(pe.astype(jnp.bfloat16), p["Wp"].astype(jnp.bfloat16),
                    preferred_element_type=jnp.float32) + p["bp"]
    h = jnp.dot(h.astype(jnp.bfloat16), p["W2"].astype(jnp.bfloat16),
                preferred_element_type=jnp.float32) + p["b2"]
    h = jnp.maximum(h, 0.0)
    return _bn_ref(h, p["g2"], p["bt2"])


def unet_forward_ref(raw_params, x, t, *, pos_emb_dim, h_dims):
    steps = t.reshape(-1).astype(jnp.float32)
    sin_emb = sin_position_embeddings(steps, pos_emb_dim)
    pe = jnp.dot(sin_emb.astype(jnp.bfloat16),
                 raw_params["Pos_Emb_W"].astype(jnp.bfloat16),
                 preferred_element_type=jnp.float32) + raw_params["Pos_Emb_b"]
    pe = jnp.maximum(pe, 0.0)
    nL = len(h_dims)
    net = x
    enc_paths = [net]
    for i in range(nL + 1):
        net = _dense_block_ref(net, pe, raw_params["Enc_%02d" % i])
        enc_paths.append(net)
    net = _dense_block_ref(net, pe, raw_params["Map"])
    for i in range(nL + 1):
        net = _dense_block_ref(net, pe, raw_params["Dec_%02d" % i])
        net = jnp.concatenate([enc_paths[nL - i], net], axis=1)
    return _dense_block_ref(net, pe, raw_params["Out"])


# ---------------------------------------------------------------------------
if __name__ == "__main__":
    # Small but structure-preserving config.
    D, L = 3, 20                 # x_dim = 60
    pos_emb_dim = 32
    h_dims = [32, 16]
    z_dim = 8
    B = 8

    key = jax.random.PRNGKey(0)
    kp, kx, kt = jax.random.split(key, 3)
    raw_params, plan = init_unet_params(kp, D, L, pos_emb_dim, h_dims, z_dim)
    flat_params = pack_params_for_kernel(raw_params, plan, pos_emb_dim)

    x = jax.random.normal(kx, (B, D * L), jnp.float32)
    # t: one scalar timestep per batch element (torch docstring says [B x 1]).
    t = jax.random.randint(kt, (B, 1), 0, 1000).astype(jnp.float32)

    fwd = jax.jit(lambda fp, xx, tt: unet_forward_pallas(
        fp, plan, xx, tt, pos_emb_dim=pos_emb_dim, h_dims=h_dims))
    out = fwd(tuple(flat_params), x, t)
    jax.block_until_ready(out)
    assert out.shape == (B, D * L)
    assert bool(jnp.all(jnp.isfinite(out))), "non-finite output"

    ref = unet_forward_ref(raw_params, x, t, pos_emb_dim=pos_emb_dim, h_dims=h_dims)
    rel_err = float(jnp.linalg.norm(out - ref) / (jnp.linalg.norm(ref) + 1e-12))
    assert rel_err < 5e-2, "mismatch vs reference: rel_l2=%.3e" % rel_err
    print("KERNEL_OK")
</pallas_src>

<mosaic_0001>
module attributes {stable_mosaic.version = 11 : i64} {
  func.func @kernel(%arg0: memref<8x1xf32, #tpu.memory_space<vmem>>, %arg1: memref<8x128xf32, #tpu.memory_space<vmem>>, %arg2: memref<128x128xbf16, #tpu.memory_space<vmem>>, %arg3: memref<1x128xf32, #tpu.memory_space<vmem>>, %arg4: memref<128x1024xbf16, #tpu.memory_space<vmem>>, %arg5: memref<128x128xbf16, #tpu.memory_space<vmem>>, %arg6: memref<128x128xbf16, #tpu.memory_space<vmem>>, %arg7: memref<8x128xf32, #tpu.memory_space<vmem>>, %arg8: memref<128x128xbf16, #tpu.memory_space<vmem>>, %arg9: memref<128x128xbf16, #tpu.memory_space<vmem>>, %arg10: memref<8x128xf32, #tpu.memory_space<vmem>>, %arg11: memref<128x128xbf16, #tpu.memory_space<vmem>>, %arg12: memref<128x128xbf16, #tpu.memory_space<vmem>>, %arg13: memref<8x128xf32, #tpu.memory_space<vmem>>, %arg14: memref<128x128xbf16, #tpu.memory_space<vmem>>, %arg15: memref<128x128xbf16, #tpu.memory_space<vmem>>, %arg16: memref<8x128xf32, #tpu.memory_space<vmem>>, %arg17: memref<128x128xbf16, #tpu.memory_space<vmem>>, %arg18: memref<128x128xbf16, #tpu.memory_space<vmem>>, %arg19: memref<8x128xf32, #tpu.memory_space<vmem>>, %arg20: memref<256x128xbf16, #tpu.memory_space<vmem>>, %arg21: memref<128x128xbf16, #tpu.memory_space<vmem>>, %arg22: memref<8x128xf32, #tpu.memory_space<vmem>>, %arg23: memref<256x128xbf16, #tpu.memory_space<vmem>>, %arg24: memref<128x128xbf16, #tpu.memory_space<vmem>>, %arg25: memref<8x128xf32, #tpu.memory_space<vmem>>, %arg26: memref<256x128xbf16, #tpu.memory_space<vmem>>, %arg27: memref<128x128xbf16, #tpu.memory_space<vmem>>, %arg28: memref<8x128xf32, #tpu.memory_space<vmem>>, %arg29: memref<8x128xf32, #tpu.memory_space<vmem>>) attributes {dimension_semantics = [], scalar_prefetch = 0 : i64, scratch_operands = 0 : i64, tpu.core_type = #tpu.core_type<tc>} {
    %c0 = arith.constant 0 : index
    %c0_0 = arith.constant 0 : index
    %0 = vector.load %arg0[%c0, %c0_0] : memref<8x1xf32, #tpu.memory_space<vmem>>, vector<8x1xf32>
    %1 = tpu.iota {dimensions = array<i32: 1>} : vector<8x128xi32>
    %c16_i32 = arith.constant 16 : i32
    %2 = vector.broadcast %c16_i32 : i32 to vector<8x128xi32>
    %3 = arith.cmpi slt, %1, %2 : vector<8x128xi32>
    %c16_i32_1 = arith.constant 16 : i32
    %4 = vector.broadcast %c16_i32_1 : i32 to vector<8x128xi32>
    %5 = arith.subi %1, %4 : vector<8x128xi32>
    %6 = arith.select %3, %1, %5 : vector<8x128xi1>, vector<8x128xi32>
    %7 = arith.sitofp %6 : vector<8x128xi32> to vector<8x128xf32>
    %cst = arith.constant -0.460517019 : f32
    %8 = vector.broadcast %cst : f32 to vector<8x128xf32>
    %9 = arith.mulf %7, %8 : vector<8x128xf32>
    %10 = math.exp %9 : vector<8x128xf32>
    %11 = vector.broadcast %0 : vector<8x1xf32> to vector<8x128xf32>
    %12 = arith.mulf %11, %10 : vector<8x128xf32>
    %c16_i32_2 = arith.constant 16 : i32
    %13 = vector.broadcast %c16_i32_2 : i32 to vector<8x128xi32>
    %14 = arith.cmpi slt, %1, %13 : vector<8x128xi32>
    %15 = math.sin %12 : vector<8x128xf32>
    %16 = math.cos %12 : vector<8x128xf32>
    %17 = arith.select %14, %15, %16 : vector<8x128xi1>, vector<8x128xf32>
    %c32_i32 = arith.constant 32 : i32
    %18 = vector.broadcast %c32_i32 : i32 to vector<8x128xi32>
    %19 = arith.cmpi slt, %1, %18 : vector<8x128xi32>
    %cst_3 = arith.constant 0.000000e+00 : f32
    %20 = vector.broadcast %cst_3 : f32 to vector<8x128xf32>
    %21 = arith.select %19, %17, %20 : vector<8x128xi1>, vector<8x128xf32>
    %22 = arith.truncf %21 : vector<8x128xf32> to vector<8x128xbf16>
    %c0_4 = arith.constant 0 : index
    %c0_5 = arith.constant 0 : index
    %23 = vector.load %arg2[%c0_4, %c0_5] : memref<128x128xbf16, #tpu.memory_space<vmem>>, vector<128x128xbf16>
    %cst_6 = arith.constant dense<0.000000e+00> : vector<8x128xf32>
    %24 = tpu.matmul %22, %23, %cst_6 {dimension_numbers = #tpu.dot_dimension_numbers<[1], [0], [0], [1], [0, 0, 1, 1], [], []>} : vector<8x128xbf16>, vector<128x128xbf16>, vector<8x128xf32> -> vector<8x128xf32>
    %c0_7 = arith.constant 0 : index
    %c0_8 = arith.constant 0 : index
    %25 = vector.load %arg3[%c0_7, %c0_8] : memref<1x128xf32, #tpu.memory_space<vmem>>, vector<1x128xf32>
    %26 = vector.broadcast %25 : vector<1x128xf32> to vector<8x128xf32>
    %27 = arith.addf %24, %26 : vector<8x128xf32>
    %cst_9 = arith.constant 0.000000e+00 : f32
    %28 = vector.broadcast %cst_9 : f32 to vector<8x128xf32>
    %29 = arith.maximumf %27, %28 : vector<8x128xf32>
    %30 = arith.truncf %29 : vector<8x128xf32> to vector<8x128xbf16>
    %c0_10 = arith.constant 0 : index
    %c0_11 = arith.constant 0 : index
    %31 = vector.load %arg4[%c0_10, %c0_11] : memref<128x1024xbf16, #tpu.memory_space<vmem>>, vector<128x1024xbf16>
    %cst_12 = arith.constant dense<0.000000e+00> : vector<8x1024xf32>
    %32 = tpu.matmul %30, %31, %cst_12 {dimension_numbers = #tpu.dot_dimension_numbers<[1], [0], [0], [1], [0, 0, 1, 1], [], []>} : vector<8x128xbf16>, vector<128x1024xbf16>, vector<8x1024xf32> -> vector<8x1024xf32>
    %33 = vector.extract_strided_slice %32 {offsets = [0, 0], sizes = [8, 128], strides = [1, 1]} : vector<8x1024xf32> to vector<8x128xf32>
    %c0_13 = arith.constant 0 : index
    %c0_14 = arith.constant 0 : index
    %34 = vector.load %arg7[%c0_13, %c0_14] : memref<8x128xf32, #tpu.memory_space<vmem>>, vector<8x128xf32>
    %35 = vector.extract_strided_slice %32 {offsets = [0, 128], sizes = [8, 128], strides = [1, 1]} : vector<8x1024xf32> to vector<8x128xf32>
    %c0_15 = arith.constant 0 : index
    %c0_16 = arith.constant 0 : index
    %36 = vector.load %arg10[%c0_15, %c0_16] : memref<8x128xf32, #tpu.memory_space<vmem>>, vector<8x128xf32>
    %37 = vector.extract_strided_slice %32 {offsets = [0, 256], sizes = [8, 128], strides = [1, 1]} : vector<8x1024xf32> to vector<8x128xf32>
    %c0_17 = arith.constant 0 : index
    %c0_18 = arith.constant 0 : index
    %38 = vector.load %arg13[%c0_17, %c0_18] : memref<8x128xf32, #tpu.memory_space<vmem>>, vector<8x128xf32>
    %39 = vector.extract_strided_slice %32 {offsets = [0, 384], sizes = [8, 128], strides = [1, 1]} : vector<8x1024xf32> to vector<8x128xf32>
    %c0_19 = arith.constant 0 : index
    %c0_20 = arith.constant 0 : index
    %40 = vector.load %arg16[%c0_19, %c0_20] : memref<8x128xf32, #tpu.memory_space<vmem>>, vector<8x128xf32>
    %41 = vector.extract_strided_slice %32 {offsets = [0, 512], sizes = [8, 128], strides = [1, 1]} : vector<8x1024xf32> to vector<8x128xf32>
    %c0_21 = arith.constant 0 : index
    %c0_22 = arith.constant 0 : index
    %42 = vector.load %arg19[%c0_21, %c0_22] : memref<8x128xf32, #tpu.memory_space<vmem>>, vector<8x128xf32>
    %43 = vector.extract_strided_slice %32 {offsets = [0, 640], sizes = [8, 128], strides = [1, 1]} : vector<8x1024xf32> to vector<8x128xf32>
    %c0_23 = arith.constant 0 : index
    %c0_24 = arith.constant 0 : index
    %44 = vector.load %arg22[%c0_23, %c0_24] : memref<8x128xf32, #tpu.memory_space<vmem>>, vector<8x128xf32>
    %45 = vector.extract_strided_slice %32 {offsets = [0, 768], sizes = [8, 128], strides = [1, 1]} : vector<8x1024xf32> to vector<8x128xf32>
    %c0_25 = arith.constant 0 : index
    %c0_26 = arith.constant 0 : index
    %46 = vector.load %arg25[%c0_25, %c0_26] : memref<8x128xf32, #tpu.memory_space<vmem>>, vector<8x128xf32>
    %47 = vector.extract_strided_slice %32 {offsets = [0, 896], sizes = [8, 128], strides = [1, 1]} : vector<8x1024xf32> to vector<8x128xf32>
    %c0_27 = arith.constant 0 : index
    %c0_28 = arith.constant 0 : index
    %48 = vector.load %arg28[%c0_27, %c0_28] : memref<8x128xf32, #tpu.memory_space<vmem>>, vector<8x128xf32>
    %c0_29 = arith.constant 0 : index
    %c0_30 = arith.constant 0 : index
    %49 = vector.load %arg1[%c0_29, %c0_30] : memref<8x128xf32, #tpu.memory_space<vmem>>, vector<8x128xf32>
    %50 = arith.truncf %49 : vector<8x128xf32> to vector<8x128xbf16>
    %c0_31 = arith.constant 0 : index
    %c0_32 = arith.constant 0 : index
    %51 = vector.load %arg5[%c0_31, %c0_32] : memref<128x128xbf16, #tpu.memory_space<vmem>>, vector<128x128xbf16>
    %cst_33 = arith.constant dense<0.000000e+00> : vector<8x128xf32>
    %52 = tpu.matmul %50, %51, %cst_33 {dimension_numbers = #tpu.dot_dimension_numbers<[1], [0], [0], [1], [0, 0, 1, 1], [], []>} : vector<8x128xbf16>, vector<128x128xbf16>, vector<8x128xf32> -> vector<8x128xf32>
    %53 = vector.extract_strided_slice %34 {offsets = [0, 0], sizes = [1, 128], strides = [1, 1]} : vector<8x128xf32> to vector<1x128xf32>
    %54 = vector.broadcast %53 : vector<1x128xf32> to vector<8x128xf32>
    %55 = arith.addf %52, %54 : vector<8x128xf32>
    %cst_34 = arith.constant 0.000000e+00 : f32
    %56 = vector.broadcast %cst_34 : f32 to vector<8x128xf32>
    %57 = arith.maximumf %55, %56 : vector<8x128xf32>
    %58 = vector.extract_strided_slice %34 {offsets = [1, 0], sizes = [1, 128], strides = [1, 1]} : vector<8x128xf32> to vector<1x128xf32>
    %59 = vector.extract_strided_slice %34 {offsets = [2, 0], sizes = [1, 128], strides = [1, 1]} : vector<8x128xf32> to vector<1x128xf32>
    %cst_35 = arith.constant dense<0.000000e+00> : vector<128xf32>
    %60 = vector.multi_reduction <add>, %57, %cst_35 [0] : vector<8x128xf32> to vector<128xf32>
    %61 = vector.shape_cast %60 : vector<128xf32> to vector<1x128xf32>
    %62 = arith.mulf %57, %57 : vector<8x128xf32>
    %cst_36 = arith.constant dense<0.000000e+00> : vector<128xf32>
    %63 = vector.multi_reduction <add>, %62, %cst_36 [0] : vector<8x128xf32> to vector<128xf32>
    %64 = vector.shape_cast %63 : vector<128xf32> to vector<1x128xf32>
    %cst_37 = arith.constant 1.250000e-01 : f32
    %65 = vector.broadcast %cst_37 : f32 to vector<1x128xf32>
    %66 = arith.mulf %61, %65 : vector<1x128xf32>
    %cst_38 = arith.constant 1.250000e-01 : f32
    %67 = vector.broadcast %cst_38 : f32 to vector<1x128xf32>
    %68 = arith.mulf %64, %67 : vector<1x128xf32>
    %69 = arith.mulf %66, %66 : vector<1x128xf32>
    %70 = arith.subf %68, %69 : vector<1x128xf32>
    %cst_39 = arith.constant 0.000000e+00 : f32
    %71 = vector.broadcast %cst_39 : f32 to vector<1x128xf32>
    %72 = arith.maximumf %70, %71 : vector<1x128xf32>
    %73 = vector.broadcast %66 : vector<1x128xf32> to vector<8x128xf32>
    %74 = arith.subf %57, %73 : vector<8x128xf32>
    %cst_40 = arith.constant 9.99999974E-6 : f32
    %75 = vector.broadcast %cst_40 : f32 to vector<1x128xf32>
    %76 = arith.addf %72, %75 : vector<1x128xf32>
    %77 = math.rsqrt %76 : vector<1x128xf32>
    %78 = vector.broadcast %77 : vector<1x128xf32> to vector<8x128xf32>
    %79 = arith.mulf %74, %78 : vector<8x128xf32>
    %80 = vector.broadcast %58 : vector<1x128xf32> to vector<8x128xf32>
    %81 = arith.mulf %79, %80 : vector<8x128xf32>
    %82 = vector.broadcast %59 : vector<1x128xf32> to vector<8x128xf32>
    %83 = arith.addf %81, %82 : vector<8x128xf32>
    %84 = arith.addf %83, %33 : vector<8x128xf32>
    %85 = vector.extract_strided_slice %34 {offsets = [3, 0], sizes = [1, 128], strides = [1, 1]} : vector<8x128xf32> to vector<1x128xf32>
    %86 = vector.broadcast %85 : vector<1x128xf32> to vector<8x128xf32>
    %87 = arith.addf %84, %86 : vector<8x128xf32>
    %88 = arith.truncf %87 : vector<8x128xf32> to vector<8x128xbf16>
    %c0_41 = arith.constant 0 : index
    %c0_42 = arith.constant 0 : index
    %89 = vector.load %arg6[%c0_41, %c0_42] : memref<128x128xbf16, #tpu.memory_space<vmem>>, vector<128x128xbf16>
    %cst_43 = arith.constant dense<0.000000e+00> : vector<8x128xf32>
    %90 = tpu.matmul %88, %89, %cst_43 {dimension_numbers = #tpu.dot_dimension_numbers<[1], [0], [0], [1], [0, 0, 1, 1], [], []>} : vector<8x128xbf16>, vector<128x128xbf16>, vector<8x128xf32> -> vector<8x128xf32>
    %91 = vector.extract_strided_slice %34 {offsets = [4, 0], sizes = [1, 128], strides = [1, 1]} : vector<8x128xf32> to vector<1x128xf32>
    %92 = vector.broadcast %91 : vector<1x128xf32> to vector<8x128xf32>
    %93 = arith.addf %90, %92 : vector<8x128xf32>
    %cst_44 = arith.constant 0.000000e+00 : f32
    %94 = vector.broadcast %cst_44 : f32 to vector<8x128xf32>
    %95 = arith.maximumf %93, %94 : vector<8x128xf32>
    %96 = vector.extract_strided_slice %34 {offsets = [5, 0], sizes = [1, 128], strides = [1, 1]} : vector<8x128xf32> to vector<1x128xf32>
    %97 = vector.extract_strided_slice %34 {offsets = [6, 0], sizes = [1, 128], strides = [1, 1]} : vector<8x128xf32> to vector<1x128xf32>
    %cst_45 = arith.constant dense<0.000000e+00> : vector<128xf32>
    %98 = vector.multi_reduction <add>, %95, %cst_45 [0] : vector<8x128xf32> to vector<128xf32>
    %99 = vector.shape_cast %98 : vector<128xf32> to vector<1x128xf32>
    %100 = arith.mulf %95, %95 : vector<8x128xf32>
    %cst_46 = arith.constant dense<0.000000e+00> : vector<128xf32>
    %101 = vector.multi_reduction <add>, %100, %cst_46 [0] : vector<8x128xf32> to vector<128xf32>
    %102 = vector.shape_cast %101 : vector<128xf32> to vector<1x128xf32>
    %cst_47 = arith.constant 1.250000e-01 : f32
    %103 = vector.broadcast %cst_47 : f32 to vector<1x128xf32>
    %104 = arith.mulf %99, %103 : vector<1x128xf32>
    %cst_48 = arith.constant 1.250000e-01 : f32
    %105 = vector.broadcast %cst_48 : f32 to vector<1x128xf32>
    %106 = arith.mulf %102, %105 : vector<1x128xf32>
    %107 = arith.mulf %104, %104 : vector<1x128xf32>
    %108 = arith.subf %106, %107 : vector<1x128xf32>
    %cst_49 = arith.constant 0.000000e+00 : f32
    %109 = vector.broadcast %cst_49 : f32 to vector<1x128xf32>
    %110 = arith.maximumf %108, %109 : vector<1x128xf32>
    %111 = vector.broadcast %104 : vector<1x128xf32> to vector<8x128xf32>
    %112 = arith.subf %95, %111 : vector<8x128xf32>
    %cst_50 = arith.constant 9.99999974E-6 : f32
    %113 = vector.broadcast %cst_50 : f32 to vector<1x128xf32>
    %114 = arith.addf %110, %113 : vector<1x128xf32>
    %115 = math.rsqrt %114 : vector<1x128xf32>
    %116 = vector.broadcast %115 : vector<1x128xf32> to vector<8x128xf32>
    %117 = arith.mulf %112, %116 : vector<8x128xf32>
    %118 = vector.broadcast %96 : vector<1x128xf32> to vector<8x128xf32>
    %119 = arith.mulf %117, %118 : vector<8x128xf32>
    %120 = vector.broadcast %97 : vector<1x128xf32> to vector<8x128xf32>
    %121 = arith.addf %119, %120 : vector<8x128xf32>
    %122 = arith.truncf %121 : vector<8x128xf32> to vector<8x128xbf16>
    %c0_51 = arith.constant 0 : index
    %c0_52 = arith.constant 0 : index
    %123 = vector.load %arg8[%c0_51, %c0_52] : memref<128x128xbf16, #tpu.memory_space<vmem>>, vector<128x128xbf16>
    %cst_53 = arith.constant dense<0.000000e+00> : vector<8x128xf32>
    %124 = tpu.matmul %122, %123, %cst_53 {dimension_numbers = #tpu.dot_dimension_numbers<[1], [0], [0], [1], [0, 0, 1, 1], [], []>} : vector<8x128xbf16>, vector<128x128xbf16>, vector<8x128xf32> -> vector<8x128xf32>
    %125 = vector.extract_strided_slice %36 {offsets = [0, 0], sizes = [1, 128], strides = [1, 1]} : vector<8x128xf32> to vector<1x128xf32>
    %126 = vector.broadcast %125 : vector<1x128xf32> to vector<8x128xf32>
    %127 = arith.addf %124, %126 : vector<8x128xf32>
    %cst_54 = arith.constant 0.000000e+00 : f32
    %128 = vector.broadcast %cst_54 : f32 to vector<8x128xf32>
    %129 = arith.maximumf %127, %128 : vector<8x128xf32>
    %130 = vector.extract_strided_slice %36 {offsets = [1, 0], sizes = [1, 128], strides = [1, 1]} : vector<8x128xf32> to vector<1x128xf32>
    %131 = vector.extract_strided_slice %36 {offsets = [2, 0], sizes = [1, 128], strides = [1, 1]} : vector<8x128xf32> to vector<1x128xf32>
    %cst_55 = arith.constant dense<0.000000e+00> : vector<128xf32>
    %132 = vector.multi_reduction <add>, %129, %cst_55 [0] : vector<8x128xf32> to vector<128xf32>
    %133 = vector.shape_cast %132 : vector<128xf32> to vector<1x128xf32>
    %134 = arith.mulf %129, %129 : vector<8x128xf32>
    %cst_56 = arith.constant dense<0.000000e+00> : vector<128xf32>
    %135 = vector.multi_reduction <add>, %134, %cst_56 [0] : vector<8x128xf32> to vector<128xf32>
    %136 = vector.shape_cast %135 : vector<128xf32> to vector<1x128xf32>
    %cst_57 = arith.constant 1.250000e-01 : f32
    %137 = vector.broadcast %cst_57 : f32 to vector<1x128xf32>
    %138 = arith.mulf %133, %137 : vector<1x128xf32>
    %cst_58 = arith.constant 1.250000e-01 : f32
    %139 = vector.broadcast %cst_58 : f32 to vector<1x128xf32>
    %140 = arith.mulf %136, %139 : vector<1x128xf32>
    %141 = arith.mulf %138, %138 : vector<1x128xf32>
    %142 = arith.subf %140, %141 : vector<1x128xf32>
    %cst_59 = arith.constant 0.000000e+00 : f32
    %143 = vector.broadcast %cst_59 : f32 to vector<1x128xf32>
    %144 = arith.maximumf %142, %143 : vector<1x128xf32>
    %145 = vector.broadcast %138 : vector<1x128xf32> to vector<8x128xf32>
    %146 = arith.subf %129, %145 : vector<8x128xf32>
    %cst_60 = arith.constant 9.99999974E-6 : f32
    %147 = vector.broadcast %cst_60 : f32 to vector<1x128xf32>
    %148 = arith.addf %144, %147 : vector<1x128xf32>
    %149 = math.rsqrt %148 : vector<1x128xf32>
    %150 = vector.broadcast %149 : vector<1x128xf32> to vector<8x128xf32>
    %151 = arith.mulf %146, %150 : vector<8x128xf32>
    %152 = vector.broadcast %130 : vector<1x128xf32> to vector<8x128xf32>
    %153 = arith.mulf %151, %152 : vector<8x128xf32>
    %154 = vector.broadcast %131 : vector<1x128xf32> to vector<8x128xf32>
    %155 = arith.addf %153, %154 : vector<8x128xf32>
    %156 = arith.addf %155, %35 : vector<8x128xf32>
    %157 = vector.extract_strided_slice %36 {offsets = [3, 0], sizes = [1, 128], strides = [1, 1]} : vector<8x128xf32> to vector<1x128xf32>
    %158 = vector.broadcast %157 : vector<1x128xf32> to vector<8x128xf32>
    %159 = arith.addf %156, %158 : vector<8x128xf32>
    %160 = arith.truncf %159 : vector<8x128xf32> to vector<8x128xbf16>
    %c0_61 = arith.constant 0 : index
    %c0_62 = arith.constant 0 : index
    %161 = vector.load %arg9[%c0_61, %c0_62] : memref<128x128xbf16, #tpu.memory_space<vmem>>, vector<128x128xbf16>
    %cst_63 = arith.constant dense<0.000000e+00> : vector<8x128xf32>
    %162 = tpu.matmul %160, %161, %cst_63 {dimension_numbers = #tpu.dot_dimension_numbers<[1], [0], [0], [1], [0, 0, 1, 1], [], []>} : vector<8x128xbf16>, vector<128x128xbf16>, vector<8x128xf32> -> vector<8x128xf32>
    %163 = vector.extract_strided_slice %36 {offsets = [4, 0], sizes = [1, 128], strides = [1, 1]} : vector<8x128xf32> to vector<1x128xf32>
    %164 = vector.broadcast %163 : vector<1x128xf32> to vector<8x128xf32>
    %165 = arith.addf %162, %164 : vector<8x128xf32>
    %cst_64 = arith.constant 0.000000e+00 : f32
    %166 = vector.broadcast %cst_64 : f32 to vector<8x128xf32>
    %167 = arith.maximumf %165, %166 : vector<8x128xf32>
    %168 = vector.extract_strided_slice %36 {offsets = [5, 0], sizes = [1, 128], strides = [1, 1]} : vector<8x128xf32> to vector<1x128xf32>
    %169 = vector.extract_strided_slice %36 {offsets = [6, 0], sizes = [1, 128], strides = [1, 1]} : vector<8x128xf32> to vector<1x128xf32>
    %cst_65 = arith.constant dense<0.000000e+00> : vector<128xf32>
    %170 = vector.multi_reduction <add>, %167, %cst_65 [0] : vector<8x128xf32> to vector<128xf32>
    %171 = vector.shape_cast %170 : vector<128xf32> to vector<1x128xf32>
    %172 = arith.mulf %167, %167 : vector<8x128xf32>
    %cst_66 = arith.constant dense<0.000000e+00> : vector<128xf32>
    %173 = vector.multi_reduction <add>, %172, %cst_66 [0] : vector<8x128xf32> to vector<128xf32>
    %174 = vector.shape_cast %173 : vector<128xf32> to vector<1x128xf32>
    %cst_67 = arith.constant 1.250000e-01 : f32
    %175 = vector.broadcast %cst_67 : f32 to vector<1x128xf32>
    %176 = arith.mulf %171, %175 : vector<1x128xf32>
    %cst_68 = arith.constant 1.250000e-01 : f32
    %177 = vector.broadcast %cst_68 : f32 to vector<1x128xf32>
    %178 = arith.mulf %174, %177 : vector<1x128xf32>
    %179 = arith.mulf %176, %176 : vector<1x128xf32>
    %180 = arith.subf %178, %179 : vector<1x128xf32>
    %cst_69 = arith.constant 0.000000e+00 : f32
    %181 = vector.broadcast %cst_69 : f32 to vector<1x128xf32>
    %182 = arith.maximumf %180, %181 : vector<1x128xf32>
    %183 = vector.broadcast %176 : vector<1x128xf32> to vector<8x128xf32>
    %184 = arith.subf %167, %183 : vector<8x128xf32>
    %cst_70 = arith.constant 9.99999974E-6 : f32
    %185 = vector.broadcast %cst_70 : f32 to vector<1x128xf32>
    %186 = arith.addf %182, %185 : vector<1x128xf32>
    %187 = math.rsqrt %186 : vector<1x128xf32>
    %188 = vector.broadcast %187 : vector<1x128xf32> to vector<8x128xf32>
    %189 = arith.mulf %184, %188 : vector<8x128xf32>
    %190 = vector.broadcast %168 : vector<1x128xf32> to vector<8x128xf32>
    %191 = arith.mulf %189, %190 : vector<8x128xf32>
    %192 = vector.broadcast %169 : vector<1x128xf32> to vector<8x128xf32>
    %193 = arith.addf %191, %192 : vector<8x128xf32>
    %194 = arith.truncf %193 : vector<8x128xf32> to vector<8x128xbf16>
    %c0_71 = arith.constant 0 : index
    %c0_72 = arith.constant 0 : index
    %195 = vector.load %arg11[%c0_71, %c0_72] : memref<128x128xbf16, #tpu.memory_space<vmem>>, vector<128x128xbf16>
    %cst_73 = arith.constant dense<0.000000e+00> : vector<8x128xf32>
    %196 = tpu.matmul %194, %195, %cst_73 {dimension_numbers = #tpu.dot_dimension_numbers<[1], [0], [0], [1], [0, 0, 1, 1], [], []>} : vector<8x128xbf16>, vector<128x128xbf16>, vector<8x128xf32> -> vector<8x128xf32>
    %197 = vector.extract_strided_slice %38 {offsets = [0, 0], sizes = [1, 128], strides = [1, 1]} : vector<8x128xf32> to vector<1x128xf32>
    %198 = vector.broadcast %197 : vector<1x128xf32> to vector<8x128xf32>
    %199 = arith.addf %196, %198 : vector<8x128xf32>
    %cst_74 = arith.constant 0.000000e+00 : f32
    %200 = vector.broadcast %cst_74 : f32 to vector<8x128xf32>
    %201 = arith.maximumf %199, %200 : vector<8x128xf32>
    %202 = vector.extract_strided_slice %38 {offsets = [1, 0], sizes = [1, 128], strides = [1, 1]} : vector<8x128xf32> to vector<1x128xf32>
    %203 = vector.extract_strided_slice %38 {offsets = [2, 0], sizes = [1, 128], strides = [1, 1]} : vector<8x128xf32> to vector<1x128xf32>
    %cst_75 = arith.constant dense<0.000000e+00> : vector<128xf32>
    %204 = vector.multi_reduction <add>, %201, %cst_75 [0] : vector<8x128xf32> to vector<128xf32>
    %205 = vector.shape_cast %204 : vector<128xf32> to vector<1x128xf32>
    %206 = arith.mulf %201, %201 : vector<8x128xf32>
    %cst_76 = arith.constant dense<0.000000e+00> : vector<128xf32>
    %207 = vector.multi_reduction <add>, %206, %cst_76 [0] : vector<8x128xf32> to vector<128xf32>
    %208 = vector.shape_cast %207 : vector<128xf32> to vector<1x128xf32>
    %cst_77 = arith.constant 1.250000e-01 : f32
    %209 = vector.broadcast %cst_77 : f32 to vector<1x128xf32>
    %210 = arith.mulf %205, %209 : vector<1x128xf32>
    %cst_78 = arith.constant 1.250000e-01 : f32
    %211 = vector.broadcast %cst_78 : f32 to vector<1x128xf32>
    %212 = arith.mulf %208, %211 : vector<1x128xf32>
    %213 = arith.mulf %210, %210 : vector<1x128xf32>
    %214 = arith.subf %212, %213 : vector<1x128xf32>
    %cst_79 = arith.constant 0.000000e+00 : f32
    %215 = vector.broadcast %cst_79 : f32 to vector<1x128xf32>
    %216 = arith.maximumf %214, %215 : vector<1x128xf32>
    %217 = vector.broadcast %210 : vector<1x128xf32> to vector<8x128xf32>
    %218 = arith.subf %201, %217 : vector<8x128xf32>
    %cst_80 = arith.constant 9.99999974E-6 : f32
    %219 = vector.broadcast %cst_80 : f32 to vector<1x128xf32>
    %220 = arith.addf %216, %219 : vector<1x128xf32>
    %221 = math.rsqrt %220 : vector<1x128xf32>
    %222 = vector.broadcast %221 : vector<1x128xf32> to vector<8x128xf32>
    %223 = arith.mulf %218, %222 : vector<8x128xf32>
    %224 = vector.broadcast %202 : vector<1x128xf32> to vector<8x128xf32>
    %225 = arith.mulf %223, %224 : vector<8x128xf32>
    %226 = vector.broadcast %203 : vector<1x128xf32> to vector<8x128xf32>
    %227 = arith.addf %225, %226 : vector<8x128xf32>
    %228 = arith.addf %227, %37 : vector<8x128xf32>
    %229 = vector.extract_strided_slice %38 {offsets = [3, 0], sizes = [1, 128], strides = [1, 1]} : vector<8x128xf32> to vector<1x128xf32>
    %230 = vector.broadcast %229 : vector<1x128xf32> to vector<8x128xf32>
    %231 = arith.addf %228, %230 : vector<8x128xf32>
    %232 = arith.truncf %231 : vector<8x128xf32> to vector<8x128xbf16>
    %c0_81 = arith.constant 0 : index
    %c0_82 = arith.constant 0 : index
    %233 = vector.load %arg12[%c0_81, %c0_82] : memref<128x128xbf16, #tpu.memory_space<vmem>>, vector<128x128xbf16>
    %cst_83 = arith.constant dense<0.000000e+00> : vector<8x128xf32>
    %234 = tpu.matmul %232, %233, %cst_83 {dimension_numbers = #tpu.dot_dimension_numbers<[1], [0], [0], [1], [0, 0, 1, 1], [], []>} : vector<8x128xbf16>, vector<128x128xbf16>, vector<8x128xf32> -> vector<8x128xf32>
    %235 = vector.extract_strided_slice %38 {offsets = [4, 0], sizes = [1, 128], strides = [1, 1]} : vector<8x128xf32> to vector<1x128xf32>
    %236 = vector.broadcast %235 : vector<1x128xf32> to vector<8x128xf32>
    %237 = arith.addf %234, %236 : vector<8x128xf32>
    %cst_84 = arith.constant 0.000000e+00 : f32
    %238 = vector.broadcast %cst_84 : f32 to vector<8x128xf32>
    %239 = arith.maximumf %237, %238 : vector<8x128xf32>
    %240 = vector.extract_strided_slice %38 {offsets = [5, 0], sizes = [1, 128], strides = [1, 1]} : vector<8x128xf32> to vector<1x128xf32>
    %241 = vector.extract_strided_slice %38 {offsets = [6, 0], sizes = [1, 128], strides = [1, 1]} : vector<8x128xf32> to vector<1x128xf32>
    %cst_85 = arith.constant dense<0.000000e+00> : vector<128xf32>
    %242 = vector.multi_reduction <add>, %239, %cst_85 [0] : vector<8x128xf32> to vector<128xf32>
    %243 = vector.shape_cast %242 : vector<128xf32> to vector<1x128xf32>
    %244 = arith.mulf %239, %239 : vector<8x128xf32>
    %cst_86 = arith.constant dense<0.000000e+00> : vector<128xf32>
    %245 = vector.multi_reduction <add>, %244, %cst_86 [0] : vector<8x128xf32> to vector<128xf32>
    %246 = vector.shape_cast %245 : vector<128xf32> to vector<1x128xf32>
    %cst_87 = arith.constant 1.250000e-01 : f32
    %247 = vector.broadcast %cst_87 : f32 to vector<1x128xf32>
    %248 = arith.mulf %243, %247 : vector<1x128xf32>
    %cst_88 = arith.constant 1.250000e-01 : f32
    %249 = vector.broadcast %cst_88 : f32 to vector<1x128xf32>
    %250 = arith.mulf %246, %249 : vector<1x128xf32>
    %251 = arith.mulf %248, %248 : vector<1x128xf32>
    %252 = arith.subf %250, %251 : vector<1x128xf32>
    %cst_89 = arith.constant 0.000000e+00 : f32
    %253 = vector.broadcast %cst_89 : f32 to vector<1x128xf32>
    %254 = arith.maximumf %252, %253 : vector<1x128xf32>
    %255 = vector.broadcast %248 : vector<1x128xf32> to vector<8x128xf32>
    %256 = arith.subf %239, %255 : vector<8x128xf32>
    %cst_90 = arith.constant 9.99999974E-6 : f32
    %257 = vector.broadcast %cst_90 : f32 to vector<1x128xf32>
    %258 = arith.addf %254, %257 : vector<1x128xf32>
    %259 = math.rsqrt %258 : vector<1x128xf32>
    %260 = vector.broadcast %259 : vector<1x128xf32> to vector<8x128xf32>
    %261 = arith.mulf %256, %260 : vector<8x128xf32>
    %262 = vector.broadcast %240 : vector<1x128xf32> to vector<8x128xf32>
    %263 = arith.mulf %261, %262 : vector<8x128xf32>
    %264 = vector.broadcast %241 : vector<1x128xf32> to vector<8x128xf32>
    %265 = arith.addf %263, %264 : vector<8x128xf32>
    %266 = arith.truncf %265 : vector<8x128xf32> to vector<8x128xbf16>
    %c0_91 = arith.constant 0 : index
    %c0_92 = arith.constant 0 : index
    %267 = vector.load %arg14[%c0_91, %c0_92] : memref<128x128xbf16, #tpu.memory_space<vmem>>, vector<128x128xbf16>
    %cst_93 = arith.constant dense<0.000000e+00> : vector<8x128xf32>
    %268 = tpu.matmul %266, %267, %cst_93 {dimension_numbers = #tpu.dot_dimension_numbers<[1], [0], [0], [1], [0, 0, 1, 1], [], []>} : vector<8x128xbf16>, vector<128x128xbf16>, vector<8x128xf32> -> vector<8x128xf32>
    %269 = vector.extract_strided_slice %40 {offsets = [0, 0], sizes = [1, 128], strides = [1, 1]} : vector<8x128xf32> to vector<1x128xf32>
    %270 = vector.broadcast %269 : vector<1x128xf32> to vector<8x128xf32>
    %271 = arith.addf %268, %270 : vector<8x128xf32>
    %cst_94 = arith.constant 0.000000e+00 : f32
    %272 = vector.broadcast %cst_94 : f32 to vector<8x128xf32>
    %273 = arith.maximumf %271, %272 : vector<8x128xf32>
    %274 = vector.extract_strided_slice %40 {offsets = [1, 0], sizes = [1, 128], strides = [1, 1]} : vector<8x128xf32> to vector<1x128xf32>
    %275 = vector.extract_strided_slice %40 {offsets = [2, 0], sizes = [1, 128], strides = [1, 1]} : vector<8x128xf32> to vector<1x128xf32>
    %cst_95 = arith.constant dense<0.000000e+00> : vector<128xf32>
    %276 = vector.multi_reduction <add>, %273, %cst_95 [0] : vector<8x128xf32> to vector<128xf32>
    %277 = vector.shape_cast %276 : vector<128xf32> to vector<1x128xf32>
    %278 = arith.mulf %273, %273 : vector<8x128xf32>
    %cst_96 = arith.constant dense<0.000000e+00> : vector<128xf32>
    %279 = vector.multi_reduction <add>, %278, %cst_96 [0] : vector<8x128xf32> to vector<128xf32>
    %280 = vector.shape_cast %279 : vector<128xf32> to vector<1x128xf32>
    %cst_97 = arith.constant 1.250000e-01 : f32
    %281 = vector.broadcast %cst_97 : f32 to vector<1x128xf32>
    %282 = arith.mulf %277, %281 : vector<1x128xf32>
    %cst_98 = arith.constant 1.250000e-01 : f32
    %283 = vector.broadcast %cst_98 : f32 to vector<1x128xf32>
    %284 = arith.mulf %280, %283 : vector<1x128xf32>
    %285 = arith.mulf %282, %282 : vector<1x128xf32>
    %286 = arith.subf %284, %285 : vector<1x128xf32>
    %cst_99 = arith.constant 0.000000e+00 : f32
    %287 = vector.broadcast %cst_99 : f32 to vector<1x128xf32>
    %288 = arith.maximumf %286, %287 : vector<1x128xf32>
    %289 = vector.broadcast %282 : vector<1x128xf32> to vector<8x128xf32>
    %290 = arith.subf %273, %289 : vector<8x128xf32>
    %cst_100 = arith.constant 9.99999974E-6 : f32
    %291 = vector.broadcast %cst_100 : f32 to vector<1x128xf32>
    %292 = arith.addf %288, %291 : vector<1x128xf32>
    %293 = math.rsqrt %292 : vector<1x128xf32>
    %294 = vector.broadcast %293 : vector<1x128xf32> to vector<8x128xf32>
    %295 = arith.mulf %290, %294 : vector<8x128xf32>
    %296 = vector.broadcast %274 : vector<1x128xf32> to vector<8x128xf32>
    %297 = arith.mulf %295, %296 : vector<8x128xf32>
    %298 = vector.broadcast %275 : vector<1x128xf32> to vector<8x128xf32>
    %299 = arith.addf %297, %298 : vector<8x128xf32>
    %300 = arith.addf %299, %39 : vector<8x128xf32>
    %301 = vector.extract_strided_slice %40 {offsets = [3, 0], sizes = [1, 128], strides = [1, 1]} : vector<8x128xf32> to vector<1x128xf32>
    %302 = vector.broadcast %301 : vector<1x128xf32> to vector<8x128xf32>
    %303 = arith.addf %300, %302 : vector<8x128xf32>
    %304 = arith.truncf %303 : vector<8x128xf32> to vector<8x128xbf16>
    %c0_101 = arith.constant 0 : index
    %c0_102 = arith.constant 0 : index
    %305 = vector.load %arg15[%c0_101, %c0_102] : memref<128x128xbf16, #tpu.memory_space<vmem>>, vector<128x128xbf16>
    %cst_103 = arith.constant dense<0.000000e+00> : vector<8x128xf32>
    %306 = tpu.matmul %304, %305, %cst_103 {dimension_numbers = #tpu.dot_dimension_numbers<[1], [0], [0], [1], [0, 0, 1, 1], [], []>} : vector<8x128xbf16>, vector<128x128xbf16>, vector<8x128xf32> -> vector<8x128xf32>
    %307 = vector.extract_strided_slice %40 {offsets = [4, 0], sizes = [1, 128], strides = [1, 1]} : vector<8x128xf32> to vector<1x128xf32>
    %308 = vector.broadcast %307 : vector<1x128xf32> to vector<8x128xf32>
    %309 = arith.addf %306, %308 : vector<8x128xf32>
    %cst_104 = arith.constant 0.000000e+00 : f32
    %310 = vector.broadcast %cst_104 : f32 to vector<8x128xf32>
    %311 = arith.maximumf %309, %310 : vector<8x128xf32>
    %312 = vector.extract_strided_slice %40 {offsets = [5, 0], sizes = [1, 128], strides = [1, 1]} : vector<8x128xf32> to vector<1x128xf32>
    %313 = vector.extract_strided_slice %40 {offsets = [6, 0], sizes = [1, 128], strides = [1, 1]} : vector<8x128xf32> to vector<1x128xf32>
    %cst_105 = arith.constant dense<0.000000e+00> : vector<128xf32>
    %314 = vector.multi_reduction <add>, %311, %cst_105 [0] : vector<8x128xf32> to vector<128xf32>
    %315 = vector.shape_cast %314 : vector<128xf32> to vector<1x128xf32>
    %316 = arith.mulf %311, %311 : vector<8x128xf32>
    %cst_106 = arith.constant dense<0.000000e+00> : vector<128xf32>
    %317 = vector.multi_reduction <add>, %316, %cst_106 [0] : vector<8x128xf32> to vector<128xf32>
    %318 = vector.shape_cast %317 : vector<128xf32> to vector<1x128xf32>
    %cst_107 = arith.constant 1.250000e-01 : f32
    %319 = vector.broadcast %cst_107 : f32 to vector<1x128xf32>
    %320 = arith.mulf %315, %319 : vector<1x128xf32>
    %cst_108 = arith.constant 1.250000e-01 : f32
    %321 = vector.broadcast %cst_108 : f32 to vector<1x128xf32>
    %322 = arith.mulf %318, %321 : vector<1x128xf32>
    %323 = arith.mulf %320, %320 : vector<1x128xf32>
    %324 = arith.subf %322, %323 : vector<1x128xf32>
    %cst_109 = arith.constant 0.000000e+00 : f32
    %325 = vector.broadcast %cst_109 : f32 to vector<1x128xf32>
    %326 = arith.maximumf %324, %325 : vector<1x128xf32>
    %327 = vector.broadcast %320 : vector<1x128xf32> to vector<8x128xf32>
    %328 = arith.subf %311, %327 : vector<8x128xf32>
    %cst_110 = arith.constant 9.99999974E-6 : f32
    %329 = vector.broadcast %cst_110 : f32 to vector<1x128xf32>
    %330 = arith.addf %326, %329 : vector<1x128xf32>
    %331 = math.rsqrt %330 : vector<1x128xf32>
    %332 = vector.broadcast %331 : vector<1x128xf32> to vector<8x128xf32>
    %333 = arith.mulf %328, %332 : vector<8x128xf32>
    %334 = vector.broadcast %312 : vector<1x128xf32> to vector<8x128xf32>
    %335 = arith.mulf %333, %334 : vector<8x128xf32>
    %336 = vector.broadcast %313 : vector<1x128xf32> to vector<8x128xf32>
    %337 = arith.addf %335, %336 : vector<8x128xf32>
    %338 = arith.truncf %337 : vector<8x128xf32> to vector<8x128xbf16>
    %c0_111 = arith.constant 0 : index
    %c0_112 = arith.constant 0 : index
    %339 = vector.load %arg17[%c0_111, %c0_112] : memref<128x128xbf16, #tpu.memory_space<vmem>>, vector<128x128xbf16>
    %cst_113 = arith.constant dense<0.000000e+00> : vector<8x128xf32>
    %340 = tpu.matmul %338, %339, %cst_113 {dimension_numbers = #tpu.dot_dimension_numbers<[1], [0], [0], [1], [0, 0, 1, 1], [], []>} : vector<8x128xbf16>, vector<128x128xbf16>, vector<8x128xf32> -> vector<8x128xf32>
    %341 = vector.extract_strided_slice %42 {offsets = [0, 0], sizes = [1, 128], strides = [1, 1]} : vector<8x128xf32> to vector<1x128xf32>
    %342 = vector.broadcast %341 : vector<1x128xf32> to vector<8x128xf32>
    %343 = arith.addf %340, %342 : vector<8x128xf32>
    %cst_114 = arith.constant 0.000000e+00 : f32
    %344 = vector.broadcast %cst_114 : f32 to vector<8x128xf32>
    %345 = arith.maximumf %343, %344 : vector<8x128xf32>
    %346 = vector.extract_strided_slice %42 {offsets = [1, 0], sizes = [1, 128], strides = [1, 1]} : vector<8x128xf32> to vector<1x128xf32>
    %347 = vector.extract_strided_slice %42 {offsets = [2, 0], sizes = [1, 128], strides = [1, 1]} : vector<8x128xf32> to vector<1x128xf32>
    %cst_115 = arith.constant dense<0.000000e+00> : vector<128xf32>
    %348 = vector.multi_reduction <add>, %345, %cst_115 [0] : vector<8x128xf32> to vector<128xf32>
    %349 = vector.shape_cast %348 : vector<128xf32> to vector<1x128xf32>
    %350 = arith.mulf %345, %345 : vector<8x128xf32>
    %cst_116 = arith.constant dense<0.000000e+00> : vector<128xf32>
    %351 = vector.multi_reduction <add>, %350, %cst_116 [0] : vector<8x128xf32> to vector<128xf32>
    %352 = vector.shape_cast %351 : vector<128xf32> to vector<1x128xf32>
    %cst_117 = arith.constant 1.250000e-01 : f32
    %353 = vector.broadcast %cst_117 : f32 to vector<1x128xf32>
    %354 = arith.mulf %349, %353 : vector<1x128xf32>
    %cst_118 = arith.constant 1.250000e-01 : f32
    %355 = vector.broadcast %cst_118 : f32 to vector<1x128xf32>
    %356 = arith.mulf %352, %355 : vector<1x128xf32>
    %357 = arith.mulf %354, %354 : vector<1x128xf32>
    %358 = arith.subf %356, %357 : vector<1x128xf32>
    %cst_119 = arith.constant 0.000000e+00 : f32
    %359 = vector.broadcast %cst_119 : f32 to vector<1x128xf32>
    %360 = arith.maximumf %358, %359 : vector<1x128xf32>
    %361 = vector.broadcast %354 : vector<1x128xf32> to vector<8x128xf32>
    %362 = arith.subf %345, %361 : vector<8x128xf32>
    %cst_120 = arith.constant 9.99999974E-6 : f32
    %363 = vector.broadcast %cst_120 : f32 to vector<1x128xf32>
    %364 = arith.addf %360, %363 : vector<1x128xf32>
    %365 = math.rsqrt %364 : vector<1x128xf32>
    %366 = vector.broadcast %365 : vector<1x128xf32> to vector<8x128xf32>
    %367 = arith.mulf %362, %366 : vector<8x128xf32>
    %368 = vector.broadcast %346 : vector<1x128xf32> to vector<8x128xf32>
    %369 = arith.mulf %367, %368 : vector<8x128xf32>
    %370 = vector.broadcast %347 : vector<1x128xf32> to vector<8x128xf32>
    %371 = arith.addf %369, %370 : vector<8x128xf32>
    %372 = arith.addf %371, %41 : vector<8x128xf32>
    %373 = vector.extract_strided_slice %42 {offsets = [3, 0], sizes = [1, 128], strides = [1, 1]} : vector<8x128xf32> to vector<1x128xf32>
    %374 = vector.broadcast %373 : vector<1x128xf32> to vector<8x128xf32>
    %375 = arith.addf %372, %374 : vector<8x128xf32>
    %376 = arith.truncf %375 : vector<8x128xf32> to vector<8x128xbf16>
    %c0_121 = arith.constant 0 : index
    %c0_122 = arith.constant 0 : index
    %377 = vector.load %arg18[%c0_121, %c0_122] : memref<128x128xbf16, #tpu.memory_space<vmem>>, vector<128x128xbf16>
    %cst_123 = arith.constant dense<0.000000e+00> : vector<8x128xf32>
    %378 = tpu.matmul %376, %377, %cst_123 {dimension_numbers = #tpu.dot_dimension_numbers<[1], [0], [0], [1], [0, 0, 1, 1], [], []>} : vector<8x128xbf16>, vector<128x128xbf16>, vector<8x128xf32> -> vector<8x128xf32>
    %379 = vector.extract_strided_slice %42 {offsets = [4, 0], sizes = [1, 128], strides = [1, 1]} : vector<8x128xf32> to vector<1x128xf32>
    %380 = vector.broadcast %379 : vector<1x128xf32> to vector<8x128xf32>
    %381 = arith.addf %378, %380 : vector<8x128xf32>
    %cst_124 = arith.constant 0.000000e+00 : f32
    %382 = vector.broadcast %cst_124 : f32 to vector<8x128xf32>
    %383 = arith.maximumf %381, %382 : vector<8x128xf32>
    %384 = vector.extract_strided_slice %42 {offsets = [5, 0], sizes = [1, 128], strides = [1, 1]} : vector<8x128xf32> to vector<1x128xf32>
    %385 = vector.extract_strided_slice %42 {offsets = [6, 0], sizes = [1, 128], strides = [1, 1]} : vector<8x128xf32> to vector<1x128xf32>
    %cst_125 = arith.constant dense<0.000000e+00> : vector<128xf32>
    %386 = vector.multi_reduction <add>, %383, %cst_125 [0] : vector<8x128xf32> to vector<128xf32>
    %387 = vector.shape_cast %386 : vector<128xf32> to vector<1x128xf32>
    %388 = arith.mulf %383, %383 : vector<8x128xf32>
    %cst_126 = arith.constant dense<0.000000e+00> : vector<128xf32>
    %389 = vector.multi_reduction <add>, %388, %cst_126 [0] : vector<8x128xf32> to vector<128xf32>
    %390 = vector.shape_cast %389 : vector<128xf32> to vector<1x128xf32>
    %cst_127 = arith.constant 1.250000e-01 : f32
    %391 = vector.broadcast %cst_127 : f32 to vector<1x128xf32>
    %392 = arith.mulf %387, %391 : vector<1x128xf32>
    %cst_128 = arith.constant 1.250000e-01 : f32
    %393 = vector.broadcast %cst_128 : f32 to vector<1x128xf32>
    %394 = arith.mulf %390, %393 : vector<1x128xf32>
    %395 = arith.mulf %392, %392 : vector<1x128xf32>
    %396 = arith.subf %394, %395 : vector<1x128xf32>
    %cst_129 = arith.constant 0.000000e+00 : f32
    %397 = vector.broadcast %cst_129 : f32 to vector<1x128xf32>
    %398 = arith.maximumf %396, %397 : vector<1x128xf32>
    %399 = vector.broadcast %392 : vector<1x128xf32> to vector<8x128xf32>
    %400 = arith.subf %383, %399 : vector<8x128xf32>
    %cst_130 = arith.constant 9.99999974E-6 : f32
    %401 = vector.broadcast %cst_130 : f32 to vector<1x128xf32>
    %402 = arith.addf %398, %401 : vector<1x128xf32>
    %403 = math.rsqrt %402 : vector<1x128xf32>
    %404 = vector.broadcast %403 : vector<1x128xf32> to vector<8x128xf32>
    %405 = arith.mulf %400, %404 : vector<8x128xf32>
    %406 = vector.broadcast %384 : vector<1x128xf32> to vector<8x128xf32>
    %407 = arith.mulf %405, %406 : vector<8x128xf32>
    %408 = vector.broadcast %385 : vector<1x128xf32> to vector<8x128xf32>
    %409 = arith.addf %407, %408 : vector<8x128xf32>
    %410 = arith.truncf %409 : vector<8x128xf32> to vector<8x128xbf16>
    %411 = tpu.concatenate %194, %410 in 1 : vector<8x128xbf16>, vector<8x128xbf16> -> vector<8x256xbf16>
    %c0_131 = arith.constant 0 : index
    %c0_132 = arith.constant 0 : index
    %412 = vector.load %arg20[%c0_131, %c0_132] : memref<256x128xbf16, #tpu.memory_space<vmem>>, vector<256x128xbf16>
    %cst_133 = arith.constant dense<0.000000e+00> : vector<8x128xf32>
    %413 = tpu.matmul %411, %412, %cst_133 {dimension_numbers = #tpu.dot_dimension_numbers<[1], [0], [0], [1], [0, 0, 1, 1], [], []>} : vector<8x256xbf16>, vector<256x128xbf16>, vector<8x128xf32> -> vector<8x128xf32>
    %414 = vector.extract_strided_slice %44 {offsets = [0, 0], sizes = [1, 128], strides = [1, 1]} : vector<8x128xf32> to vector<1x128xf32>
    %415 = vector.broadcast %414 : vector<1x128xf32> to vector<8x128xf32>
    %416 = arith.addf %413, %415 : vector<8x128xf32>
    %cst_134 = arith.constant 0.000000e+00 : f32
    %417 = vector.broadcast %cst_134 : f32 to vector<8x128xf32>
    %418 = arith.maximumf %416, %417 : vector<8x128xf32>
    %419 = vector.extract_strided_slice %44 {offsets = [1, 0], sizes = [1, 128], strides = [1, 1]} : vector<8x128xf32> to vector<1x128xf32>
    %420 = vector.extract_strided_slice %44 {offsets = [2, 0], sizes = [1, 128], strides = [1, 1]} : vector<8x128xf32> to vector<1x128xf32>
    %cst_135 = arith.constant dense<0.000000e+00> : vector<128xf32>
    %421 = vector.multi_reduction <add>, %418, %cst_135 [0] : vector<8x128xf32> to vector<128xf32>
    %422 = vector.shape_cast %421 : vector<128xf32> to vector<1x128xf32>
    %423 = arith.mulf %418, %418 : vector<8x128xf32>
    %cst_136 = arith.constant dense<0.000000e+00> : vector<128xf32>
    %424 = vector.multi_reduction <add>, %423, %cst_136 [0] : vector<8x128xf32> to vector<128xf32>
    %425 = vector.shape_cast %424 : vector<128xf32> to vector<1x128xf32>
    %cst_137 = arith.constant 1.250000e-01 : f32
    %426 = vector.broadcast %cst_137 : f32 to vector<1x128xf32>
    %427 = arith.mulf %422, %426 : vector<1x128xf32>
    %cst_138 = arith.constant 1.250000e-01 : f32
    %428 = vector.broadcast %cst_138 : f32 to vector<1x128xf32>
    %429 = arith.mulf %425, %428 : vector<1x128xf32>
    %430 = arith.mulf %427, %427 : vector<1x128xf32>
    %431 = arith.subf %429, %430 : vector<1x128xf32>
    %cst_139 = arith.constant 0.000000e+00 : f32
    %432 = vector.broadcast %cst_139 : f32 to vector<1x128xf32>
    %433 = arith.maximumf %431, %432 : vector<1x128xf32>
    %434 = vector.broadcast %427 : vector<1x128xf32> to vector<8x128xf32>
    %435 = arith.subf %418, %434 : vector<8x128xf32>
    %cst_140 = arith.constant 9.99999974E-6 : f32
    %436 = vector.broadcast %cst_140 : f32 to vector<1x128xf32>
    %437 = arith.addf %433, %436 : vector<1x128xf32>
    %438 = math.rsqrt %437 : vector<1x128xf32>
    %439 = vector.broadcast %438 : vector<1x128xf32> to vector<8x128xf32>
    %440 = arith.mulf %435, %439 : vector<8x128xf32>
    %441 = vector.broadcast %419 : vector<1x128xf32> to vector<8x128xf32>
    %442 = arith.mulf %440, %441 : vector<8x128xf32>
    %443 = vector.broadcast %420 : vector<1x128xf32> to vector<8x128xf32>
    %444 = arith.addf %442, %443 : vector<8x128xf32>
    %445 = arith.addf %444, %43 : vector<8x128xf32>
    %446 = vector.extract_strided_slice %44 {offsets = [3, 0], sizes = [1, 128], strides = [1, 1]} : vector<8x128xf32> to vector<1x128xf32>
    %447 = vector.broadcast %446 : vector<1x128xf32> to vector<8x128xf32>
    %448 = arith.addf %445, %447 : vector<8x128xf32>
    %449 = arith.truncf %448 : vector<8x128xf32> to vector<8x128xbf16>
    %c0_141 = arith.constant 0 : index
    %c0_142 = arith.constant 0 : index
    %450 = vector.load %arg21[%c0_141, %c0_142] : memref<128x128xbf16, #tpu.memory_space<vmem>>, vector<128x128xbf16>
    %cst_143 = arith.constant dense<0.000000e+00> : vector<8x128xf32>
    %451 = tpu.matmul %449, %450, %cst_143 {dimension_numbers = #tpu.dot_dimension_numbers<[1], [0], [0], [1], [0, 0, 1, 1], [], []>} : vector<8x128xbf16>, vector<128x128xbf16>, vector<8x128xf32> -> vector<8x128xf32>
    %452 = vector.extract_strided_slice %44 {offsets = [4, 0], sizes = [1, 128], strides = [1, 1]} : vector<8x128xf32> to vector<1x128xf32>
    %453 = vector.broadcast %452 : vector<1x128xf32> to vector<8x128xf32>
    %454 = arith.addf %451, %453 : vector<8x128xf32>
    %cst_144 = arith.constant 0.000000e+00 : f32
    %455 = vector.broadcast %cst_144 : f32 to vector<8x128xf32>
    %456 = arith.maximumf %454, %455 : vector<8x128xf32>
    %457 = vector.extract_strided_slice %44 {offsets = [5, 0], sizes = [1, 128], strides = [1, 1]} : vector<8x128xf32> to vector<1x128xf32>
    %458 = vector.extract_strided_slice %44 {offsets = [6, 0], sizes = [1, 128], strides = [1, 1]} : vector<8x128xf32> to vector<1x128xf32>
    %cst_145 = arith.constant dense<0.000000e+00> : vector<128xf32>
    %459 = vector.multi_reduction <add>, %456, %cst_145 [0] : vector<8x128xf32> to vector<128xf32>
    %460 = vector.shape_cast %459 : vector<128xf32> to vector<1x128xf32>
    %461 = arith.mulf %456, %456 : vector<8x128xf32>
    %cst_146 = arith.constant dense<0.000000e+00> : vector<128xf32>
    %462 = vector.multi_reduction <add>, %461, %cst_146 [0] : vector<8x128xf32> to vector<128xf32>
    %463 = vector.shape_cast %462 : vector<128xf32> to vector<1x128xf32>
    %cst_147 = arith.constant 1.250000e-01 : f32
    %464 = vector.broadcast %cst_147 : f32 to vector<1x128xf32>
    %465 = arith.mulf %460, %464 : vector<1x128xf32>
    %cst_148 = arith.constant 1.250000e-01 : f32
    %466 = vector.broadcast %cst_148 : f32 to vector<1x128xf32>
    %467 = arith.mulf %463, %466 : vector<1x128xf32>
    %468 = arith.mulf %465, %465 : vector<1x128xf32>
    %469 = arith.subf %467, %468 : vector<1x128xf32>
    %cst_149 = arith.constant 0.000000e+00 : f32
    %470 = vector.broadcast %cst_149 : f32 to vector<1x128xf32>
    %471 = arith.maximumf %469, %470 : vector<1x128xf32>
    %472 = vector.broadcast %465 : vector<1x128xf32> to vector<8x128xf32>
    %473 = arith.subf %456, %472 : vector<8x128xf32>
    %cst_150 = arith.constant 9.99999974E-6 : f32
    %474 = vector.broadcast %cst_150 : f32 to vector<1x128xf32>
    %475 = arith.addf %471, %474 : vector<1x128xf32>
    %476 = math.rsqrt %475 : vector<1x128xf32>
    %477 = vector.broadcast %476 : vector<1x128xf32> to vector<8x128xf32>
    %478 = arith.mulf %473, %477 : vector<8x128xf32>
    %479 = vector.broadcast %457 : vector<1x128xf32> to vector<8x128xf32>
    %480 = arith.mulf %478, %479 : vector<8x128xf32>
    %481 = vector.broadcast %458 : vector<1x128xf32> to vector<8x128xf32>
    %482 = arith.addf %480, %481 : vector<8x128xf32>
    %483 = arith.truncf %482 : vector<8x128xf32> to vector<8x128xbf16>
    %484 = tpu.concatenate %122, %483 in 1 : vector<8x128xbf16>, vector<8x128xbf16> -> vector<8x256xbf16>
    %c0_151 = arith.constant 0 : index
    %c0_152 = arith.constant 0 : index
    %485 = vector.load %arg23[%c0_151, %c0_152] : memref<256x128xbf16, #tpu.memory_space<vmem>>, vector<256x128xbf16>
    %cst_153 = arith.constant dense<0.000000e+00> : vector<8x128xf32>
    %486 = tpu.matmul %484, %485, %cst_153 {dimension_numbers = #tpu.dot_dimension_numbers<[1], [0], [0], [1], [0, 0, 1, 1], [], []>} : vector<8x256xbf16>, vector<256x128xbf16>, vector<8x128xf32> -> vector<8x128xf32>
    %487 = vector.extract_strided_slice %46 {offsets = [0, 0], sizes = [1, 128], strides = [1, 1]} : vector<8x128xf32> to vector<1x128xf32>
    %488 = vector.broadcast %487 : vector<1x128xf32> to vector<8x128xf32>
    %489 = arith.addf %486, %488 : vector<8x128xf32>
    %cst_154 = arith.constant 0.000000e+00 : f32
    %490 = vector.broadcast %cst_154 : f32 to vector<8x128xf32>
    %491 = arith.maximumf %489, %490 : vector<8x128xf32>
    %492 = vector.extract_strided_slice %46 {offsets = [1, 0], sizes = [1, 128], strides = [1, 1]} : vector<8x128xf32> to vector<1x128xf32>
    %493 = vector.extract_strided_slice %46 {offsets = [2, 0], sizes = [1, 128], strides = [1, 1]} : vector<8x128xf32> to vector<1x128xf32>
    %cst_155 = arith.constant dense<0.000000e+00> : vector<128xf32>
    %494 = vector.multi_reduction <add>, %491, %cst_155 [0] : vector<8x128xf32> to vector<128xf32>
    %495 = vector.shape_cast %494 : vector<128xf32> to vector<1x128xf32>
    %496 = arith.mulf %491, %491 : vector<8x128xf32>
    %cst_156 = arith.constant dense<0.000000e+00> : vector<128xf32>
    %497 = vector.multi_reduction <add>, %496, %cst_156 [0] : vector<8x128xf32> to vector<128xf32>
    %498 = vector.shape_cast %497 : vector<128xf32> to vector<1x128xf32>
    %cst_157 = arith.constant 1.250000e-01 : f32
    %499 = vector.broadcast %cst_157 : f32 to vector<1x128xf32>
    %500 = arith.mulf %495, %499 : vector<1x128xf32>
    %cst_158 = arith.constant 1.250000e-01 : f32
    %501 = vector.broadcast %cst_158 : f32 to vector<1x128xf32>
    %502 = arith.mulf %498, %501 : vector<1x128xf32>
    %503 = arith.mulf %500, %500 : vector<1x128xf32>
    %504 = arith.subf %502, %503 : vector<1x128xf32>
    %cst_159 = arith.constant 0.000000e+00 : f32
    %505 = vector.broadcast %cst_159 : f32 to vector<1x128xf32>
    %506 = arith.maximumf %504, %505 : vector<1x128xf32>
    %507 = vector.broadcast %500 : vector<1x128xf32> to vector<8x128xf32>
    %508 = arith.subf %491, %507 : vector<8x128xf32>
    %cst_160 = arith.constant 9.99999974E-6 : f32
    %509 = vector.broadcast %cst_160 : f32 to vector<1x128xf32>
    %510 = arith.addf %506, %509 : vector<1x128xf32>
    %511 = math.rsqrt %510 : vector<1x128xf32>
    %512 = vector.broadcast %511 : vector<1x128xf32> to vector<8x128xf32>
    %513 = arith.mulf %508, %512 : vector<8x128xf32>
    %514 = vector.broadcast %492 : vector<1x128xf32> to vector<8x128xf32>
    %515 = arith.mulf %513, %514 : vector<8x128xf32>
    %516 = vector.broadcast %493 : vector<1x128xf32> to vector<8x128xf32>
    %517 = arith.addf %515, %516 : vector<8x128xf32>
    %518 = arith.addf %517, %45 : vector<8x128xf32>
    %519 = vector.extract_strided_slice %46 {offsets = [3, 0], sizes = [1, 128], strides = [1, 1]} : vector<8x128xf32> to vector<1x128xf32>
    %520 = vector.broadcast %519 : vector<1x128xf32> to vector<8x128xf32>
    %521 = arith.addf %518, %520 : vector<8x128xf32>
    %522 = arith.truncf %521 : vector<8x128xf32> to vector<8x128xbf16>
    %c0_161 = arith.constant 0 : index
    %c0_162 = arith.constant 0 : index
    %523 = vector.load %arg24[%c0_161, %c0_162] : memref<128x128xbf16, #tpu.memory_space<vmem>>, vector<128x128xbf16>
    %cst_163 = arith.constant dense<0.000000e+00> : vector<8x128xf32>
    %524 = tpu.matmul %522, %523, %cst_163 {dimension_numbers = #tpu.dot_dimension_numbers<[1], [0], [0], [1], [0, 0, 1, 1], [], []>} : vector<8x128xbf16>, vector<128x128xbf16>, vector<8x128xf32> -> vector<8x128xf32>
    %525 = vector.extract_strided_slice %46 {offsets = [4, 0], sizes = [1, 128], strides = [1, 1]} : vector<8x128xf32> to vector<1x128xf32>
    %526 = vector.broadcast %525 : vector<1x128xf32> to vector<8x128xf32>
    %527 = arith.addf %524, %526 : vector<8x128xf32>
    %cst_164 = arith.constant 0.000000e+00 : f32
    %528 = vector.broadcast %cst_164 : f32 to vector<8x128xf32>
    %529 = arith.maximumf %527, %528 : vector<8x128xf32>
    %530 = vector.extract_strided_slice %46 {offsets = [5, 0], sizes = [1, 128], strides = [1, 1]} : vector<8x128xf32> to vector<1x128xf32>
    %531 = vector.extract_strided_slice %46 {offsets = [6, 0], sizes = [1, 128], strides = [1, 1]} : vector<8x128xf32> to vector<1x128xf32>
    %cst_165 = arith.constant dense<0.000000e+00> : vector<128xf32>
    %532 = vector.multi_reduction <add>, %529, %cst_165 [0] : vector<8x128xf32> to vector<128xf32>
    %533 = vector.shape_cast %532 : vector<128xf32> to vector<1x128xf32>
    %534 = arith.mulf %529, %529 : vector<8x128xf32>
    %cst_166 = arith.constant dense<0.000000e+00> : vector<128xf32>
    %535 = vector.multi_reduction <add>, %534, %cst_166 [0] : vector<8x128xf32> to vector<128xf32>
    %536 = vector.shape_cast %535 : vector<128xf32> to vector<1x128xf32>
    %cst_167 = arith.constant 1.250000e-01 : f32
    %537 = vector.broadcast %cst_167 : f32 to vector<1x128xf32>
    %538 = arith.mulf %533, %537 : vector<1x128xf32>
    %cst_168 = arith.constant 1.250000e-01 : f32
    %539 = vector.broadcast %cst_168 : f32 to vector<1x128xf32>
    %540 = arith.mulf %536, %539 : vector<1x128xf32>
    %541 = arith.mulf %538, %538 : vector<1x128xf32>
    %542 = arith.subf %540, %541 : vector<1x128xf32>
    %cst_169 = arith.constant 0.000000e+00 : f32
    %543 = vector.broadcast %cst_169 : f32 to vector<1x128xf32>
    %544 = arith.maximumf %542, %543 : vector<1x128xf32>
    %545 = vector.broadcast %538 : vector<1x128xf32> to vector<8x128xf32>
    %546 = arith.subf %529, %545 : vector<8x128xf32>
    %cst_170 = arith.constant 9.99999974E-6 : f32
    %547 = vector.broadcast %cst_170 : f32 to vector<1x128xf32>
    %548 = arith.addf %544, %547 : vector<1x128xf32>
    %549 = math.rsqrt %548 : vector<1x128xf32>
    %550 = vector.broadcast %549 : vector<1x128xf32> to vector<8x128xf32>
    %551 = arith.mulf %546, %550 : vector<8x128xf32>
    %552 = vector.broadcast %530 : vector<1x128xf32> to vector<8x128xf32>
    %553 = arith.mulf %551, %552 : vector<8x128xf32>
    %554 = vector.broadcast %531 : vector<1x128xf32> to vector<8x128xf32>
    %555 = arith.addf %553, %554 : vector<8x128xf32>
    %556 = arith.truncf %555 : vector<8x128xf32> to vector<8x128xbf16>
    %557 = tpu.concatenate %50, %556 in 1 : vector<8x128xbf16>, vector<8x128xbf16> -> vector<8x256xbf16>
    %c0_171 = arith.constant 0 : index
    %c0_172 = arith.constant 0 : index
    %558 = vector.load %arg26[%c0_171, %c0_172] : memref<256x128xbf16, #tpu.memory_space<vmem>>, vector<256x128xbf16>
    %cst_173 = arith.constant dense<0.000000e+00> : vector<8x128xf32>
    %559 = tpu.matmul %557, %558, %cst_173 {dimension_numbers = #tpu.dot_dimension_numbers<[1], [0], [0], [1], [0, 0, 1, 1], [], []>} : vector<8x256xbf16>, vector<256x128xbf16>, vector<8x128xf32> -> vector<8x128xf32>
    %560 = vector.extract_strided_slice %48 {offsets = [0, 0], sizes = [1, 128], strides = [1, 1]} : vector<8x128xf32> to vector<1x128xf32>
    %561 = vector.broadcast %560 : vector<1x128xf32> to vector<8x128xf32>
    %562 = arith.addf %559, %561 : vector<8x128xf32>
    %cst_174 = arith.constant 0.000000e+00 : f32
    %563 = vector.broadcast %cst_174 : f32 to vector<8x128xf32>
    %564 = arith.maximumf %562, %563 : vector<8x128xf32>
    %565 = vector.extract_strided_slice %48 {offsets = [1, 0], sizes = [1, 128], strides = [1, 1]} : vector<8x128xf32> to vector<1x128xf32>
    %566 = vector.extract_strided_slice %48 {offsets = [2, 0], sizes = [1, 128], strides = [1, 1]} : vector<8x128xf32> to vector<1x128xf32>
    %cst_175 = arith.constant dense<0.000000e+00> : vector<128xf32>
    %567 = vector.multi_reduction <add>, %564, %cst_175 [0] : vector<8x128xf32> to vector<128xf32>
    %568 = vector.shape_cast %567 : vector<128xf32> to vector<1x128xf32>
    %569 = arith.mulf %564, %564 : vector<8x128xf32>
    %cst_176 = arith.constant dense<0.000000e+00> : vector<128xf32>
    %570 = vector.multi_reduction <add>, %569, %cst_176 [0] : vector<8x128xf32> to vector<128xf32>
    %571 = vector.shape_cast %570 : vector<128xf32> to vector<1x128xf32>
    %cst_177 = arith.constant 1.250000e-01 : f32
    %572 = vector.broadcast %cst_177 : f32 to vector<1x128xf32>
    %573 = arith.mulf %568, %572 : vector<1x128xf32>
    %cst_178 = arith.constant 1.250000e-01 : f32
    %574 = vector.broadcast %cst_178 : f32 to vector<1x128xf32>
    %575 = arith.mulf %571, %574 : vector<1x128xf32>
    %576 = arith.mulf %573, %573 : vector<1x128xf32>
    %577 = arith.subf %575, %576 : vector<1x128xf32>
    %cst_179 = arith.constant 0.000000e+00 : f32
    %578 = vector.broadcast %cst_179 : f32 to vector<1x128xf32>
    %579 = arith.maximumf %577, %578 : vector<1x128xf32>
    %580 = vector.broadcast %573 : vector<1x128xf32> to vector<8x128xf32>
    %581 = arith.subf %564, %580 : vector<8x128xf32>
    %cst_180 = arith.constant 9.99999974E-6 : f32
    %582 = vector.broadcast %cst_180 : f32 to vector<1x128xf32>
    %583 = arith.addf %579, %582 : vector<1x128xf32>
    %584 = math.rsqrt %583 : vector<1x128xf32>
    %585 = vector.broadcast %584 : vector<1x128xf32> to vector<8x128xf32>
    %586 = arith.mulf %581, %585 : vector<8x128xf32>
    %587 = vector.broadcast %565 : vector<1x128xf32> to vector<8x128xf32>
    %588 = arith.mulf %586, %587 : vector<8x128xf32>
    %589 = vector.broadcast %566 : vector<1x128xf32> to vector<8x128xf32>
    %590 = arith.addf %588, %589 : vector<8x128xf32>
    %591 = arith.addf %590, %47 : vector<8x128xf32>
    %592 = vector.extract_strided_slice %48 {offsets = [3, 0], sizes = [1, 128], strides = [1, 1]} : vector<8x128xf32> to vector<1x128xf32>
    %593 = vector.broadcast %592 : vector<1x128xf32> to vector<8x128xf32>
    %594 = arith.addf %591, %593 : vector<8x128xf32>
    %595 = arith.truncf %594 : vector<8x128xf32> to vector<8x128xbf16>
    %c0_181 = arith.constant 0 : index
    %c0_182 = arith.constant 0 : index
    %596 = vector.load %arg27[%c0_181, %c0_182] : memref<128x128xbf16, #tpu.memory_space<vmem>>, vector<128x128xbf16>
    %cst_183 = arith.constant dense<0.000000e+00> : vector<8x128xf32>
    %597 = tpu.matmul %595, %596, %cst_183 {dimension_numbers = #tpu.dot_dimension_numbers<[1], [0], [0], [1], [0, 0, 1, 1], [], []>} : vector<8x128xbf16>, vector<128x128xbf16>, vector<8x128xf32> -> vector<8x128xf32>
    %598 = vector.extract_strided_slice %48 {offsets = [4, 0], sizes = [1, 128], strides = [1, 1]} : vector<8x128xf32> to vector<1x128xf32>
    %599 = vector.broadcast %598 : vector<1x128xf32> to vector<8x128xf32>
    %600 = arith.addf %597, %599 : vector<8x128xf32>
    %cst_184 = arith.constant 0.000000e+00 : f32
    %601 = vector.broadcast %cst_184 : f32 to vector<8x128xf32>
    %602 = arith.maximumf %600, %601 : vector<8x128xf32>
    %603 = vector.extract_strided_slice %48 {offsets = [5, 0], sizes = [1, 128], strides = [1, 1]} : vector<8x128xf32> to vector<1x128xf32>
    %604 = vector.extract_strided_slice %48 {offsets = [6, 0], sizes = [1, 128], strides = [1, 1]} : vector<8x128xf32> to vector<1x128xf32>
    %cst_185 = arith.constant dense<0.000000e+00> : vector<128xf32>
    %605 = vector.multi_reduction <add>, %602, %cst_185 [0] : vector<8x128xf32> to vector<128xf32>
    %606 = vector.shape_cast %605 : vector<128xf32> to vector<1x128xf32>
    %607 = arith.mulf %602, %602 : vector<8x128xf32>
    %cst_186 = arith.constant dense<0.000000e+00> : vector<128xf32>
    %608 = vector.multi_reduction <add>, %607, %cst_186 [0] : vector<8x128xf32> to vector<128xf32>
    %609 = vector.shape_cast %608 : vector<128xf32> to vector<1x128xf32>
    %cst_187 = arith.constant 1.250000e-01 : f32
    %610 = vector.broadcast %cst_187 : f32 to vector<1x128xf32>
    %611 = arith.mulf %606, %610 : vector<1x128xf32>
    %cst_188 = arith.constant 1.250000e-01 : f32
    %612 = vector.broadcast %cst_188 : f32 to vector<1x128xf32>
    %613 = arith.mulf %609, %612 : vector<1x128xf32>
    %614 = arith.mulf %611, %611 : vector<1x128xf32>
    %615 = arith.subf %613, %614 : vector<1x128xf32>
    %cst_189 = arith.constant 0.000000e+00 : f32
    %616 = vector.broadcast %cst_189 : f32 to vector<1x128xf32>
    %617 = arith.maximumf %615, %616 : vector<1x128xf32>
    %618 = vector.broadcast %611 : vector<1x128xf32> to vector<8x128xf32>
    %619 = arith.subf %602, %618 : vector<8x128xf32>
    %cst_190 = arith.constant 9.99999974E-6 : f32
    %620 = vector.broadcast %cst_190 : f32 to vector<1x128xf32>
    %621 = arith.addf %617, %620 : vector<1x128xf32>
    %622 = math.rsqrt %621 : vector<1x128xf32>
    %623 = vector.broadcast %622 : vector<1x128xf32> to vector<8x128xf32>
    %624 = arith.mulf %619, %623 : vector<8x128xf32>
    %625 = vector.broadcast %603 : vector<1x128xf32> to vector<8x128xf32>
    %626 = arith.mulf %624, %625 : vector<8x128xf32>
    %627 = vector.broadcast %604 : vector<1x128xf32> to vector<8x128xf32>
    %628 = arith.addf %626, %627 : vector<8x128xf32>
    %c0_191 = arith.constant 0 : index
    %c0_192 = arith.constant 0 : index
    %629 = vector.load %arg29[%c0_191, %c0_192] : memref<8x128xf32, #tpu.memory_space<vmem>>, vector<8x128xf32>
    tpu.vector_store %arg29[%c0_191, %c0_192], %628 {strides = array<i32>} : memref<8x128xf32, #tpu.memory_space<vmem>>, vector<8x128xf32>,
    return
  }
}

</mosaic_0001>

<bundles_post_ra>
// kernel: _lambda_.1
= control target key start
LH: loop header
LB: loop body
LE: loop exit
PB: predicated region body
PF: predicated region fallthrough
CT: control target
= control target key end

     0   :  { %s5408_s6 = smov 1   ;;  %s5409_s10 = smov 2   ;;  %s6097_s0 = inlined_call_operand.smem [shape: u32[30], index: -1, kind: input, shape index: {}] }
   0x1   :  { %s5483_s5 = sld [smem:[%s6097_s0]]   ;;  %s5410_s14 = smov 3  }
   0x2   :  { %s5488_s9 = sld [smem:[%s6097_s0 + %s5408_s6]]   ;;  %s5411_s18 = smov 4  }
   0x3   :  { %s5493_s13 = sld [smem:[%s6097_s0 + %s5409_s10]]   ;;  %s5412_s22 = smov 5  }
   0x4   :  { %s5498_s17 = sld [smem:[%s6097_s0 + %s5410_s14]]   ;;  %s5413_s26 = smov 6  }
   0x5   :  { %s5503_s21 = sld [smem:[%s6097_s0 + %s5411_s18]]   ;;  %s5414_s30 = smov 7  }
   0x6   :  { %s5508_s25 = sld [smem:[%s6097_s0 + %s5412_s22]]   ;;  %s5415_s4 = smov 8  }
   0x7   :  { %6099 = sst [smem:[#allocation55_spill]] %s5483_s5  ;;  %s5416_s10 = smov 9  }
   0x8   :  { %6100 = sst [smem:[#allocation56_spill]] %s5488_s9  ;;  %s5417_s15 = smov 10  }
   0x9   :  { %s5513_s29 = sld [smem:[%s6097_s0 + %s5413_s26]]   ;;  %s5418_s20 = smov 11  }
   0xa   :  { %s5518_s3 = sld [smem:[%s6097_s0 + %s5414_s30]]   ;;  %s5419_s26 = smov 12  }
   0xb   :  { %s5523_s8 = sld [smem:[%s6097_s0 + %s5415_s4]]   ;;  %s5420_s1 = smov 13  }
   0xc   :  { %s5528_s14 = sld [smem:[%s6097_s0 + %s5416_s10]]   ;;  %s5421_s7 = smov 14  }
   0xd   :  { %s5533_s19 = sld [smem:[%s6097_s0 + %s5417_s15]]   ;;  %s5422_s15 = smov 15  }
   0xe   :  { %s5538_s24 = sld [smem:[%s6097_s0 + %s5418_s20]]   ;;  %s5423_s22 = smov 16  }
   0xf   :  { %s5543_s30 = sld [smem:[%s6097_s0 + %s5419_s26]]   ;;  %s5424_s28 = smov 17  }
  0x10   :  { %s5548_s6 = sld [smem:[%s6097_s0 + %s5420_s1]]  }
  0x11   :  { %6101 = sst [smem:[#allocation57_spill]] %s5523_s8 }
  0x12   :  { %s5553_s12 = sld [smem:[%s6097_s0 + %s5421_s7]]   ;;  %s5425_s7 = smov 18  }
  0x13   :  { %6102 = sst [smem:[#allocation58_spill]] %s5533_s19 }
  0x14   :  { %s5558_s20 = sld [smem:[%s6097_s0 + %s5422_s15]]   ;;  %s5426_s15 = smov 19  }
  0x15   :  { %6103 = sst [smem:[#allocation59_spill]] %s5543_s30 }
  0x16   :  { %s5563_s27 = sld [smem:[%s6097_s0 + %s5423_s22]]   ;;  %s5427_s22 = smov 20  }
  0x17   :  { %s5568_s4 = sld [smem:[%s6097_s0 + %s5424_s28]]   ;;  %s5428_s28 = smov 21  }
  0x18   :  { %6104 = sst [smem:[#allocation60_spill]] %s5553_s12 }
  0x19   :  { %s5573_s12 = sld [smem:[%s6097_s0 + %s5425_s7]]   ;;  %s5429_s7 = smov 22  }
  0x1a   :  { %6105 = sst [smem:[#allocation61_spill]] %s5558_s20 }
  0x1b   :  { %s5578_s9 = sld [smem:[%s6097_s0 + %s5426_s15]]   ;;  %s5430_s15 = smov 23  }
  0x1c   :  { %s5583_s5 = sld [smem:[%s6097_s0 + %s5427_s22]]   ;;  %s5431_s22 = smov 24  }
  0x1d   :  { %6106 = sst [smem:[#allocation62_spill]] %s5568_s4 }
  0x1e   :  { %s5588_s4 = sld [smem:[%s6097_s0 + %s5428_s28]]   ;;  %s5432_s28 = smov 25  }
  0x1f   :  { %s5593_s20 = sld [smem:[%s6097_s0 + %s5429_s7]]   ;;  %s5433_s7 = smov 26  }
  0x20   :  { %s5603_s30 = sld [smem:[%s6097_s0 + %s5431_s22]]   ;;  %s5435_s22 = smov 28  }
  0x21   :  { %6107 = sst [smem:[#allocation63_spill]] %s5578_s9 }
  0x22   :  { %s5598_s9 = sld [smem:[%s6097_s0 + %s5430_s15]]   ;;  %s5434_s15 = smov 27  }
  0x23   :  { %s5618_s19 = sld [smem:[%s6097_s0 + %s5434_s15]]  }
  0x24   :  { %6108 = sst [smem:[#allocation64_spill]] %s5588_s4 }
  0x25   :  { %6109 = sst [smem:[#allocation65_spill]] %s5593_s20 }
  0x26   :  { %6110 = sst [smem:[#allocation66_spill]] %s5603_s30 }
  0x27   :  { %s5608_s4 = sld [smem:[%s6097_s0 + %s5432_s28]]   ;;  %s5436_s28 = smov 29  }
  0x28   :  { %s5613_s20 = sld [smem:[%s6097_s0 + %s5433_s7]]  }
  0x29   :  { %s5623_s30 = sld [smem:[%s6097_s0 + %s5435_s22]]  }
  0x2a   :  { %s5628_s8 = sld [smem:[%s6097_s0 + %s5436_s28]]  }
  0x2b   :  { %64 = vsyncpa [#allocation3], 0 }
  0x2c   :  { %65 = vsyncpa [#allocation6], 0 }
  0x2d   :  { %66 = vsyncpa [#allocation9], 0 }
  0x2e   :  { %67 = vsyncpa [#allocation12], 0 }
  0x2f   :  { %68 = vsyncpa [#allocation15], 0 }
  0x30   :  { %69 = vsyncpa [#allocation18], 0 }
  0x31   :  { %70 = vsyncpa [#allocation21], 0 }
  0x32   :  { %71 = vsyncpa [#allocation24], 0 }
  0x33   :  { %72 = vsyncpa [#allocation27], 0 }
  0x34   :  { %73 = vsyncpa [#allocation30], 0 }
  0x35   :  { %74 = vsyncpa [#allocation33], 0 }
  0x36   :  { %75 = vsyncpa [#allocation36], 0 }
  0x37   :  { %76 = vsyncpa [#allocation39], 0 }
  0x38   :  { %77 = vsyncpa [#allocation4], 0  ;;  %s5437_s7 = smov [#allocation5]  }
  0x39   :  { %s100_s10 = sshll.u32 %s5437_s7, 4  ;;  %s101_s10 = int_to_ptr.vmem [resolvable:$true] %s100_s10 }
  0x3a   :  { %s4888_s11 = scalar_lea.vmem %s101_s10, 16  ;;  %s4892_s0 = scalar_lea.vmem %s101_s10, 32 }
  0x3b   :  { %p4889_p0 = scmp.ne.s32.totalorder %s101_s10, %s4888_s11  ;;  %p4893_p1 = scmp.lt.s32.totalorder %s101_s10, %s101_s10 }
  0x3c   :  { %p4894_p2 = scmp.lt.s32.totalorder %s4892_s0, %s4888_s11 }
  0x3e   :  { %p4895_p3 = por %p4894_p2, %p4893_p1 }
  0x40   :  { %p4896_p4 = pnand %p4895_p3, %p4889_p0 }
  0x42   :  { %4899 = shalt.err (!%p4896_p4)
}
  0x43   :  { %103 = dma.hbm_to_vmem [thread:$0]  %s5498_s17, 16, %s101_s10, [#allocation6]  }
  0x44   :  { %s5438_s15 = smov [#allocation8]   ;;  %s5439_s18 = smov [#allocation11]  }
  0x45   :  { %s121_s16 = sshll.u32 %s5438_s15, 4  ;;  %s146_s22 = sshll.u32 %s5439_s18, 4  ;;  %s122_s16 = int_to_ptr.vmem [resolvable:$true] %s121_s16  ;;  %s147_s22 = int_to_ptr.vmem [resolvable:$true] %s146_s22 }
  0x46   :  { %s4908_s23 = scalar_lea.vmem %s122_s16, 1024  ;;  %p4913_p6 = scmp.lt.s32.totalorder %s122_s16, %s122_s16 }
  0x47   :  { %p4909_p5 = scmp.ne.s32.totalorder %s122_s16, %s4908_s23  ;;  %p4914_p7 = scmp.lt.s32.totalorder %s4908_s23, %s4908_s23 }
  0x49   :  { %p4915_p8 = por %p4914_p7, %p4913_p6 }
  0x4b   :  { %p4916_p9 = pnand %p4915_p8, %p4909_p5 }
  0x4d   :  { %4919 = shalt.err (!%p4916_p9)
}
  0x4e   :  { %s5440_s26 = smov 64   ;;  %s5441_s28 = smov 4  }
  0x4f   :  { %127 = dma.hbm_to_vmem [thread:$0]  %s5508_s25, 1024, %s122_s16, [#allocation9], %s5440_s26, %s5440_s26, %s5441_s28  }
  0x50   :  { %s4928_s17 = scalar_lea.vmem %s147_s22, 128  ;;  %p4933_p11 = scmp.lt.s32.totalorder %s147_s22, %s147_s22 }
  0x51   :  { %p4929_p10 = scmp.ne.s32.totalorder %s147_s22, %s4928_s17  ;;  %p4934_p12 = scmp.lt.s32.totalorder %s4928_s17, %s4928_s17 }
  0x53   :  { %p4935_p13 = por %p4934_p12, %p4933_p11 }
  0x55   :  { %p4936_p0 = pnand %p4935_p13, %p4929_p10 }
  0x57   :  { %4939 = shalt.err (!%p4936_p0)
}
  0x58   :  { %149 = dma.hbm_to_vmem [thread:$0]  %s5518_s3, 128, %s147_s22, [#allocation12]  }
  0x59   :  { %s5442_s1 = smov [#allocation14]   ;;  %s5443_s7 = smov [#allocation17]  }
  0x5a   :  { %s167_s2 = sshll.u32 %s5442_s1, 4  ;;  %s189_s10 = sshll.u32 %s5443_s7, 4  ;;  %s168_s2 = int_to_ptr.vmem [resolvable:$true] %s167_s2  ;;  %s190_s10 = int_to_ptr.vmem [resolvable:$true] %s189_s10 }
  0x5b   :  { %s4948_s11 = scalar_lea.vmem %s168_s2, 1024  ;;  %p4953_p2 = scmp.lt.s32.totalorder %s168_s2, %s168_s2 }
  0x5c   :  { %p4949_p1 = scmp.ne.s32.totalorder %s168_s2, %s4948_s11  ;;  %p4954_p3 = scmp.lt.s32.totalorder %s4948_s11, %s4948_s11 }
  0x5e   :  { %p4955_p4 = por %p4954_p3, %p4953_p2 }
  0x60   :  { %p4956_p5 = pnand %p4955_p4, %p4949_p1 }
  0x62   :  { %4959 = shalt.err (!%p4956_p5)
}
  0x63   :  { %173 = dma.hbm_to_vmem [thread:$0]  %s5528_s14, 1024, %s168_s2, [#allocation15], %s5440_s26, %s5440_s26, %s5441_s28  }
  0x64   :  { %s4968_s25 = scalar_lea.vmem %s190_s10, 1024  ;;  %p4973_p7 = scmp.lt.s32.totalorder %s190_s10, %s190_s10 }
  0x65   :  { %p4969_p6 = scmp.ne.s32.totalorder %s190_s10, %s4968_s25  ;;  %p4974_p8 = scmp.lt.s32.totalorder %s4968_s25, %s4968_s25 }
  0x67   :  { %p4975_p9 = por %p4974_p8, %p4973_p7 }
  0x69   :  { %p4976_p10 = pnand %p4975_p9, %p4969_p6 }
  0x6b   :  { %4979 = shalt.err (!%p4976_p10)
}
  0x6c   :  { %195 = dma.hbm_to_vmem [thread:$0]  %s5538_s24, 1024, %s190_s10, [#allocation18], %s5440_s26, %s5440_s26, %s5441_s28  }
  0x6d   :  { %s5444_s3 = smov [#allocation20]   ;;  %s5445_s15 = smov [#allocation23]  }
  0x6e   :  { %s214_s0 = sshll.u32 %s5444_s3, 4  ;;  %s238_s16 = sshll.u32 %s5445_s15, 4  ;;  %s215_s0 = int_to_ptr.vmem [resolvable:$true] %s214_s0  ;;  %s239_s16 = int_to_ptr.vmem [resolvable:$true] %s238_s16 }
  0x6f   :  { %s4988_s18 = scalar_lea.vmem %s215_s0, 128  ;;  %p4993_p12 = scmp.lt.s32.totalorder %s215_s0, %s215_s0 }
  0x70   :  { %p4989_p11 = scmp.ne.s32.totalorder %s215_s0, %s4988_s18  ;;  %p4994_p13 = scmp.lt.s32.totalorder %s4988_s18, %s4988_s18 }
  0x72   :  { %p4995_p0 = por %p4994_p13, %p4993_p12 }
  0x74   :  { %p4996_p1 = pnand %p4995_p0, %p4989_p11 }
  0x76   :  { %4999 = shalt.err (!%p4996_p1)
}
  0x77   :  { %217 = dma.hbm_to_vmem [thread:$0]  %s5548_s6, 128, %s215_s0, [#allocation21]  }
  0x78   :  { %s5008_s14 = scalar_lea.vmem %s239_s16, 128  ;;  %p5013_p3 = scmp.lt.s32.totalorder %s239_s16, %s239_s16 }
  0x79   :  { %p5009_p2 = scmp.ne.s32.totalorder %s239_s16, %s5008_s14  ;;  %p5014_p4 = scmp.lt.s32.totalorder %s5008_s14, %s5008_s14 }
  0x7b   :  { %p5015_p5 = por %p5014_p4, %p5013_p3 }
  0x7d   :  { %p5016_p6 = pnand %p5015_p5, %p5009_p2 }
  0x7f   :  { %5019 = shalt.err (!%p5016_p6)
}
  0x80   :  { %241 = dma.hbm_to_vmem [thread:$0]  %s5563_s27, 128, %s239_s16, [#allocation24]  }
  0x81   :  { %s5446_s24 = smov [#allocation26]   ;;  %s5447_s23 = smov [#allocation29]  }
  0x82   :  { %s259_s22 = sshll.u32 %s5446_s24, 4  ;;  %s281_s17 = sshll.u32 %s5447_s23, 4  ;;  %s260_s22 = int_to_ptr.vmem [resolvable:$true] %s259_s22  ;;  %s282_s17 = int_to_ptr.vmem [resolvable:$true] %s281_s17 }
  0x83   :  { %s5028_s1 = scalar_lea.vmem %s260_s22, 1024  ;;  %p5033_p8 = scmp.lt.s32.totalorder %s260_s22, %s260_s22 }
  0x84   :  { %p5029_p7 = scmp.ne.s32.totalorder %s260_s22, %s5028_s1  ;;  %p5034_p9 = scmp.lt.s32.totalorder %s5028_s1, %s5028_s1 }
  0x86   :  { %p5035_p10 = por %p5034_p9, %p5033_p8 }
  0x88   :  { %p5036_p11 = pnand %p5035_p10, %p5029_p7 }
  0x8a   :  { %5039 = shalt.err (!%p5036_p11)
}
  0x8b   :  { %265 = dma.hbm_to_vmem [thread:$0]  %s5573_s12, 1024, %s260_s22, [#allocation27], %s5440_s26, %s5440_s26, %s5441_s28  }
  0x8c   :  { %s5048_s6 = scalar_lea.vmem %s282_s17, 2048  ;;  %p5053_p13 = scmp.lt.s32.totalorder %s282_s17, %s282_s17 }
  0x8d   :  { %p5049_p12 = scmp.ne.s32.totalorder %s282_s17, %s5048_s6  ;;  %p5054_p0 = scmp.lt.s32.totalorder %s5048_s6, %s5048_s6 }
  0x8f   :  { %p5055_p1 = por %p5054_p0, %p5053_p13 }
  0x91   :  { %p5056_p2 = pnand %p5055_p1, %p5049_p12 }
  0x93   :  { %5059 = shalt.err (!%p5056_p2)
}
  0x94   :  { %287 = dma.hbm_to_vmem [thread:$0]  %s5583_s5, 2048, %s282_s17, [#allocation30], %s5440_s26, %s5440_s26, %s5441_s28  }
  0x95   :  { %s5448_s27 = smov [#allocation32]   ;;  %s5449_s7 = smov [#allocation35]  }
  0x96   :  { %s307_s2 = sshll.u32 %s5448_s27, 4  ;;  %s332_s10 = sshll.u32 %s5449_s7, 4  ;;  %s308_s2 = int_to_ptr.vmem [resolvable:$true] %s307_s2  ;;  %s333_s10 = int_to_ptr.vmem [resolvable:$true] %s332_s10 }
  0x97   :  { %s5068_s11 = scalar_lea.vmem %s308_s2, 2048  ;;  %p5073_p4 = scmp.lt.s32.totalorder %s308_s2, %s308_s2 }
  0x98   :  { %p5069_p3 = scmp.ne.s32.totalorder %s308_s2, %s5068_s11  ;;  %p5074_p5 = scmp.lt.s32.totalorder %s5068_s11, %s5068_s11 }
  0x9a   :  { %p5075_p6 = por %p5074_p5, %p5073_p4 }
  0x9c   :  { %p5076_p7 = pnand %p5075_p6, %p5069_p3 }
  0x9e   :  { %5079 = shalt.err (!%p5076_p7)
}
  0x9f   :  { %313 = dma.hbm_to_vmem [thread:$0]  %s5598_s9, 2048, %s308_s2, [#allocation33], %s5440_s26, %s5440_s26, %s5441_s28  }
  0xa0   :  { %s5088_s12 = scalar_lea.vmem %s333_s10, 128  ;;  %p5093_p9 = scmp.lt.s32.totalorder %s333_s10, %s333_s10 }
  0xa1   :  { %p5089_p8 = scmp.ne.s32.totalorder %s333_s10, %s5088_s12  ;;  %p5094_p10 = scmp.lt.s32.totalorder %s5088_s12, %s5088_s12 }
  0xa3   :  { %p5095_p11 = por %p5094_p10, %p5093_p9 }
  0xa5   :  { %p5096_p12 = pnand %p5095_p11, %p5089_p8 }
  0xa7   :  { %5099 = shalt.err (!%p5096_p12)
}
  0xa8   :  { %335 = dma.hbm_to_vmem [thread:$0]  %s5608_s4, 128, %s333_s10, [#allocation36]  }
  0xa9   :  { %s5450_s5 = smov [#allocation2]   ;;  %s5451_s3 = smov [#allocation7]  }
  0xaa   :  { %s87_s25 = sshll.u32 %s5450_s5, 4  ;;  %s109_s0 = sshll.u32 %s5451_s3, 4  ;;  %s88_s25 = int_to_ptr.vmem [resolvable:$true] %s87_s25  ;;  %s110_s0 = int_to_ptr.vmem [resolvable:$true] %s109_s0 }
  0xab   :  { %s5108_s15 = scalar_lea.vmem %s88_s25, 1024  ;;  %p5113_p0 = scmp.lt.s32.totalorder %s88_s25, %s88_s25 }
  0xac   :  { %p5109_p13 = scmp.ne.s32.totalorder %s88_s25, %s5108_s15  ;;  %p5114_p1 = scmp.lt.s32.totalorder %s5108_s15, %s5108_s15 }
  0xae   :  { %p5115_p2 = por %p5114_p1, %p5113_p0 }
  0xb0   :  { %p5116_p3 = pnand %p5115_p2, %p5109_p13 }
  0xb2   :  { %5119 = shalt.err (!%p5116_p3)
}
  0xb3   :  { %93 = dma.hbm_to_vmem [thread:$0]  %s5493_s13, 1024, %s88_s25, [#allocation3], %s5440_s26, %s5440_s26, %s5441_s28  }
  0xb4   :  { %s5128_s9 = scalar_lea.vmem %s110_s0, 8192  ;;  %p5133_p5 = scmp.lt.s32.totalorder %s110_s0, %s110_s0 }
  0xb5   :  { %p5129_p4 = scmp.ne.s32.totalorder %s110_s0, %s5128_s9  ;;  %p5134_p6 = scmp.lt.s32.totalorder %s5128_s9, %s5128_s9 }
  0xb7   :  { %p5135_p7 = por %p5134_p6, %p5133_p5 }
  0xb9   :  { %p5136_p8 = pnand %p5135_p7, %p5129_p4 }
  0xbb   :  { %5139 = shalt.err (!%p5136_p8)
}
  0xbc   :  { %s5452_s4 = smov 512   ;;  %s5453_s16 = smov 32  }
  0xbd   :  { %115 = dma.hbm_to_vmem [thread:$0]  %s5503_s21, 8192, %s110_s0, [#allocation6], %s5452_s4, %s5452_s4, %s5453_s16  }
  0xbe   :  { %s5454_s18 = smov [#allocation10]   ;;  %s5455_s24 = smov [#allocation13]  }
  0xbf   :  { %s133_s14 = sshll.u32 %s5454_s18, 4  ;;  %s155_s22 = sshll.u32 %s5455_s24, 4  ;;  %s134_s14 = int_to_ptr.vmem [resolvable:$true] %s133_s14  ;;  %s156_s22 = int_to_ptr.vmem [resolvable:$true] %s155_s22 }
  0xc0   :  { %s5148_s23 = scalar_lea.vmem %s134_s14, 1024  ;;  %p5153_p10 = scmp.lt.s32.totalorder %s134_s14, %s134_s14 }
  0xc1   :  { %p5149_p9 = scmp.ne.s32.totalorder %s134_s14, %s5148_s23  ;;  %p5154_p11 = scmp.lt.s32.totalorder %s5148_s23, %s5148_s23 }
  0xc3   :  { %p5155_p12 = por %p5154_p11, %p5153_p10 }
  0xc5   :  { %p5156_p13 = pnand %p5155_p12, %p5149_p9 }
  0xc7   :  { %5159 = shalt.err (!%p5156_p13)
}
  0xc8   :  { %139 = dma.hbm_to_vmem [thread:$0]  %s5513_s29, 1024, %s134_s14, [#allocation9], %s5440_s26, %s5440_s26, %s5441_s28  }
  0xc9   :  { %s5168_s13 = scalar_lea.vmem %s156_s22, 1024  ;;  %p5173_p1 = scmp.lt.s32.totalorder %s156_s22, %s156_s22 }
  0xca   :  { %p5169_p0 = scmp.ne.s32.totalorder %s156_s22, %s5168_s13  ;;  %p5174_p2 = scmp.lt.s32.totalorder %s5168_s13, %s5168_s13 }
  0xcc   :  { %p5175_p3 = por %p5174_p2, %p5173_p1 }
  0xce   :  { %p5176_p4 = pnand %p5175_p3, %p5169_p0 }
  0xd0   :  { %5179 = shalt.err (!%p5176_p4)
}
  0xd1   :  { %s6111_s21 = sld [smem:[#allocation57_spill]]  ;;  %s5456_s17 = smov [#allocation16]  }
  0xd2   :  { %s180_s1 = sshll.u32 %s5456_s17, 4  ;;  %s5457_s6 = smov [#allocation19]   ;;  %s181_s1 = int_to_ptr.vmem [resolvable:$true] %s180_s1 }
  0xd3   :  { %s201_s27 = sshll.u32 %s5457_s6, 4  ;;  %s5188_s2 = scalar_lea.vmem %s181_s1, 128  ;;  %s202_s27 = int_to_ptr.vmem [resolvable:$true] %s201_s27 }
  0xd4   :  { %p5189_p5 = scmp.ne.s32.totalorder %s181_s1, %s5188_s2  ;;  %p5193_p6 = scmp.lt.s32.totalorder %s181_s1, %s181_s1 }
  0xd5   :  { %p5194_p7 = scmp.lt.s32.totalorder %s5188_s2, %s5188_s2 }
  0xd7   :  { %161 = dma.hbm_to_vmem [thread:$0]  %s6111_s21, 1024, %s156_s22, [#allocation12], %s5440_s26, %s5440_s26, %s5441_s28  }
  0xd8   :  { %p5195_p8 = por %p5194_p7, %p5193_p6 }
  0xda   :  { %p5196_p9 = pnand %p5195_p8, %p5189_p5 }
  0xdc   :  { %5199 = shalt.err (!%p5196_p9)
}
  0xdd   :  { %s6112_s29 = sld [smem:[#allocation58_spill]]  ;;  %s5208_s7 = scalar_lea.vmem %s202_s27, 1024 }
  0xde   :  { %p5209_p10 = scmp.ne.s32.totalorder %s202_s27, %s5208_s7  ;;  %p5213_p11 = scmp.lt.s32.totalorder %s202_s27, %s202_s27 }
  0xdf   :  { %p5214_p12 = scmp.lt.s32.totalorder %s5208_s7, %s5208_s7 }
  0xe1   :  { %p5215_p13 = por %p5214_p12, %p5213_p11 }
  0xe3   :  { %183 = dma.hbm_to_vmem [thread:$0]  %s6112_s29, 128, %s181_s1, [#allocation15]  }
  0xe4   :  { %p5216_p0 = pnand %p5215_p13, %p5209_p10 }
  0xe6   :  { %5219 = shalt.err (!%p5216_p0)
}
  0xe7   :  { %s6113_s10 = sld [smem:[#allocation59_spill]]  ;;  %s5458_s11 = smov [#allocation22]  }
  0xe8   :  { %s225_s12 = sshll.u32 %s5458_s11, 4  ;;  %s5459_s5 = smov [#allocation25]   ;;  %s226_s12 = int_to_ptr.vmem [resolvable:$true] %s225_s12 }
  0xe9   :  { %s247_s25 = sshll.u32 %s5459_s5, 4  ;;  %s5228_s3 = scalar_lea.vmem %s226_s12, 1024  ;;  %s248_s25 = int_to_ptr.vmem [resolvable:$true] %s247_s25 }
  0xea   :  { %p5229_p1 = scmp.ne.s32.totalorder %s226_s12, %s5228_s3  ;;  %p5233_p2 = scmp.lt.s32.totalorder %s226_s12, %s226_s12 }
  0xeb   :  { %p5234_p3 = scmp.lt.s32.totalorder %s5228_s3, %s5228_s3 }
  0xed   :  { %207 = dma.hbm_to_vmem [thread:$0]  %s6113_s10, 1024, %s202_s27, [#allocation18], %s5440_s26, %s5440_s26, %s5441_s28  }
  0xee   :  { %p5235_p4 = por %p5234_p3, %p5233_p2 }
  0xf0   :  { %p5236_p5 = pnand %p5235_p4, %p5229_p1 }
  0xf2   :  { %5239 = shalt.err (!%p5236_p5)
}
  0xf3   :  { %s6114_s0 = sld [smem:[#allocation61_spill]]  ;;  %s5248_s15 = scalar_lea.vmem %s248_s25, 1024 }
  0xf4   :  { %p5249_p6 = scmp.ne.s32.totalorder %s248_s25, %s5248_s15  ;;  %p5253_p7 = scmp.lt.s32.totalorder %s248_s25, %s248_s25 }
  0xf5   :  { %p5254_p8 = scmp.lt.s32.totalorder %s5248_s15, %s5248_s15 }
  0xf7   :  { %p5255_p9 = por %p5254_p8, %p5253_p7 }
  0xf9   :  { %231 = dma.hbm_to_vmem [thread:$0]  %s6114_s0, 1024, %s226_s12, [#allocation21], %s5440_s26, %s5440_s26, %s5441_s28  }
  0xfa   :  { %p5256_p10 = pnand %p5255_p9, %p5249_p6 }
  0xfc   :  { %5259 = shalt.err (!%p5256_p10)
}
  0xfd   :  { %s6115_s9 = sld [smem:[#allocation62_spill]]  ;;  %s5460_s4 = smov [#allocation28]  }
  0xfe   :  { %s272_s16 = sshll.u32 %s5460_s4, 4  ;;  %s5461_s18 = smov [#allocation31]   ;;  %s273_s16 = int_to_ptr.vmem [resolvable:$true] %s272_s16 }
  0xff   :  { %s293_s14 = sshll.u32 %s5461_s18, 4  ;;  %s5268_s24 = scalar_lea.vmem %s273_s16, 128  ;;  %s294_s14 = int_to_ptr.vmem [resolvable:$true] %s293_s14 }
 0x100   :  { %p5269_p11 = scmp.ne.s32.totalorder %s273_s16, %s5268_s24  ;;  %p5273_p12 = scmp.lt.s32.totalorder %s273_s16, %s273_s16 }
 0x101   :  { %p5274_p13 = scmp.lt.s32.totalorder %s5268_s24, %s5268_s24 }
 0x103   :  { %253 = dma.hbm_to_vmem [thread:$0]  %s6115_s9, 1024, %s248_s25, [#allocation24], %s5440_s26, %s5440_s26, %s5441_s28  }
 0x104   :  { %p5275_p0 = por %p5274_p13, %p5273_p12 }
 0x106   :  { %p5276_p1 = pnand %p5275_p0, %p5269_p11 }
 0x108   :  { %5279 = shalt.err (!%p5276_p1)
}
 0x109   :  { %s6116_s22 = sld [smem:[#allocation63_spill]]  ;;  %s5288_s23 = scalar_lea.vmem %s294_s14, 1024 }
 0x10a   :  { %p5289_p2 = scmp.ne.s32.totalorder %s294_s14, %s5288_s23  ;;  %p5293_p3 = scmp.lt.s32.totalorder %s294_s14, %s294_s14 }
 0x10b   :  { %p5294_p4 = scmp.lt.s32.totalorder %s5288_s23, %s5288_s23 }
 0x10d   :  { %p5295_p5 = por %p5294_p4, %p5293_p3 }
 0x10f   :  { %275 = dma.hbm_to_vmem [thread:$0]  %s6116_s22, 128, %s273_s16, [#allocation27]  }
 0x110   :  { %p5296_p6 = pnand %p5295_p5, %p5289_p2 }
 0x112   :  { %5299 = shalt.err (!%p5296_p6)
}
 0x113   :  { %s6117_s13 = sld [smem:[#allocation64_spill]]  ;;  %s5462_s21 = smov [#allocation34]  }
 0x114   :  { %s319_s17 = sshll.u32 %s5462_s21, 4  ;;  %s5463_s1 = smov [#allocation37]   ;;  %s320_s17 = int_to_ptr.vmem [resolvable:$true] %s319_s17 }
 0x115   :  { %s341_s6 = sshll.u32 %s5463_s1, 4  ;;  %s5308_s27 = scalar_lea.vmem %s320_s17, 1024  ;;  %s342_s6 = int_to_ptr.vmem [resolvable:$true] %s341_s6 }
 0x116   :  { %p5309_p7 = scmp.ne.s32.totalorder %s320_s17, %s5308_s27  ;;  %p5313_p8 = scmp.lt.s32.totalorder %s320_s17, %s320_s17 }
 0x117   :  { %p5314_p9 = scmp.lt.s32.totalorder %s5308_s27, %s5308_s27 }
 0x119   :  { %299 = dma.hbm_to_vmem [thread:$0]  %s6117_s13, 1024, %s294_s14, [#allocation30], %s5440_s26, %s5440_s26, %s5441_s28  }
 0x11a   :  { %p5315_p10 = por %p5314_p9, %p5313_p8 }
 0x11c   :  { %p5316_p11 = pnand %p5315_p10, %p5309_p7 }
 0x11e   :  { %5319 = shalt.err (!%p5316_p11)
}
 0x11f   :  { %s6118_s2 = sld [smem:[#allocation66_spill]]  ;;  %s5328_s29 = scalar_lea.vmem %s342_s6, 2048 }
 0x120   :  { %p5329_p12 = scmp.ne.s32.totalorder %s342_s6, %s5328_s29  ;;  %p5333_p13 = scmp.lt.s32.totalorder %s342_s6, %s342_s6 }
 0x121   :  { %p5334_p0 = scmp.lt.s32.totalorder %s5328_s29, %s5328_s29 }
 0x123   :  { %p5335_p1 = por %p5334_p0, %p5333_p13 }
 0x125   :  { %325 = dma.hbm_to_vmem [thread:$0]  %s6118_s2, 1024, %s320_s17, [#allocation33], %s5440_s26, %s5440_s26, %s5441_s28  }
 0x126   :  { %p5336_p2 = pnand %p5335_p1, %p5329_p12 }
 0x128   :  { %5339 = shalt.err (!%p5336_p2)
}
 0x129   :  { %347 = dma.hbm_to_vmem [thread:$0]  %s5613_s20, 2048, %s342_s6, [#allocation36], %s5440_s26, %s5440_s26, %s5441_s28  }
 0x12a   :  { %s5464_s7 = smov [#allocation38]  }
 0x12b   :  { %s353_s10 = sshll.u32 %s5464_s7, 4  ;;  %s354_s10 = int_to_ptr.vmem [resolvable:$true] %s353_s10 }
 0x12c   :  { %s5348_s11 = scalar_lea.vmem %s354_s10, 1024  ;;  %p5353_p4 = scmp.lt.s32.totalorder %s354_s10, %s354_s10 }
 0x12d   :  { %p5349_p3 = scmp.ne.s32.totalorder %s354_s10, %s5348_s11  ;;  %p5354_p5 = scmp.lt.s32.totalorder %s5348_s11, %s5348_s11 }
 0x12f   :  { %p5355_p6 = por %p5354_p5, %p5353_p4 }
 0x131   :  { %p5356_p7 = pnand %p5355_p6, %p5349_p3 }
 0x133   :  { %5359 = shalt.err (!%p5356_p7)
}
 0x134   :  { %359 = dma.hbm_to_vmem [thread:$0]  %s5618_s19, 1024, %s354_s10, [#allocation39], %s5440_s26, %s5440_s26, %s5441_s28  }
 0x135   :  { %5380 = dma.done.wait [#allocation3], 1024  }
 0x136   :  { %5381 = vsyncadd [#allocation3], 4294966272 }
 0x137   :  { %5382 = dma.done.wait [#allocation6], 8208  }
 0x138   :  { %5383 = vsyncadd [#allocation6], 4294959088 }
 0x139   :  { %5384 = dma.done.wait [#allocation9], 2048  }
 0x13a   :  { %5385 = vsyncadd [#allocation9], 4294965248 }
 0x13b   :  { %5386 = dma.done.wait [#allocation12], 1152  }
 0x13c   :  { %5387 = vsyncadd [#allocation12], 4294966144 }
 0x13d   :  { %5388 = dma.done.wait [#allocation15], 1152  }
 0x13e   :  { %5389 = vsyncadd [#allocation15], 4294966144 }
 0x13f   :  { %5390 = dma.done.wait [#allocation18], 2048  }
 0x140   :  { %5391 = vsyncadd [#allocation18], 4294965248 }
 0x141   :  { %5392 = dma.done.wait [#allocation21], 1152  }
 0x142   :  { %5393 = vsyncadd [#allocation21], 4294966144 }
 0x143   :  { %5394 = dma.done.wait [#allocation24], 1152  }
 0x144   :  { %5395 = vsyncadd [#allocation24], 4294966144 }
 0x145   :  { %5396 = dma.done.wait [#allocation27], 1152  }
 0x146   :  { %5397 = vsyncadd [#allocation27], 4294966144 }
 0x147   :  { %5398 = dma.done.wait [#allocation30], 3072  }
 0x148   :  { %5399 = vsyncadd [#allocation30], 4294964224 }
 0x149   :  { %5400 = dma.done.wait [#allocation33], 3072  }
 0x14a   :  { %5401 = vsyncadd [#allocation33], 4294964224 }
 0x14b   :  { %5402 = dma.done.wait [#allocation36], 2176  }
 0x14c   :  { %5403 = vsyncadd [#allocation36], 4294965120 }
 0x14d   :  { %5404 = dma.done.wait [#allocation39], 1024  }
 0x14e   :  { %5405 = vsyncadd [#allocation39], 4294966272  ;;  %s6119_s19 = sld [smem:[#allocation55_spill]]  ;;  %v5465_v0 = vmov 0   ;;  %v4682_v2 = vld [vmem:[#allocation2 + $0x38] sm:$0xff]   ;;  %v5466_v3 = vmov 0.0   ;;  %v436_v11 = vlaneseq }
 0x14f   :  { %4681 = vset.pattern.permute.xlu0 %v5465_v0  ;;  %1191 = vmatprep.mubr.bf16.mxu1 %v5465_v0  ;;  %v4683_v4 = vld [vmem:[#allocation2 + $0x30] sm:$0xff]   ;;  %v4684_v5 = vld [vmem:[#allocation2 + $0x28] sm:$0xff]   ;;  %v4685_v6 = vld [vmem:[#allocation2 + $0x20] sm:$0xff]   ;;  %vm5467_vm0 = vmmov 0   ;;  %v5468_v63 = vmov 683565275  }
 0x150   :  { %4330 = vmatprep.subr.bf16.mxu0 %v5466_v3  ;;  %4346 = vmatprep.mubr.msk.bf16.mxu0 %vm5467_vm0, %v5466_v3  ;;  %v4686_v7 = vld [vmem:[#allocation2 + $0x18] sm:$0xff]   ;;  %v4687_v8 = vld [vmem:[#allocation2 + $0x10] sm:$0xff]   ;;  %v4688_v9 = vld [vmem:[#allocation2 + $0x8] sm:$0xff]   ;;  %v5716_v12 = vand.u32 127, %v436_v11  ;;  %s6120_s20 = sld [smem:[#allocation56_spill]] }
 0x151   :  { %4331 = vmatpush3.bf16.msra.mxu0 %v4682_v2  ;;  %v4689_v10 = vld [vmem:[#allocation2] sm:$0xff]   ;;  %v5718_v15 = vld [vmem:[#allocation7 + $0x1c8] sm:$0xff]  ;;  %v5469_v2 = vmov 2475754826   ;;  %s6121_s26 = sld [smem:[#allocation60_spill]] }
 0x152   :  { %4332 = vmatprep.subr.bf16.mxu0 %v5466_v3  ;;  %v831_v13 = vld [vmem:[#allocation7 + $0x1c0] sm:$0xff]  ;;  %vm438_vm1 = vcmp.lt.s32.totalorder %v5716_v12, 16  ;;  %v5721_v17 = vld [vmem:[#allocation7 + $0x1e8] sm:$0xff]  ;;  %v3901_v21 = vadd.s32 4294967280, %v5716_v12  ;;  %vm659_vm13 = vcmp.lt.s32.totalorder %v5716_v12, 32  ;;  %s6122_s28 = sld [smem:[#allocation65_spill]] }
 0x153   :  { %v835_v14 = vld [vmem:[#allocation7 + $0x1e0] sm:$0xff]  ;;  %v3980_v22 = vcombine.low %v5718_v15, %v5721_v17  ;;  %v3981_v23 = vcombine.high %v5718_v15, %v5721_v17  ;;  %v796_v15 = vld [vmem:[#allocation7 + $0xa8] sm:$0xff] }
 0x154   :  { %v435_v1 = vld [vmem:[%s6119_s19] sm:$0xff]  ;;  %v3979_v16 = vcombine.high %v831_v13, %v835_v14  ;;  %v3978_v18 = vcombine.low %v831_v13, %v835_v14  ;;  %v440_v29 = vsel %vm438_vm1, %v5716_v12, %v3901_v21  ;;  %v5472_v14 = vmov 920167782  }
 0x155   :  { %447 = vperm.xlu0 %4681, %v435_v1   ;;  %4333 = vmatpush3.bf16.msra.mxu0 %v4683_v4  ;;  %v823_v19 = vld [vmem:[#allocation7 + $0x180] sm:$0xff]  ;;  %v441_v33 = vcvt.s32.f32 %v440_v29 }
 0x156   :  { %4334 = vmatprep.subr.bf16.mxu0 %v5466_v3  ;;  %v827_v20 = vld [vmem:[#allocation7 + $0x1a0] sm:$0xff]  ;;  %1159 = vmatprep.subr.bf16.mxu1 %v3979_v16 }
 0x157   :  { %v3971_v24 = vcombine.high %v823_v19, %v827_v20  ;;  %1160 = vmatpush1.bf16.msra.mxu1 %v3978_v18  ;;  %v3970_v25 = vcombine.low %v823_v19, %v827_v20  ;;  %v815_v26 = vld [vmem:[#allocation7 + $0x140] sm:$0xff]  ;;  %v442_v38 = vmul.f32 -0.46051702, %v441_v33  ;;  %v5473_v19 = vmov 1326507024  }
 0x158   :  { %v819_v27 = vld [vmem:[#allocation7 + $0x160] sm:$0xff] }
 0x159   :  { %4335 = vmatpush3.bf16.msra.mxu0 %v4684_v5  ;;  %1161 = vmatprep.subr.bf16.mxu1 %v3971_v24  ;;  %v3963_v28 = vcombine.high %v815_v26, %v819_v27  ;;  %v3962_v30 = vcombine.low %v815_v26, %v819_v27  ;;  %v807_v31 = vld [vmem:[#allocation7 + $0x100] sm:$0xff]  ;;  %v443_v43 = vmul.f32 1.442695, %v442_v38 }
 0x15a   :  { %4336 = vmatprep.subr.bf16.mxu0 %v5466_v3  ;;  %v811_v32 = vld [vmem:[#allocation7 + $0x120] sm:$0xff] }
 0x15b   :  { %1162 = vmatpush1.bf16.msra.mxu1 %v3970_v25  ;;  %v3955_v34 = vcombine.high %v807_v31, %v811_v32  ;;  %v3954_v35 = vcombine.low %v807_v31, %v811_v32  ;;  %v799_v36 = vld [vmem:[#allocation7 + $0xc0] sm:$0xff]  ;;  %4842 = vpow2.f32 %v443_v43 }
 0x15c   :  { %1163 = vmatprep.subr.bf16.mxu1 %v3963_v28  ;;  %v803_v37 = vld [vmem:[#allocation7 + $0xe0] sm:$0xff] }
 0x15d   :  { %4337 = vmatpush3.bf16.msra.mxu0 %v4685_v6  ;;  %v3947_v39 = vcombine.high %v799_v36, %v803_v37  ;;  %v3946_v40 = vcombine.low %v799_v36, %v803_v37  ;;  %v791_v41 = vld [vmem:[#allocation7 + $0x80] sm:$0xff]  ;;  %v5470_v6 = vmov 2131351028  }
 0x15e   :  { %4338 = vmatprep.subr.bf16.mxu0 %v5466_v3  ;;  %v795_v42 = vld [vmem:[#allocation7 + $0xa0] sm:$0xff] }
 0x15f   :  { %1164 = vmatpush1.bf16.msra.mxu1 %v3962_v30  ;;  %v3939_v44 = vcombine.high %v791_v41, %v795_v42  ;;  %v3938_v45 = vcombine.low %v791_v41, %v795_v42  ;;  %v783_v46 = vld [vmem:[#allocation7 + $0x40] sm:$0xff] }
 0x160   :  { %1165 = vmatprep.subr.bf16.mxu1 %v3955_v34  ;;  %v787_v47 = vld [vmem:[#allocation7 + $0x60] sm:$0xff] }
 0x161   :  { %4339 = vmatpush3.bf16.msra.mxu0 %v4686_v7  ;;  %v3931_v48 = vcombine.high %v783_v46, %v787_v47  ;;  %v3930_v49 = vcombine.low %v783_v46, %v787_v47 }
 0x162   :  { %4340 = vmatprep.subr.bf16.mxu0 %v5466_v3 }
 0x163   :  { %1166 = vmatpush1.bf16.msra.mxu1 %v3954_v35 }
 0x164   :  { %1167 = vmatprep.subr.bf16.mxu1 %v3947_v39 }
 0x165   :  { %4341 = vmatpush3.bf16.msra.mxu0 %v4687_v8 }
 0x166   :  { %4342 = vmatprep.subr.bf16.mxu0 %v5466_v3 }
 0x167   :  { %1168 = vmatpush1.bf16.msra.mxu1 %v3946_v40 }
 0x168   :  { %1169 = vmatprep.subr.bf16.mxu1 %v3939_v44  ;;  %v4843_v50 = vpop.eup %4842 }
 0x169   :  { %4343 = vmatpush3.bf16.msra.mxu0 %v4688_v9  ;;  %v5471_v9 = vmov 2102212464  }
 0x16a   :  { %4344 = vmatprep.subr.bf16.mxu0 %v5466_v3 }
 0x16b   :  { %1170 = vmatpush1.bf16.msra.mxu1 %v3938_v45 }
 0x16c   :  { %1171 = vmatprep.subr.bf16.mxu1 %v3931_v48 }
 0x16d   :  { %4345 = vmatpush3.bf16.msra.mxu0 %v4689_v10 }
 0x16e   :  { %1200 = vmatprep.subr.bf16.mxu0 %v3981_v23 }
 0x16f   :  { %1172 = vmatpush1.bf16.msra.mxu1 %v3930_v49 }
 0x1d0   :  { %v448_v51 = vpop.permute.xlu0 %447 }
 0x1d1   :  { %v5731_v52 = vmul.f32 %v4843_v50, %v448_v51 }
 0x1d3   :  { %v454_v53 = vand.u32 2139095040, %v5731_v52  ;;  %v451_v57 = vand.u32 2147483647, %v5731_v52  ;;  %vm453_vm9 = vcmp.lt.s32.totalorder %v5731_v52, 0 }
 0x1d5   :  { %v455_v54 = vshrl.u32 %v454_v53, 23  ;;  %v458_v60 = vand.u32 8388607, %v451_v57  ;;  %vm452_vm10 = vcmp.le.f32.partialorder %v451_v57, 0.7853982 }
 0x1d7   :  { %v3902_v55 = vadd.s32 4294967169, %v455_v54  ;;  %v459_v21 = vor.u32 8388608, %v458_v60 }
 0x1d9   :  { %v461_v56 = vadd.s32 1, %v3902_v55  ;;  %v499_v36 = vshll.u32 %v459_v21, 8 }
 0x1db   :  { %vm462_vm2 = vcmp.gt.s32.totalorder %v461_v56, 0 }
 0x1dc   :  { %v463_v58 = vsel %vm462_vm2, %v461_v56, 0 }
 0x1dd   :  { %v465_v59 = vand.u32 31, %v463_v58  ;;  %v464_v62 = vshrl.u32 %v463_v58, 5 }
 0x1df   :  { %v466_v61 = vsub.s32 32, %v465_v59  ;;  %v468_v1 = vshll.u32 %v5468_v63, %v465_v59  ;;  %v471_v4 = vshll.u32 %v5469_v2, %v465_v59  ;;  %v474_v8 = vshll.u32 %v5470_v6, %v465_v59 }
 0x1e0   :  { %v477_v13 = vshll.u32 %v5471_v9, %v465_v59  ;;  %v480_v18 = vshll.u32 %v5472_v14, %v465_v59  ;;  %vm483_vm3 = vcmp.lt.s32.totalorder %v464_v62, 1  ;;  %vm486_vm4 = vcmp.lt.s32.totalorder %v464_v62, 4 }
 0x1e1   :  { %v469_v5 = vshrl.u32 %v5469_v2, %v466_v61  ;;  %v472_v7 = vshrl.u32 %v5470_v6, %v466_v61  ;;  %v475_v10 = vshrl.u32 %v5471_v9, %v466_v61  ;;  %v478_v16 = vshrl.u32 %v5472_v14, %v466_v61 }
 0x1e2   :  { %v481_v20 = vshrl.u32 %v5473_v19, %v466_v61  ;;  %v467_v31 = vshrl.u32 %v5468_v63, %v466_v61  ;;  %vm485_vm5 = vcmp.lt.s32.totalorder %v464_v62, 3  ;;  %vm484_vm6 = vcmp.lt.s32.totalorder %v464_v62, 2 }
 0x1e3   :  { %v470_v23 = vor.u32 %v469_v5, %v468_v1  ;;  %v473_v24 = vor.u32 %v472_v7, %v471_v4  ;;  %v476_v25 = vor.u32 %v475_v10, %v474_v8  ;;  %v479_v26 = vor.u32 %v478_v16, %v477_v13 }
 0x1e4   :  { %v482_v27 = vor.u32 %v481_v20, %v480_v18 }
 0x1e5   :  { %v488_v28 = vsel %vm486_vm4, %v476_v25, 2102212464  ;;  %v491_v29 = vsel %vm483_vm3, %v470_v23, %v473_v24  ;;  %v495_v30 = vsel %vm483_vm3, %v473_v24, %v476_v25  ;;  %v492_v32 = vsel %vm486_vm4, %v479_v26, 920167782 }
 0x1e6   :  { %v496_v33 = vsel %vm486_vm4, %v482_v27, 1326507024  ;;  %v493_v34 = vsel %vm485_vm5, %v476_v25, %v492_v32  ;;  %v487_v37 = vsel %vm483_vm3, %v467_v31, %v470_v23  ;;  %v489_v38 = vsel %vm485_vm5, %v473_v24, %v488_v28 }
 0x1e7   :  { %v497_v35 = vsel %vm485_vm5, %v479_v26, %v496_v33  ;;  %v494_v39 = vsel %vm484_vm6, %v491_v29, %v493_v34  ;;  %v490_v45 = vsel %vm484_vm6, %v487_v37, %v489_v38  ;;  %vm543_vm4 = vweird.f32 %v5731_v52  ;;  %v824_v34 = vld [vmem:[#allocation7 + $0x188] sm:$0xff]  ;;  %vm3919_vm5 = vmpackc.low %vm659_vm13, %vm659_vm13 }
 0x1e8   :  { %v498_v40 = vsel %vm484_vm6, %v495_v30, %v497_v35  ;;  %v5740_v43 = vmul.u32.u64.low %v499_v36, %v494_v39  ;;  %v5741_v44 = vmul.u32.u64.high %v499_v36, %v494_v39, %v5740_v43  ;;  %v506_v47 = vmul.u32 %v499_v36, %v490_v45  ;;  %v828_v35 = vld [vmem:[#allocation7 + $0x1a8] sm:$0xff] }
 0x1e9   :  { %v5737_v41 = vmul.u32.u64.low %v499_v36, %v498_v40  ;;  %v5738_v42 = vmul.u32.u64.high %v499_v36, %v498_v40, %v5737_v41  ;;  %v3973_v40 = vcombine.high %v824_v34, %v828_v35  ;;  %v812_v45 = vld [vmem:[#allocation7 + $0x128] sm:$0xff] }
 0x1ea   :  { %v509_v46 = vadd.s32 1, %v5741_v44  ;;  %v816_v41 = vld [vmem:[#allocation7 + $0x148] sm:$0xff] }
 0x1eb   :  { %vm508_vm7 = vc.u32 %v5738_v42, %v5740_v43  ;;  %v507_v61 = vadd.s32 %v5740_v43, %v5738_v42  ;;  %v820_v42 = vld [vmem:[#allocation7 + $0x168] sm:$0xff] }
 0x1ec   :  { %v510_v48 = vsel %vm508_vm7, %v509_v46, %v5741_v44  ;;  %v3965_v43 = vcombine.high %v816_v41, %v820_v42  ;;  %v808_v44 = vld [vmem:[#allocation7 + $0x108] sm:$0xff]  ;;  %v3964_v12 = vcombine.low %v816_v41, %v820_v42  ;;  %v810_v41 = vld [vmem:[#allocation7 + $0x118] sm:$0xff] }
 0x1ed   :  { %v511_v49 = vadd.s32 %v510_v48, %v506_v47  ;;  %v3957_v46 = vcombine.high %v808_v44, %v812_v45  ;;  %v800_v47 = vld [vmem:[#allocation7 + $0xc8] sm:$0xff]  ;;  %v814_v42 = vld [vmem:[#allocation7 + $0x138] sm:$0xff] }
 0x1ee   :  { %v804_v48 = vld [vmem:[#allocation7 + $0xe8] sm:$0xff] }
 0x1ef   :  { %v512_v50 = vadd.s32 536870912, %v511_v49  ;;  %v3948_v17 = vcombine.low %v800_v47, %v804_v48 }
 0x1f1   :  { %v513_v51 = vshrl.u32 %v512_v50, 30  ;;  %v3949_v50 = vcombine.high %v800_v47, %v804_v48  ;;  %v802_v47 = vld [vmem:[#allocation7 + $0xd8] sm:$0xff] }
 0x1f2   :  { %v806_v48 = vld [vmem:[#allocation7 + $0xf8] sm:$0xff] }
 0x1f3   :  { %v514_v53 = vshll.u32 %v513_v51, 30  ;;  %v537_v14 = vsub.s32 4, %v513_v51 }
 0x1f5   :  { %v515_v54 = vsub.s32 %v511_v49, %v514_v53  ;;  %v538_v19 = vsel %vm453_vm9, %v537_v14, %v513_v51  ;;  %v3956_v49 = vcombine.low %v808_v44, %v812_v45  ;;  %v792_v51 = vld [vmem:[#allocation7 + $0x88] sm:$0xff]  ;;  %v3961_v45 = vcombine.high %v810_v41, %v814_v42 }
 0x1f6   :  { %v540_v20 = vsel %vm452_vm10, 0, %v538_v19  ;;  %v784_v53 = vld [vmem:[#allocation7 + $0x48] sm:$0xff] }
 0x1f7   :  { %v517_v55 = vsub.s32 0, %v515_v54  ;;  %v544_v21 = vadd.s32 3, %v540_v20  ;;  %v648_v24 = vand.u32 3, %v540_v20  ;;  %v825_v20 = vld [vmem:[#allocation7 + $0x190] sm:$0xff] }
 0x1f9   :  { %v3903_v56 = vmin.u32 %v517_v55, %v515_v54  ;;  %v545_v23 = vand.u32 3, %v544_v21  ;;  %vm653_vm12 = vcmp.eq.s32.totalorder %v648_v24, 2  ;;  %vm650_vm15 = vcmp.eq.s32.totalorder %v648_v24, 0 }
 0x1fa   :  { %vm649_vm3 = vcmp.lt.s32.totalorder %v648_v24, 2  ;;  %v3940_v55 = vcombine.low %v792_v51, %v796_v15  ;;  %v826_v24 = vld [vmem:[#allocation7 + $0x198] sm:$0xff] }
 0x1fb   :  { %v519_v58 = vclz %v3903_v56  ;;  %vm550_vm11 = vcmp.eq.s32.totalorder %v545_v23, 2  ;;  %vm547_vm14 = vcmp.eq.s32.totalorder %v545_v23, 0  ;;  %vm546_vm2 = vcmp.lt.s32.totalorder %v545_v23, 2  ;;  %v829_v23 = vld [vmem:[#allocation7 + $0x1b0] sm:$0xff] }
 0x1fd   :  { %v3904_v59 = vadd.s32 4294967294, %v519_v58 }
 0x1ff   :  { %vm3905_vm8 = vcmp.lt.s32.totalorder %v3904_v59, 0 }
 0x200   :  { %v522_v60 = vsel %vm3905_vm8, 0, %v3904_v59  ;;  %v775_v59 = vld [vmem:[#allocation7] sm:$0xff] }
 0x201   :  { %v523_v62 = vsub.s32 32, %v522_v60  ;;  %v527_v63 = vsub.s32 4294967266, %v522_v60  ;;  %v524_v1 = vshll.u32 %v515_v54, %v522_v60  ;;  %v788_v54 = vld [vmem:[#allocation7 + $0x68] sm:$0xff]  ;;  %v779_v60 = vld [vmem:[#allocation7 + $0x20] sm:$0xff] }
 0x202   :  { %v3933_v56 = vcombine.high %v784_v53, %v788_v54  ;;  %v3932_v58 = vcombine.low %v784_v53, %v788_v54  ;;  %v798_v53 = vld [vmem:[#allocation7 + $0xb8] sm:$0xff] }
 0x203   :  { %v525_v2 = vshrl.u32 %v507_v61, %v523_v62  ;;  %v528_v4 = vadd.s32 127, %v527_v63  ;;  %v776_v61 = vld [vmem:[#allocation7 + $0x8] sm:$0xff]  ;;  %v3923_v62 = vcombine.high %v775_v59, %v779_v60 }
 0x204   :  { %v780_v63 = vld [vmem:[#allocation7 + $0x28] sm:$0xff] }
 0x205   :  { %v526_v5 = vor.u32 %v525_v2, %v524_v1  ;;  %v529_v6 = vshll.u32 %v528_v4, 23  ;;  %v3924_v1 = vcombine.low %v776_v61, %v780_v63  ;;  %v3925_v2 = vcombine.high %v776_v61, %v780_v63  ;;  %1173 = vmatprep.subr.bf16.mxu1 %v3923_v62  ;;  %v786_v61 = vld [vmem:[#allocation7 + $0x58] sm:$0xff] }
 0x206   :  { %v3922_v4 = vcombine.low %v775_v59, %v779_v60  ;;  %v785_v59 = vld [vmem:[#allocation7 + $0x50] sm:$0xff]  ;;  %v790_v62 = vld [vmem:[#allocation7 + $0x78] sm:$0xff] }
 0x207   :  { %v530_v7 = vor.u32 4788187, %v529_v6  ;;  %v533_v9 = vcvt.s32.f32 %v526_v5  ;;  %v833_v5 = vld [vmem:[#allocation7 + $0x1d0] sm:$0xff] }
 0x208   :  { %1174 = vmatpush1.bf16.msra.mxu1 %v3922_v4  ;;  %v837_v6 = vld [vmem:[#allocation7 + $0x1f0] sm:$0xff]  ;;  %v3937_v4 = vcombine.high %v786_v61, %v790_v62 }
 0x209   :  { %v531_v8 = vand.u32 2147483647, %v530_v7  ;;  %v834_v7 = vld [vmem:[#allocation7 + $0x1d8] sm:$0xff]  ;;  %v789_v60 = vld [vmem:[#allocation7 + $0x70] sm:$0xff] }
 0x20b   :  { %v534_v10 = vmul.f32 %v533_v9, %v531_v8  ;;  %v3983_v8 = vcombine.high %v833_v5, %v837_v6  ;;  %v838_v9 = vld [vmem:[#allocation7 + $0x1f8] sm:$0xff] }
 0x20c   :  { %v3985_v14 = vcombine.high %v834_v7, %v838_v9 }
 0x20d   :  { %v535_v13 = vxor.u32 2147483648, %v534_v10  ;;  %1241 = vmatprep.subr.bf16.mxu1 %v3983_v8  ;;  %v782_v8 = vld [vmem:[#allocation7 + $0x38] sm:$0xff] }
 0x20f   :  { %v536_v16 = vsel %vm453_vm9, %v535_v13, %v534_v10  ;;  %v3982_v10 = vcombine.low %v833_v5, %v837_v6  ;;  %v3984_v13 = vcombine.low %v834_v7, %v838_v9  ;;  %v777_v5 = vld [vmem:[#allocation7 + $0x10] sm:$0xff]  ;;  %v778_v7 = vld [vmem:[#allocation7 + $0x18] sm:$0xff]  ;;  %v3934_v9 = vcombine.low %v785_v59, %v789_v60 }
 0x210   :  { %v539_v18 = vsel %vm452_vm10, %v5731_v52, %v536_v16  ;;  %v3972_v52 = vcombine.low %v824_v34, %v828_v35  ;;  %v3910_v16 = vld [vmem:[#allocation5] ss:$0 sm:$0xff]  ;;  %v3974_v35 = vcombine.low %v825_v20, %v829_v23  ;;  %v781_v6 = vld [vmem:[#allocation7 + $0x30] sm:$0xff] }
 0x211   :  { %4844 = vcosq.f32 %v539_v18  ;;  %v822_v34 = vld [vmem:[#allocation7 + $0x178] sm:$0xff] }
 0x212   :  { %4846 = vsinq.f32 %v539_v18 }
 0x21e   :  { %v4845_v25 = vpop.eup %4844 }
 0x21f   :  { %v4847_v26 = vpop.eup %4846  ;;  %v551_v27 = vxor.u32 2147483648, %v4845_v25 }
 0x220   :  { %v548_v28 = vxor.u32 2147483648, %v4847_v26 }
 0x221   :  { %v552_v57 = vsel %vm550_vm11, %v551_v27, %v4847_v26  ;;  %v655_v29 = vsel %vm653_vm12, %v551_v27, %v4847_v26 }
 0x222   :  { %v549_v30 = vsel %vm547_vm14, %v4845_v25, %v548_v28  ;;  %v652_v31 = vsel %vm650_vm15, %v4845_v25, %v548_v28  ;;  %v830_v25 = vld [vmem:[#allocation7 + $0x1b8] sm:$0xff] }
 0x223   :  { %v553_v32 = vsel %vm546_vm2, %v549_v30, %v552_v57  ;;  %v656_v33 = vsel %vm649_vm3, %v652_v31, %v655_v29  ;;  %v3975_v57 = vcombine.high %v825_v20, %v829_v23  ;;  %v3977_v29 = vcombine.high %v826_v24, %v830_v25  ;;  %v817_v30 = vld [vmem:[#allocation7 + $0x150] sm:$0xff]  ;;  %v4693_v23 = vld [vmem:[#allocation8 + $0x20] sm:$0xff]  }
 0x224   :  { %v554_v36 = vsel %vm543_vm4, nan, %v553_v32  ;;  %v657_v37 = vsel %vm543_vm4, nan, %v656_v33  ;;  %v821_v32 = vld [vmem:[#allocation7 + $0x170] sm:$0xff]  ;;  %v818_v33 = vld [vmem:[#allocation7 + $0x158] sm:$0xff] }
 0x225   :  { %v658_v38 = vsel %vm438_vm1, %v554_v36, %v657_v37  ;;  %v3976_v36 = vcombine.low %v826_v24, %v830_v25  ;;  %v3967_v37 = vcombine.high %v817_v30, %v821_v32  ;;  %v4691_v20 = vld [vmem:[#allocation8 + $0x30] sm:$0xff]   ;;  %v4694_v24 = vld [vmem:[#allocation8 + $0x18] sm:$0xff]  }
 0x226   :  { %v3920_v39 = vpack.c.bf16 %v658_v38, %v658_v38  ;;  %v3969_v38 = vcombine.high %v818_v33, %v822_v34  ;;  %v4695_v25 = vld [vmem:[#allocation8 + $0x10] sm:$0xff]  }
 0x228   :  { %4347 = vmatmul.mubr.msk.bf16.vlgmr.msra.gmra.mxu0 %vm3919_vm5, %v3920_v39  ;;  %v809_v39 = vld [vmem:[#allocation7 + $0x110] sm:$0xff] }
 0x229   :  { %1201 = vmatpush1.bf16.msra.mxu0 %v3980_v22  ;;  %1232 = vmatprep.mubr.bf16.mxu0 %v5465_v0  ;;  %v3941_v22 = vcombine.high %v792_v51, %v796_v15  ;;  %v793_v15 = vld [vmem:[#allocation7 + $0x90] sm:$0xff] }
 0x22a   :  { %1202 = vmatprep.subr.bf16.mxu0 %v3973_v40  ;;  %v813_v40 = vld [vmem:[#allocation7 + $0x130] sm:$0xff] }
 0x22b   :  { %v3959_v44 = vcombine.high %v809_v39, %v813_v40 }
 0x22d   :  { %1203 = vmatpush1.bf16.msra.mxu0 %v3972_v52  ;;  %v3966_v52 = vcombine.low %v817_v30, %v821_v32  ;;  %v4699_v30 = vld [vmem:[#allocation10 + $0x30] sm:$0xff]   ;;  %v4701_v32 = vld [vmem:[#allocation10 + $0x20] sm:$0xff]  }
 0x22e   :  { %1204 = vmatprep.subr.bf16.mxu0 %v3965_v43  ;;  %v3968_v43 = vcombine.low %v818_v33, %v822_v34  ;;  %v4702_v33 = vld [vmem:[#allocation10 + $0x18] sm:$0xff]   ;;  %v4703_v34 = vld [vmem:[#allocation10 + $0x10] sm:$0xff]  }
 0x231   :  { %1205 = vmatpush1.bf16.msra.mxu0 %v3964_v12  ;;  %v801_v12 = vld [vmem:[#allocation7 + $0xd0] sm:$0xff] }
 0x232   :  { %1206 = vmatprep.subr.bf16.mxu0 %v3957_v46  ;;  %v805_v46 = vld [vmem:[#allocation7 + $0xf0] sm:$0xff] }
 0x233   :  { %v3951_v51 = vcombine.high %v801_v12, %v805_v46  ;;  %v3950_v54 = vcombine.low %v801_v12, %v805_v46 }
 0x235   :  { %1207 = vmatpush1.bf16.msra.mxu0 %v3956_v49  ;;  %v3958_v49 = vcombine.low %v809_v39, %v813_v40 }
 0x236   :  { %1208 = vmatprep.subr.bf16.mxu0 %v3949_v50  ;;  %v3960_v50 = vcombine.low %v810_v41, %v814_v42 }
 0x239   :  { %1209 = vmatpush1.bf16.msra.mxu0 %v3948_v17  ;;  %v797_v17 = vld [vmem:[#allocation7 + $0xb0] sm:$0xff] }
 0x23a   :  { %1210 = vmatprep.subr.bf16.mxu0 %v3941_v22  ;;  %v794_v22 = vld [vmem:[#allocation7 + $0x98] sm:$0xff]  ;;  %v3942_v63 = vcombine.low %v793_v15, %v797_v17 }
 0x23d   :  { %1211 = vmatpush1.bf16.msra.mxu0 %v3940_v55  ;;  %v3952_v55 = vcombine.low %v802_v47, %v806_v48 }
 0x23e   :  { %1212 = vmatprep.subr.bf16.mxu0 %v3933_v56  ;;  %v3943_v56 = vcombine.high %v793_v15, %v797_v17  ;;  %v5818_v15 = vld [vmem:[#allocation11] sm:$0xff] }
 0x241   :  { %1213 = vmatpush1.bf16.msra.mxu0 %v3932_v58  ;;  %v3945_v58 = vcombine.high %v794_v22, %v798_v53 }
 0x242   :  { %1214 = vmatprep.subr.bf16.mxu0 %v3925_v2  ;;  %v3935_v2 = vcombine.high %v785_v59, %v789_v60 }
 0x245   :  { %1215 = vmatpush1.bf16.msra.mxu0 %v3924_v1  ;;  %v3944_v1 = vcombine.low %v794_v22, %v798_v53 }
 0x246   :  { %1282 = vmatprep.subr.bf16.mxu0 %v3985_v14  ;;  %v3929_v14 = vcombine.high %v778_v7, %v782_v8 }
 0x2e8   :  { %v767_v18 = vpop.f32.mrf.mxu0 }
 0x2e9   :  { %v768_v19 = vadd.f32 %v3910_v16, %v767_v18  ;;  %v3926_v16 = vcombine.low %v777_v5, %v781_v6  ;;  %v3928_v18 = vcombine.low %v778_v7, %v782_v8 }
 0x2ea   :  { %v4348_v21 = vpop.f32.mrf.mxu0 }
 0x2eb   :  { %v773_v26 = vmax.f32 %v768_v19, 0.0  ;;  %v4690_v19 = vld [vmem:[#allocation8 + $0x38] sm:$0xff]   ;;  %v4692_v21 = vld [vmem:[#allocation8 + $0x28] sm:$0xff]  }
 0x2ec   :  { %v770_v27 = vpop.f32.mrf.mxu0 }
 0x2ed   :  { %v5762_v28 = vpack.c.bf16 %v773_v26, %v773_v26  ;;  %v4696_v26 = vld [vmem:[#allocation8 + $0x8] sm:$0xff]   ;;  %v4697_v27 = vld [vmem:[#allocation8] sm:$0xff]  }
 0x2ee   :  { %v4349_v31 = vpop.f32.mrf.mxu0 }
 0x2ef   :  { %1192 = vmatmul.mubr.bf16.vlgmr.msra.gmra.mxu1 %v5762_v28  ;;  %1233 = vmatmul.mubr.bf16.vlgmr.msra.gmra.mxu0 %v5762_v28  ;;  %v4700_v31 = vld [vmem:[#allocation10 + $0x28] sm:$0xff]  }
 0x2f0   :  { %1242 = vmatpush1.bf16.msra.mxu1 %v3982_v10  ;;  %1283 = vmatpush1.bf16.msra.mxu0 %v3984_v13  ;;  %v3936_v10 = vcombine.low %v786_v61, %v790_v62  ;;  %v3927_v13 = vcombine.high %v777_v5, %v781_v6 }
 0x2f1   :  { %1243 = vmatprep.subr.bf16.mxu1 %v3975_v57  ;;  %1284 = vmatprep.subr.bf16.mxu0 %v3977_v29  ;;  %v4698_v29 = vld [vmem:[#allocation10 + $0x38] sm:$0xff]  }
 0x2f2   :  { %1273 = vmatprep.mubr.bf16.mxu1 %v5465_v0  ;;  %1314 = vmatprep.mubr.bf16.mxu0 %v5465_v0  ;;  %v3953_v0 = vcombine.high %v802_v47, %v806_v48 }
 0x2f4   :  { %1244 = vmatpush1.bf16.msra.mxu1 %v3974_v35  ;;  %1285 = vmatpush1.bf16.msra.mxu0 %v3976_v36  ;;  %v4704_v35 = vld [vmem:[#allocation10 + $0x8] sm:$0xff]   ;;  %v4705_v36 = vld [vmem:[#allocation10] sm:$0xff]  }
 0x2f5   :  { %1245 = vmatprep.subr.bf16.mxu1 %v3967_v37  ;;  %1286 = vmatprep.subr.bf16.mxu0 %v3969_v38 }
 0x2f8   :  { %1246 = vmatpush1.bf16.msra.mxu1 %v3966_v52  ;;  %1287 = vmatpush1.bf16.msra.mxu0 %v3968_v43 }
 0x2f9   :  { %1247 = vmatprep.subr.bf16.mxu1 %v3959_v44  ;;  %1288 = vmatprep.subr.bf16.mxu0 %v3961_v45 }
 0x2fc   :  { %1248 = vmatpush1.bf16.msra.mxu1 %v3958_v49  ;;  %1289 = vmatpush1.bf16.msra.mxu0 %v3960_v50 }
 0x2fd   :  { %1249 = vmatprep.subr.bf16.mxu1 %v3951_v51  ;;  %1290 = vmatprep.subr.bf16.mxu0 %v3953_v0  ;;  %v5813_v51 = vshrl.u32 %v436_v11, 7 }
 0x2ff   :  { %v5816_v0 = vsub.s32 0, %v5813_v51 }
 0x300   :  { %1250 = vmatpush1.bf16.msra.mxu1 %v3950_v54  ;;  %1291 = vmatpush1.bf16.msra.mxu0 %v3952_v55 }
 0x301   :  { %1251 = vmatprep.subr.bf16.mxu1 %v3943_v56  ;;  %1292 = vmatprep.subr.bf16.mxu0 %v3945_v58  ;;  %v1352_v17 = vrot.slane %v5818_v15, %v5816_v0 }
 0x304   :  { %1252 = vmatpush1.bf16.msra.mxu1 %v3942_v63  ;;  %1293 = vmatpush1.bf16.msra.mxu0 %v3944_v1 }
 0x305   :  { %1253 = vmatprep.subr.bf16.mxu1 %v3935_v2  ;;  %1294 = vmatprep.subr.bf16.mxu0 %v3937_v4 }
 0x308   :  { %1254 = vmatpush1.bf16.msra.mxu1 %v3934_v9  ;;  %1295 = vmatpush1.bf16.msra.mxu0 %v3936_v10 }
 0x309   :  { %1255 = vmatprep.subr.bf16.mxu1 %v3927_v13  ;;  %1296 = vmatprep.subr.bf16.mxu0 %v3929_v14 }
 0x30c   :  { %1256 = vmatpush1.bf16.msra.mxu1 %v3926_v16  ;;  %1297 = vmatpush1.bf16.msra.mxu0 %v3928_v18 }
 0x30d   :  { %4350 = vmatprep.subr.bf16.mxu1 %v5466_v3  ;;  %4370 = vmatprep.subr.bf16.mxu0 %v5466_v3 }
 0x30f   :  { %1274 = vmatmul.mubr.bf16.vlgmr.msra.gmra.mxu1 %v5762_v28  ;;  %1315 = vmatmul.mubr.bf16.vlgmr.msra.gmra.mxu0 %v5762_v28  ;;  %v1331_v28 = vld [vmem:[%s6120_s20] sm:$0xff] }
 0x310   :  { %4351 = vmatpush3.bf16.msra.mxu1 %v4690_v19  ;;  %4366 = vmatprep.mubr.msk.bf16.mxu1 %vm5467_vm0, %v5466_v3  ;;  %v5784_v57 = vpack.c.bf16 %v1331_v28, %v1331_v28  ;;  %v5823_v19 = vsub.s32 1, %v5813_v51 }
 0x311   :  { %4352 = vmatprep.subr.bf16.mxu1 %v5466_v3  ;;  %4386 = vmatprep.mubr.msk.bf16.mxu0 %vm5467_vm0, %v5466_v3 }
 0x312   :  { %4371 = vmatpush3.bf16.msra.mxu0 %v4698_v29 }
 0x313   :  { %4372 = vmatprep.subr.bf16.mxu0 %v5466_v3 }
 0x314   :  { %4353 = vmatpush3.bf16.msra.mxu1 %v4691_v20  ;;  %v5826_v20 = vsub.s32 2, %v5813_v51 }
 0x315   :  { %4354 = vmatprep.subr.bf16.mxu1 %v5466_v3 }
 0x316   :  { %4373 = vmatpush3.bf16.msra.mxu0 %v4699_v30 }
 0x317   :  { %4374 = vmatprep.subr.bf16.mxu0 %v5466_v3 }
 0x318   :  { %4355 = vmatpush3.bf16.msra.mxu1 %v4692_v21 }
 0x319   :  { %4356 = vmatprep.subr.bf16.mxu1 %v5466_v3 }
 0x31a   :  { %4375 = vmatpush3.bf16.msra.mxu0 %v4700_v31 }
 0x31b   :  { %4376 = vmatprep.subr.bf16.mxu0 %v5466_v3 }
 0x31c   :  { %4357 = vmatpush3.bf16.msra.mxu1 %v4693_v23  ;;  %v1467_v23 = vrot.slane %v5818_v15, %v5823_v19 }
 0x31d   :  { %4358 = vmatprep.subr.bf16.mxu1 %v5466_v3 }
 0x31e   :  { %4377 = vmatpush3.bf16.msra.mxu0 %v4701_v32 }
 0x31f   :  { %4378 = vmatprep.subr.bf16.mxu0 %v5466_v3 }
 0x320   :  { %4359 = vmatpush3.bf16.msra.mxu1 %v4694_v24 }
 0x321   :  { %4360 = vmatprep.subr.bf16.mxu1 %v5466_v3 }
 0x322   :  { %4379 = vmatpush3.bf16.msra.mxu0 %v4702_v33 }
 0x323   :  { %4380 = vmatprep.subr.bf16.mxu0 %v5466_v3 }
 0x324   :  { %4361 = vmatpush3.bf16.msra.mxu1 %v4695_v25 }
 0x325   :  { %4362 = vmatprep.subr.bf16.mxu1 %v5466_v3 }
 0x326   :  { %4381 = vmatpush3.bf16.msra.mxu0 %v4703_v34  ;;  %v4706_v34 = vld [vmem:[#allocation13 + $0x38] sm:$0xff]  }
 0x327   :  { %4382 = vmatprep.subr.bf16.mxu0 %v5466_v3 }
 0x328   :  { %4363 = vmatpush3.bf16.msra.mxu1 %v4696_v26  ;;  %v1472_v26 = vrot.slane %v5818_v15, %v5826_v20 }
 0x329   :  { %4364 = vmatprep.subr.bf16.mxu1 %v5466_v3 }
 0x32a   :  { %4383 = vmatpush3.bf16.msra.mxu0 %v4704_v35  ;;  %v4707_v35 = vld [vmem:[#allocation13 + $0x30] sm:$0xff]  }
 0x32b   :  { %4384 = vmatprep.subr.bf16.mxu0 %v5466_v3 }
 0x32c   :  { %4365 = vmatpush3.bf16.msra.mxu1 %v4697_v27  ;;  %v5833_v27 = vsub.s32 3, %v5813_v51 }
 0x32d   :  { %4390 = vmatprep.subr.bf16.mxu1 %v5466_v3 }
 0x32e   :  { %4385 = vmatpush3.bf16.msra.mxu0 %v4705_v36  ;;  %v1478_v30 = vrot.slane %v5818_v15, %v5833_v27  ;;  %v4708_v36 = vld [vmem:[#allocation13 + $0x28] sm:$0xff]  }
 0x32f   :  { %4367 = vmatmul.mubr.bf16.vlgmr.msra.gmra.mxu1 %v5784_v57  ;;  %4410 = vmatprep.subr.bf16.mxu0 %v5466_v3 }
 0x330   :  { %4406 = vmatprep.mubr.msk.bf16.mxu1 %vm5467_vm0, %v5466_v3  ;;  %4391 = vmatpush3.bf16.msra.mxu1 %v4706_v34  ;;  %v4720_v34 = vld [vmem:[#allocation14 + $0x8] sm:$0xff]  }
 0x331   :  { %4392 = vmatprep.subr.bf16.mxu1 %v5466_v3 }
 0x334   :  { %4393 = vmatpush3.bf16.msra.mxu1 %v4707_v35  ;;  %v4721_v35 = vld [vmem:[#allocation14] sm:$0xff]  }
 0x335   :  { %4394 = vmatprep.subr.bf16.mxu1 %v5466_v3 }
 0x338   :  { %4395 = vmatpush3.bf16.msra.mxu1 %v4708_v36  ;;  %v5875_v36 = vld [vmem:[#allocation16] sm:$0xff] }
 0x339   :  { %4396 = vmatprep.subr.bf16.mxu1 %v5466_v3 }
 0x3af   :  { %v1193_v37 = vpop.f32.mrf.mxu1  ;;  %v5798_v38 = vpop.f32.mrf.mxu0 }
 0x3b1   :  { %v5800_v39 = vpop.f32.mrf.mxu1  ;;  %v5802_v40 = vpop.f32.mrf.mxu0 }
 0x3b3   :  { %v1197_v41 = vpop.f32.mrf.mxu1  ;;  %v1238_v42 = vpop.f32.mrf.mxu0 }
 0x3b4   :  { %v4709_v41 = vld [vmem:[#allocation13 + $0x20] sm:$0xff]   ;;  %v4711_v42 = vld [vmem:[#allocation13 + $0x10] sm:$0xff]  }
 0x3b5   :  { %v1198_v52 = vpop.f32.mrf.mxu1  ;;  %v1239_v43 = vpop.f32.mrf.mxu0  ;;  %4397 = vmatpush3.bf16.msra.mxu1 %v4709_v41  ;;  %v1642_v41 = vrot.slane %v5875_v36, %v5816_v0 }
 0x3b6   :  { %4398 = vmatprep.subr.bf16.mxu1 %v5466_v3  ;;  %v4712_v52 = vld [vmem:[#allocation13 + $0x8] sm:$0xff]   ;;  %v4713_v43 = vld [vmem:[#allocation13] sm:$0xff]  }
 0x3cf   :  { %v5804_v44 = vpop.f32.mrf.mxu1  ;;  %v5806_v45 = vpop.f32.mrf.mxu0 }
 0x3d1   :  { %v5808_v12 = vpop.f32.mrf.mxu1  ;;  %v5810_v46 = vpop.f32.mrf.mxu0 }
 0x3d3   :  { %v1279_v47 = vpop.f32.mrf.mxu1  ;;  %v1320_v48 = vpop.f32.mrf.mxu0 }
 0x3d4   :  { %v5848_v47 = vsub.s32 4, %v5813_v51 }
 0x3d5   :  { %v1280_v49 = vpop.f32.mrf.mxu1  ;;  %v1321_v50 = vpop.f32.mrf.mxu0 }
 0x3d6   :  { %v1500_v48 = vrot.slane %v5818_v15, %v5848_v47 }
 0x3ef   :  { %v1435_v22 = vpop.f32.mrf.mxu1 }
 0x3f0   :  { %v1436_v53 = vadd.f32 %v1435_v22, %v1352_v17 }
 0x3f1   :  { %v4368_v54 = vpop.f32.mrf.mxu1 }
 0x3f2   :  { %v1441_v55 = vmax.f32 %v1436_v53, 0.0 }
 0x3f3   :  { %v1438_v56 = vpop.f32.mrf.mxu1 }
 0x3f4   :  { %v1442_v58 = vrot.slane %v1441_v55, 4  ;;  %v1448_v59 = vmul.f32 %v1441_v55, %v1441_v55 }
 0x3f5   :  { %v4369_v60 = vpop.f32.mrf.mxu1 }
 0x3f6   :  { %v1443_v61 = vadd.f32 %v1442_v58, %v1441_v55  ;;  %v1449_v62 = vrot.slane %v1448_v59, 4 }
 0x3f8   :  { %v1444_v11 = vrot.slane %v1443_v61, 2  ;;  %v1450_v63 = vadd.f32 %v1449_v62, %v1448_v59 }
 0x3fa   :  { %v1445_v1 = vadd.f32 %v1444_v11, %v1443_v61  ;;  %v1451_v2 = vrot.slane %v1450_v63, 2 }
 0x3fc   :  { %v1446_v4 = vrot.slane %v1445_v1, 1  ;;  %v1452_v5 = vadd.f32 %v1451_v2, %v1450_v63 }
 0x3fe   :  { %v1447_v6 = vadd.f32 %v1446_v4, %v1445_v1  ;;  %v1453_v7 = vrot.slane %v1452_v5, 1 }
 0x400   :  { %v1454_v8 = vadd.f32 %v1453_v7, %v1452_v5  ;;  %v1455_v9 = vmul.f32 0.125, %v1447_v6 }
 0x402   :  { %v1456_v10 = vmul.f32 0.125, %v1454_v8  ;;  %v1457_v13 = vmul.f32 %v1455_v9, %v1455_v9  ;;  %v1460_v21 = vsub.f32 %v1441_v55, %v1455_v9 }
 0x404   :  { %v1458_v14 = vsub.f32 %v1456_v10, %v1457_v13 }
 0x406   :  { %v1459_v16 = vmax.f32 %v1458_v14, 0.0  ;;  %v5853_v14 = vsub.s32 5, %v5813_v51 }
 0x408   :  { %v1461_v18 = vadd.f32 1e-05, %v1459_v16  ;;  %v5856_v16 = vsub.s32 6, %v5813_v51  ;;  %v4714_v51 = vld [vmem:[#allocation14 + $0x38] sm:$0xff]  }
 0x40a   :  { %4848 = vrsqrt.f32 %v1461_v18 }
 0x417   :  { %v4849_v24 = vpop.eup %4848 }
 0x418   :  { %v1463_v25 = vmul.f32 %v4849_v24, %v1460_v21  ;;  %v1615_v21 = vrot.slane %v5818_v15, %v5853_v14 }
 0x41a   :  { %v1468_v28 = vmul.f32 %v1467_v23, %v1463_v25  ;;  %v1620_v25 = vrot.slane %v5818_v15, %v5856_v16  ;;  %v4717_v15 = vld [vmem:[#allocation14 + $0x20] sm:$0xff]  }
 0x41c   :  { %v1473_v29 = vadd.f32 %v1472_v26, %v1468_v28 }
 0x41e   :  { %v1474_v31 = vadd.f32 %v1473_v29, %v1193_v37  ;;  %v4710_v37 = vld [vmem:[#allocation13 + $0x18] sm:$0xff]  }
 0x41f   :  { %4399 = vmatpush3.bf16.msra.mxu1 %v4710_v37 }
 0x420   :  { %v1479_v32 = vadd.f32 %v1478_v30, %v1474_v31  ;;  %4400 = vmatprep.subr.bf16.mxu1 %v5466_v3  ;;  %v4715_v30 = vld [vmem:[#allocation14 + $0x30] sm:$0xff]   ;;  %v4716_v31 = vld [vmem:[#allocation14 + $0x28] sm:$0xff]  }
 0x422   :  { %v1480_v33 = vpack.c.bf16 %v1479_v32, %v1479_v32  ;;  %v4718_v32 = vld [vmem:[#allocation14 + $0x18] sm:$0xff]  }
 0x423   :  { %4401 = vmatpush3.bf16.msra.mxu1 %v4711_v42 }
 0x424   :  { %4387 = vmatmul.mubr.bf16.vlgmr.msra.gmra.mxu0 %v1480_v33  ;;  %4402 = vmatprep.subr.bf16.mxu1 %v5466_v3  ;;  %v4719_v33 = vld [vmem:[#allocation14 + $0x10] sm:$0xff]  }
 0x425   :  { %4426 = vmatprep.mubr.msk.bf16.mxu0 %vm5467_vm0, %v5466_v3  ;;  %4411 = vmatpush3.bf16.msra.mxu0 %v4714_v51  ;;  %v4723_v51 = vld [vmem:[#allocation17 + $0x30] sm:$0xff]  }
 0x426   :  { %4412 = vmatprep.subr.bf16.mxu0 %v5466_v3 }
 0x427   :  { %4403 = vmatpush3.bf16.msra.mxu1 %v4712_v52 }
 0x428   :  { %4404 = vmatprep.subr.bf16.mxu1 %v5466_v3 }
 0x429   :  { %4413 = vmatpush3.bf16.msra.mxu0 %v4715_v30  ;;  %v4724_v30 = vld [vmem:[#allocation17 + $0x28] sm:$0xff]  }
 0x42a   :  { %4414 = vmatprep.subr.bf16.mxu0 %v5466_v3 }
 0x42b   :  { %4405 = vmatpush3.bf16.msra.mxu1 %v4713_v43 }
 0x42c   :  { %4430 = vmatprep.subr.bf16.mxu1 %v5466_v3 }
 0x42d   :  { %4415 = vmatpush3.bf16.msra.mxu0 %v4716_v31  ;;  %v4725_v31 = vld [vmem:[#allocation17 + $0x20] sm:$0xff]  }
 0x42e   :  { %4416 = vmatprep.subr.bf16.mxu0 %v5466_v3 }
 0x431   :  { %4417 = vmatpush3.bf16.msra.mxu0 %v4717_v15  ;;  %v4727_v15 = vld [vmem:[#allocation17 + $0x10] sm:$0xff]  }
 0x432   :  { %4418 = vmatprep.subr.bf16.mxu0 %v5466_v3 }
 0x435   :  { %4419 = vmatpush3.bf16.msra.mxu0 %v4718_v32  ;;  %v4728_v32 = vld [vmem:[#allocation17 + $0x8] sm:$0xff]  }
 0x436   :  { %4420 = vmatprep.subr.bf16.mxu0 %v5466_v3 }
 0x439   :  { %4421 = vmatpush3.bf16.msra.mxu0 %v4719_v33  ;;  %v4729_v33 = vld [vmem:[#allocation17] sm:$0xff]  }
 0x43a   :  { %4422 = vmatprep.subr.bf16.mxu0 %v5466_v3 }
 0x43d   :  { %4423 = vmatpush3.bf16.msra.mxu0 %v4720_v34  ;;  %v1790_v34 = vrot.slane %v5875_v36, %v5848_v47 }
 0x43e   :  { %4424 = vmatprep.subr.bf16.mxu0 %v5466_v3 }
 0x441   :  { %4425 = vmatpush3.bf16.msra.mxu0 %v4721_v35 }
 0x442   :  { %4450 = vmatprep.subr.bf16.mxu0 %v5466_v3 }
 0x4e4   :  { %v1583_v49 = vpop.f32.mrf.mxu0 }
 0x4e5   :  { %v1584_v50 = vadd.f32 %v1583_v49, %v1500_v48 }
 0x4e6   :  { %v4388_v17 = vpop.f32.mrf.mxu0 }
 0x4e7   :  { %v1589_v22 = vmax.f32 %v1584_v50, 0.0 }
 0x4e8   :  { %v1586_v53 = vpop.f32.mrf.mxu0 }
 0x4e9   :  { %v1590_v54 = vrot.slane %v1589_v22, 4  ;;  %v1596_v55 = vmul.f32 %v1589_v22, %v1589_v22 }
 0x4ea   :  { %v4389_v56 = vpop.f32.mrf.mxu0 }
 0x4eb   :  { %v1591_v58 = vadd.f32 %v1590_v54, %v1589_v22  ;;  %v1597_v59 = vrot.slane %v1596_v55, 4 }
 0x4ed   :  { %v1592_v60 = vrot.slane %v1591_v58, 2  ;;  %v1598_v61 = vadd.f32 %v1597_v59, %v1596_v55 }
 0x4ef   :  { %v1593_v62 = vadd.f32 %v1592_v60, %v1591_v58  ;;  %v1599_v11 = vrot.slane %v1598_v61, 2 }
 0x4f1   :  { %v1594_v63 = vrot.slane %v1593_v62, 1  ;;  %v1600_v1 = vadd.f32 %v1599_v11, %v1598_v61 }
 0x4f3   :  { %v1595_v2 = vadd.f32 %v1594_v63, %v1593_v62  ;;  %v1601_v4 = vrot.slane %v1600_v1, 1 }
 0x4f5   :  { %v1602_v5 = vadd.f32 %v1601_v4, %v1600_v1  ;;  %v1603_v6 = vmul.f32 0.125, %v1595_v2 }
 0x4f7   :  { %v1604_v7 = vmul.f32 0.125, %v1602_v5  ;;  %v1605_v8 = vmul.f32 %v1603_v6, %v1603_v6  ;;  %v1608_v18 = vsub.f32 %v1589_v22, %v1603_v6 }
 0x4f9   :  { %v1606_v9 = vsub.f32 %v1604_v7, %v1605_v8  ;;  %v1757_v8 = vrot.slane %v5875_v36, %v5823_v19 }
 0x4fb   :  { %v1607_v10 = vmax.f32 %v1606_v9, 0.0 }
 0x4fd   :  { %v1609_v13 = vadd.f32 1e-05, %v1607_v10 }
 0x4ff   :  { %4850 = vrsqrt.f32 %v1609_v13  ;;  %v1762_v13 = vrot.slane %v5875_v36, %v5826_v20 }
 0x50c   :  { %v4851_v23 = vpop.eup %4850 }
 0x50d   :  { %v1611_v24 = vmul.f32 %v4851_v23, %v1608_v18  ;;  %v1768_v23 = vrot.slane %v5875_v36, %v5833_v27 }
 0x50f   :  { %v1616_v26 = vmul.f32 %v1615_v21, %v1611_v24 }
 0x511   :  { %v1621_v28 = vadd.f32 %v1620_v25, %v1616_v26 }
 0x513   :  { %v5862_v29 = vpack.c.bf16 %v1621_v28, %v1621_v28  ;;  %v4722_v28 = vld [vmem:[#allocation17 + $0x38] sm:$0xff]  }
 0x515   :  { %4407 = vmatmul.mubr.bf16.vlgmr.msra.gmra.mxu1 %v5862_v29 }
 0x516   :  { %4446 = vmatprep.mubr.msk.bf16.mxu1 %vm5467_vm0, %v5466_v3  ;;  %4431 = vmatpush3.bf16.msra.mxu1 %v4722_v28  ;;  %v4736_v28 = vld [vmem:[#allocation19 + $0x8] sm:$0xff]  }
 0x517   :  { %4432 = vmatprep.subr.bf16.mxu1 %v5466_v3 }
 0x51a   :  { %4433 = vmatpush3.bf16.msra.mxu1 %v4723_v51  ;;  %v4737_v51 = vld [vmem:[#allocation19] sm:$0xff]  }
 0x51b   :  { %4434 = vmatprep.subr.bf16.mxu1 %v5466_v3 }
 0x51e   :  { %4435 = vmatpush3.bf16.msra.mxu1 %v4724_v30  ;;  %v5915_v30 = vld [vmem:[#allocation20] sm:$0xff] }
 0x51f   :  { %4436 = vmatprep.subr.bf16.mxu1 %v5466_v3 }
 0x522   :  { %4437 = vmatpush3.bf16.msra.mxu1 %v4725_v31  ;;  %v1932_v31 = vrot.slane %v5915_v30, %v5816_v0 }
 0x523   :  { %4438 = vmatprep.subr.bf16.mxu1 %v5466_v3 }
 0x5d5   :  { %v1725_v37 = vpop.f32.mrf.mxu1 }
 0x5d6   :  { %v1726_v42 = vadd.f32 %v1725_v37, %v1642_v41 }
 0x5d7   :  { %v4408_v52 = vpop.f32.mrf.mxu1 }
 0x5d8   :  { %v1731_v43 = vmax.f32 %v1726_v42, 0.0 }
 0x5d9   :  { %v1728_v48 = vpop.f32.mrf.mxu1 }
 0x5da   :  { %v1732_v49 = vrot.slane %v1731_v43, 4  ;;  %v1738_v50 = vmul.f32 %v1731_v43, %v1731_v43 }
 0x5db   :  { %v4409_v17 = vpop.f32.mrf.mxu1 }
 0x5dc   :  { %v1733_v22 = vadd.f32 %v1732_v49, %v1731_v43  ;;  %v1739_v53 = vrot.slane %v1738_v50, 4 }
 0x5de   :  { %v1734_v54 = vrot.slane %v1733_v22, 2  ;;  %v1740_v55 = vadd.f32 %v1739_v53, %v1738_v50 }
 0x5e0   :  { %v1735_v56 = vadd.f32 %v1734_v54, %v1733_v22  ;;  %v1741_v58 = vrot.slane %v1740_v55, 2 }
 0x5e2   :  { %v1736_v59 = vrot.slane %v1735_v56, 1  ;;  %v1742_v60 = vadd.f32 %v1741_v58, %v1740_v55 }
 0x5e4   :  { %v1737_v61 = vadd.f32 %v1736_v59, %v1735_v56  ;;  %v1743_v62 = vrot.slane %v1742_v60, 1 }
 0x5e6   :  { %v1744_v11 = vadd.f32 %v1743_v62, %v1742_v60  ;;  %v1745_v63 = vmul.f32 0.125, %v1737_v61 }
 0x5e8   :  { %v1746_v1 = vmul.f32 0.125, %v1744_v11  ;;  %v1747_v2 = vmul.f32 %v1745_v63, %v1745_v63  ;;  %v1750_v7 = vsub.f32 %v1731_v43, %v1745_v63 }
 0x5ea   :  { %v1748_v4 = vsub.f32 %v1746_v1, %v1747_v2 }
 0x5ec   :  { %v1749_v5 = vmax.f32 %v1748_v4, 0.0 }
 0x5ee   :  { %v1751_v6 = vadd.f32 1e-05, %v1749_v5 }
 0x5f0   :  { %4852 = vrsqrt.f32 %v1751_v6  ;;  %v1905_v6 = vrot.slane %v5875_v36, %v5853_v14 }
 0x5fd   :  { %v4853_v9 = vpop.eup %4852 }
 0x5fe   :  { %v1753_v10 = vmul.f32 %v4853_v9, %v1750_v7  ;;  %v1910_v9 = vrot.slane %v5875_v36, %v5856_v16  ;;  %v4733_v36 = vld [vmem:[#allocation19 + $0x20] sm:$0xff]  }
 0x600   :  { %v1758_v18 = vmul.f32 %v1757_v8, %v1753_v10 }
 0x602   :  { %v1763_v21 = vadd.f32 %v1762_v13, %v1758_v18 }
 0x604   :  { %v1764_v24 = vadd.f32 %v1763_v21, %v5800_v39  ;;  %v4726_v39 = vld [vmem:[#allocation17 + $0x18] sm:$0xff]  }
 0x605   :  { %4439 = vmatpush3.bf16.msra.mxu1 %v4726_v39  ;;  %v4730_v21 = vld [vmem:[#allocation19 + $0x38] sm:$0xff]  }
 0x606   :  { %v1769_v25 = vadd.f32 %v1768_v23, %v1764_v24  ;;  %4440 = vmatprep.subr.bf16.mxu1 %v5466_v3  ;;  %v4731_v23 = vld [vmem:[#allocation19 + $0x30] sm:$0xff]   ;;  %v4732_v24 = vld [vmem:[#allocation19 + $0x28] sm:$0xff]  }
 0x608   :  { %v1770_v26 = vpack.c.bf16 %v1769_v25, %v1769_v25  ;;  %v4734_v25 = vld [vmem:[#allocation19 + $0x18] sm:$0xff]  }
 0x609   :  { %4441 = vmatpush3.bf16.msra.mxu1 %v4727_v15 }
 0x60a   :  { %4427 = vmatmul.mubr.bf16.vlgmr.msra.gmra.mxu0 %v1770_v26  ;;  %4442 = vmatprep.subr.bf16.mxu1 %v5466_v3  ;;  %v4735_v26 = vld [vmem:[#allocation19 + $0x10] sm:$0xff]  }
 0x60b   :  { %4466 = vmatprep.mubr.msk.bf16.mxu0 %vm5467_vm0, %v5466_v3  ;;  %4451 = vmatpush3.bf16.msra.mxu0 %v4730_v21  ;;  %v4739_v21 = vld [vmem:[%s6121_s26 + $0x30] sm:$0xff]  }
 0x60c   :  { %4452 = vmatprep.subr.bf16.mxu0 %v5466_v3 }
 0x60d   :  { %4443 = vmatpush3.bf16.msra.mxu1 %v4728_v32 }
 0x60e   :  { %4444 = vmatprep.subr.bf16.mxu1 %v5466_v3 }
 0x60f   :  { %4453 = vmatpush3.bf16.msra.mxu0 %v4731_v23  ;;  %v4740_v23 = vld [vmem:[%s6121_s26 + $0x28] sm:$0xff]  }
 0x610   :  { %4454 = vmatprep.subr.bf16.mxu0 %v5466_v3 }
 0x611   :  { %4445 = vmatpush3.bf16.msra.mxu1 %v4729_v33 }
 0x612   :  { %4470 = vmatprep.subr.bf16.mxu1 %v5466_v3 }
 0x613   :  { %4455 = vmatpush3.bf16.msra.mxu0 %v4732_v24  ;;  %v4742_v24 = vld [vmem:[%s6121_s26 + $0x18] sm:$0xff]  }
 0x614   :  { %4456 = vmatprep.subr.bf16.mxu0 %v5466_v3 }
 0x617   :  { %4457 = vmatpush3.bf16.msra.mxu0 %v4733_v36  ;;  %v4743_v36 = vld [vmem:[%s6121_s26 + $0x10] sm:$0xff]  }
 0x618   :  { %4458 = vmatprep.subr.bf16.mxu0 %v5466_v3 }
 0x61b   :  { %4459 = vmatpush3.bf16.msra.mxu0 %v4734_v25  ;;  %v4744_v25 = vld [vmem:[%s6121_s26 + $0x8] sm:$0xff]  }
 0x61c   :  { %4460 = vmatprep.subr.bf16.mxu0 %v5466_v3 }
 0x61f   :  { %4461 = vmatpush3.bf16.msra.mxu0 %v4735_v26  ;;  %v4745_v26 = vld [vmem:[%s6121_s26] sm:$0xff]  }
 0x620   :  { %4462 = vmatprep.subr.bf16.mxu0 %v5466_v3 }
 0x623   :  { %4463 = vmatpush3.bf16.msra.mxu0 %v4736_v28  ;;  %v2080_v28 = vrot.slane %v5915_v30, %v5848_v47 }
 0x624   :  { %4464 = vmatprep.subr.bf16.mxu0 %v5466_v3 }
 0x627   :  { %4465 = vmatpush3.bf16.msra.mxu0 %v4737_v51 }
 0x628   :  { %4490 = vmatprep.subr.bf16.mxu0 %v5466_v3 }
 0x6ca   :  { %v1873_v35 = vpop.f32.mrf.mxu0 }
 0x6cb   :  { %v1874_v41 = vadd.f32 %v1873_v35, %v1790_v34 }
 0x6cc   :  { %v4428_v37 = vpop.f32.mrf.mxu0 }
 0x6cd   :  { %v1879_v42 = vmax.f32 %v1874_v41, 0.0 }
 0x6ce   :  { %v1876_v52 = vpop.f32.mrf.mxu0 }
 0x6cf   :  { %v1880_v43 = vrot.slane %v1879_v42, 4  ;;  %v1886_v48 = vmul.f32 %v1879_v42, %v1879_v42 }
 0x6d0   :  { %v4429_v49 = vpop.f32.mrf.mxu0 }
 0x6d1   :  { %v1881_v50 = vadd.f32 %v1880_v43, %v1879_v42  ;;  %v1887_v17 = vrot.slane %v1886_v48, 4 }
 0x6d3   :  { %v1882_v22 = vrot.slane %v1881_v50, 2  ;;  %v1888_v53 = vadd.f32 %v1887_v17, %v1886_v48 }
 0x6d5   :  { %v1883_v54 = vadd.f32 %v1882_v22, %v1881_v50  ;;  %v1889_v55 = vrot.slane %v1888_v53, 2 }
 0x6d7   :  { %v1884_v56 = vrot.slane %v1883_v54, 1  ;;  %v1890_v58 = vadd.f32 %v1889_v55, %v1888_v53 }
 0x6d9   :  { %v1885_v59 = vadd.f32 %v1884_v56, %v1883_v54  ;;  %v1891_v60 = vrot.slane %v1890_v58, 1 }
 0x6db   :  { %v1892_v61 = vadd.f32 %v1891_v60, %v1890_v58  ;;  %v1893_v62 = vmul.f32 0.125, %v1885_v59 }
 0x6dd   :  { %v1894_v11 = vmul.f32 0.125, %v1892_v61  ;;  %v1895_v63 = vmul.f32 %v1893_v62, %v1893_v62  ;;  %v1898_v5 = vsub.f32 %v1879_v42, %v1893_v62 }
 0x6df   :  { %v1896_v1 = vsub.f32 %v1894_v11, %v1895_v63  ;;  %v2047_v63 = vrot.slane %v5915_v30, %v5823_v19 }
 0x6e1   :  { %v1897_v2 = vmax.f32 %v1896_v1, 0.0 }
 0x6e3   :  { %v1899_v4 = vadd.f32 1e-05, %v1897_v2 }
 0x6e5   :  { %4854 = vrsqrt.f32 %v1899_v4  ;;  %v2052_v4 = vrot.slane %v5915_v30, %v5826_v20 }
 0x6f2   :  { %v4855_v7 = vpop.eup %4854 }
 0x6f3   :  { %v1901_v8 = vmul.f32 %v4855_v7, %v1898_v5  ;;  %v2058_v7 = vrot.slane %v5915_v30, %v5833_v27 }
 0x6f5   :  { %v1906_v10 = vmul.f32 %v1905_v6, %v1901_v8 }
 0x6f7   :  { %v1911_v13 = vadd.f32 %v1910_v9, %v1906_v10 }
 0x6f9   :  { %v5902_v18 = vpack.c.bf16 %v1911_v13, %v1911_v13  ;;  %v4738_v13 = vld [vmem:[%s6121_s26 + $0x38] sm:$0xff]  }
 0x6fb   :  { %4447 = vmatmul.mubr.bf16.vlgmr.msra.gmra.mxu1 %v5902_v18 }
 0x6fc   :  { %4486 = vmatprep.mubr.msk.bf16.mxu1 %vm5467_vm0, %v5466_v3  ;;  %4471 = vmatpush3.bf16.msra.mxu1 %v4738_v13  ;;  %v4752_v13 = vld [vmem:[#allocation22 + $0x8] sm:$0xff]  }
 0x6fd   :  { %4472 = vmatprep.subr.bf16.mxu1 %v5466_v3 }
 0x700   :  { %4473 = vmatpush3.bf16.msra.mxu1 %v4739_v21  ;;  %v4753_v21 = vld [vmem:[#allocation22] sm:$0xff]  }
 0x701   :  { %4474 = vmatprep.subr.bf16.mxu1 %v5466_v3 }
 0x704   :  { %4475 = vmatpush3.bf16.msra.mxu1 %v4740_v23  ;;  %v5960_v23 = vld [vmem:[#allocation23] sm:$0xff] }
 0x705   :  { %4476 = vmatprep.subr.bf16.mxu1 %v5466_v3 }
 0x7bb   :  { %v2015_v39 = vpop.f32.mrf.mxu1 }
 0x7bc   :  { %v2016_v15 = vadd.f32 %v2015_v39, %v1932_v31 }
 0x7bd   :  { %v4448_v32 = vpop.f32.mrf.mxu1 }
 0x7be   :  { %v2021_v33 = vmax.f32 %v2016_v15, 0.0 }
 0x7bf   :  { %v2018_v34 = vpop.f32.mrf.mxu1 }
 0x7c0   :  { %v2022_v35 = vrot.slane %v2021_v33, 4  ;;  %v2028_v41 = vmul.f32 %v2021_v33, %v2021_v33 }
 0x7c1   :  { %v4449_v37 = vpop.f32.mrf.mxu1 }
 0x7c2   :  { %v2023_v42 = vadd.f32 %v2022_v35, %v2021_v33  ;;  %v2029_v52 = vrot.slane %v2028_v41, 4 }
 0x7c4   :  { %v2024_v43 = vrot.slane %v2023_v42, 2  ;;  %v2030_v48 = vadd.f32 %v2029_v52, %v2028_v41 }
 0x7c6   :  { %v2025_v49 = vadd.f32 %v2024_v43, %v2023_v42  ;;  %v2031_v50 = vrot.slane %v2030_v48, 2 }
 0x7c8   :  { %v2026_v17 = vrot.slane %v2025_v49, 1  ;;  %v2032_v22 = vadd.f32 %v2031_v50, %v2030_v48 }
 0x7ca   :  { %v2027_v53 = vadd.f32 %v2026_v17, %v2025_v49  ;;  %v2033_v54 = vrot.slane %v2032_v22, 1 }
 0x7cc   :  { %v2034_v55 = vadd.f32 %v2033_v54, %v2032_v22  ;;  %v2035_v56 = vmul.f32 0.125, %v2027_v53 }
 0x7ce   :  { %v2036_v58 = vmul.f32 0.125, %v2034_v55  ;;  %v2037_v59 = vmul.f32 %v2035_v56, %v2035_v56  ;;  %v2040_v11 = vsub.f32 %v2021_v33, %v2035_v56 }
 0x7d0   :  { %v2038_v60 = vsub.f32 %v2036_v58, %v2037_v59 }
 0x7d2   :  { %v2039_v61 = vmax.f32 %v2038_v60, 0.0 }
 0x7d4   :  { %v2041_v62 = vadd.f32 1e-05, %v2039_v61 }
 0x7d6   :  { %4856 = vrsqrt.f32 %v2041_v62  ;;  %v2195_v62 = vrot.slane %v5915_v30, %v5853_v14 }
 0x7e3   :  { %v4857_v1 = vpop.eup %4856 }
 0x7e4   :  { %v2043_v2 = vmul.f32 %v4857_v1, %v2040_v11  ;;  %v2200_v1 = vrot.slane %v5915_v30, %v5856_v16  ;;  %v4749_v30 = vld [vmem:[#allocation22 + $0x20] sm:$0xff]  }
 0x7e6   :  { %v2048_v5 = vmul.f32 %v2047_v63, %v2043_v2 }
 0x7e8   :  { %v2053_v6 = vadd.f32 %v2052_v4, %v2048_v5 }
 0x7ea   :  { %v2054_v8 = vadd.f32 %v2053_v6, %v5798_v38  ;;  %v4741_v38 = vld [vmem:[%s6121_s26 + $0x20] sm:$0xff]   ;;  %v4746_v6 = vld [vmem:[#allocation22 + $0x38] sm:$0xff]  }
 0x7eb   :  { %4477 = vmatpush3.bf16.msra.mxu1 %v4741_v38  ;;  %v2222_v38 = vrot.slane %v5960_v23, %v5816_v0 }
 0x7ec   :  { %v2059_v9 = vadd.f32 %v2058_v7, %v2054_v8  ;;  %4478 = vmatprep.subr.bf16.mxu1 %v5466_v3  ;;  %v4747_v7 = vld [vmem:[#allocation22 + $0x30] sm:$0xff]   ;;  %v4748_v8 = vld [vmem:[#allocation22 + $0x28] sm:$0xff]  }
 0x7ee   :  { %v2060_v10 = vpack.c.bf16 %v2059_v9, %v2059_v9  ;;  %v4750_v9 = vld [vmem:[#allocation22 + $0x18] sm:$0xff]  }
 0x7ef   :  { %4479 = vmatpush3.bf16.msra.mxu1 %v4742_v24 }
 0x7f0   :  { %4467 = vmatmul.mubr.bf16.vlgmr.msra.gmra.mxu0 %v2060_v10  ;;  %4480 = vmatprep.subr.bf16.mxu1 %v5466_v3  ;;  %v4751_v10 = vld [vmem:[#allocation22 + $0x10] sm:$0xff]  }
 0x7f1   :  { %4506 = vmatprep.mubr.msk.bf16.mxu0 %vm5467_vm0, %v5466_v3  ;;  %4491 = vmatpush3.bf16.msra.mxu0 %v4746_v6  ;;  %v4756_v6 = vld [vmem:[#allocation25 + $0x28] sm:$0xff]  }
 0x7f2   :  { %4492 = vmatprep.subr.bf16.mxu0 %v5466_v3 }
 0x7f3   :  { %4481 = vmatpush3.bf16.msra.mxu1 %v4743_v36 }
 0x7f4   :  { %4482 = vmatprep.subr.bf16.mxu1 %v5466_v3 }
 0x7f5   :  { %4493 = vmatpush3.bf16.msra.mxu0 %v4747_v7  ;;  %v4757_v7 = vld [vmem:[#allocation25 + $0x20] sm:$0xff]  }
 0x7f6   :  { %4494 = vmatprep.subr.bf16.mxu0 %v5466_v3 }
 0x7f7   :  { %4483 = vmatpush3.bf16.msra.mxu1 %v4744_v25 }
 0x7f8   :  { %4484 = vmatprep.subr.bf16.mxu1 %v5466_v3 }
 0x7f9   :  { %4495 = vmatpush3.bf16.msra.mxu0 %v4748_v8  ;;  %v4759_v8 = vld [vmem:[#allocation25 + $0x10] sm:$0xff]  }
 0x7fa   :  { %4496 = vmatprep.subr.bf16.mxu0 %v5466_v3 }
 0x7fb   :  { %4485 = vmatpush3.bf16.msra.mxu1 %v4745_v26 }
 0x7fc   :  { %4510 = vmatprep.subr.bf16.mxu1 %v5466_v3 }
 0x7fd   :  { %4497 = vmatpush3.bf16.msra.mxu0 %v4749_v30  ;;  %v4760_v30 = vld [vmem:[#allocation25 + $0x8] sm:$0xff]  }
 0x7fe   :  { %4498 = vmatprep.subr.bf16.mxu0 %v5466_v3 }
 0x801   :  { %4499 = vmatpush3.bf16.msra.mxu0 %v4750_v9  ;;  %v4761_v9 = vld [vmem:[#allocation25] sm:$0xff]  }
 0x802   :  { %4500 = vmatprep.subr.bf16.mxu0 %v5466_v3 }
 0x805   :  { %4501 = vmatpush3.bf16.msra.mxu0 %v4751_v10  ;;  %v2370_v10 = vrot.slane %v5960_v23, %v5848_v47 }
 0x806   :  { %4502 = vmatprep.subr.bf16.mxu0 %v5466_v3 }
 0x809   :  { %4503 = vmatpush3.bf16.msra.mxu0 %v4752_v13 }
 0x80a   :  { %4504 = vmatprep.subr.bf16.mxu0 %v5466_v3 }
 0x80d   :  { %4505 = vmatpush3.bf16.msra.mxu0 %v4753_v21 }
 0x80e   :  { %4530 = vmatprep.subr.bf16.mxu0 %v5466_v3 }
 0x8b0   :  { %v2163_v51 = vpop.f32.mrf.mxu0 }
 0x8b1   :  { %v2164_v31 = vadd.f32 %v2163_v51, %v2080_v28 }
 0x8b2   :  { %v4468_v39 = vpop.f32.mrf.mxu0 }
 0x8b3   :  { %v2169_v15 = vmax.f32 %v2164_v31, 0.0 }
 0x8b4   :  { %v2166_v32 = vpop.f32.mrf.mxu0 }
 0x8b5   :  { %v2170_v33 = vrot.slane %v2169_v15, 4  ;;  %v2176_v34 = vmul.f32 %v2169_v15, %v2169_v15 }
 0x8b6   :  { %v4469_v35 = vpop.f32.mrf.mxu0 }
 0x8b7   :  { %v2171_v41 = vadd.f32 %v2170_v33, %v2169_v15  ;;  %v2177_v37 = vrot.slane %v2176_v34, 4 }
 0x8b9   :  { %v2172_v42 = vrot.slane %v2171_v41, 2  ;;  %v2178_v52 = vadd.f32 %v2177_v37, %v2176_v34 }
 0x8bb   :  { %v2173_v43 = vadd.f32 %v2172_v42, %v2171_v41  ;;  %v2179_v48 = vrot.slane %v2178_v52, 2 }
 0x8bd   :  { %v2174_v49 = vrot.slane %v2173_v43, 1  ;;  %v2180_v50 = vadd.f32 %v2179_v48, %v2178_v52 }
 0x8bf   :  { %v2175_v17 = vadd.f32 %v2174_v49, %v2173_v43  ;;  %v2181_v22 = vrot.slane %v2180_v50, 1 }
 0x8c1   :  { %v2182_v53 = vadd.f32 %v2181_v22, %v2180_v50  ;;  %v2183_v54 = vmul.f32 0.125, %v2175_v17 }
 0x8c3   :  { %v2184_v55 = vmul.f32 0.125, %v2182_v53  ;;  %v2185_v56 = vmul.f32 %v2183_v54, %v2183_v54  ;;  %v2188_v61 = vsub.f32 %v2169_v15, %v2183_v54 }
 0x8c5   :  { %v2186_v58 = vsub.f32 %v2184_v55, %v2185_v56  ;;  %v2337_v56 = vrot.slane %v5960_v23, %v5823_v19 }
 0x8c7   :  { %v2187_v59 = vmax.f32 %v2186_v58, 0.0 }
 0x8c9   :  { %v2189_v60 = vadd.f32 1e-05, %v2187_v59 }
 0x8cb   :  { %4858 = vrsqrt.f32 %v2189_v60  ;;  %v2342_v60 = vrot.slane %v5960_v23, %v5826_v20 }
 0x8d8   :  { %v4859_v11 = vpop.eup %4858 }
 0x8d9   :  { %v2191_v63 = vmul.f32 %v4859_v11, %v2188_v61  ;;  %v2348_v11 = vrot.slane %v5960_v23, %v5833_v27 }
 0x8db   :  { %v2196_v2 = vmul.f32 %v2195_v62, %v2191_v63 }
 0x8dd   :  { %v2201_v4 = vadd.f32 %v2200_v1, %v2196_v2 }
 0x8df   :  { %v2202_v5 = vpack.c.bf16 %v2201_v4, %v2201_v4  ;;  %v4754_v4 = vld [vmem:[#allocation25 + $0x38] sm:$0xff]  }
 0x8e1   :  { %4487 = vmatmul.mubr.bf16.vlgmr.msra.gmra.mxu1 %v2202_v5  ;;  %v4755_v5 = vld [vmem:[#allocation25 + $0x30] sm:$0xff]  }
 0x8e2   :  { %4526 = vmatprep.mubr.msk.bf16.mxu1 %vm5467_vm0, %v5466_v3  ;;  %4511 = vmatpush3.bf16.msra.mxu1 %v4754_v4  ;;  %v4769_v4 = vld [vmem:[#allocation26] sm:$0xff]  }
 0x8e3   :  { %4512 = vmatprep.subr.bf16.mxu1 %v5466_v3 }
 0x8e6   :  { %4513 = vmatpush3.bf16.msra.mxu1 %v4755_v5  ;;  %v5994_v5 = vld [vmem:[#allocation28] sm:$0xff] }
 0x8e7   :  { %4514 = vmatprep.subr.bf16.mxu1 %v5466_v3 }
 0x8ea   :  { %4515 = vmatpush3.bf16.msra.mxu1 %v4756_v6  ;;  %v2512_v6 = vrot.slane %v5994_v5, %v5816_v0 }
 0x8eb   :  { %4516 = vmatprep.subr.bf16.mxu1 %v5466_v3 }
 0x8ee   :  { %4517 = vmatpush3.bf16.msra.mxu1 %v4757_v7 }
 0x8ef   :  { %4518 = vmatprep.subr.bf16.mxu1 %v5466_v3 }
 0x9a1   :  { %v2305_v24 = vpop.f32.mrf.mxu1 }
 0x9a2   :  { %v2306_v36 = vadd.f32 %v2305_v24, %v2222_v38 }
 0x9a3   :  { %v4488_v25 = vpop.f32.mrf.mxu1 }
 0x9a4   :  { %v2311_v26 = vmax.f32 %v2306_v36, 0.0 }
 0x9a5   :  { %v2308_v28 = vpop.f32.mrf.mxu1 }
 0x9a6   :  { %v2312_v51 = vrot.slane %v2311_v26, 4  ;;  %v2318_v31 = vmul.f32 %v2311_v26, %v2311_v26 }
 0x9a7   :  { %v4489_v39 = vpop.f32.mrf.mxu1 }
 0x9a8   :  { %v2313_v15 = vadd.f32 %v2312_v51, %v2311_v26  ;;  %v2319_v32 = vrot.slane %v2318_v31, 4 }
 0x9aa   :  { %v2314_v33 = vrot.slane %v2313_v15, 2  ;;  %v2320_v34 = vadd.f32 %v2319_v32, %v2318_v31 }
 0x9ac   :  { %v2315_v35 = vadd.f32 %v2314_v33, %v2313_v15  ;;  %v2321_v41 = vrot.slane %v2320_v34, 2 }
 0x9ae   :  { %v2316_v37 = vrot.slane %v2315_v35, 1  ;;  %v2322_v42 = vadd.f32 %v2321_v41, %v2320_v34 }
 0x9b0   :  { %v2317_v52 = vadd.f32 %v2316_v37, %v2315_v35  ;;  %v2323_v43 = vrot.slane %v2322_v42, 1 }
 0x9b2   :  { %v2324_v48 = vadd.f32 %v2323_v43, %v2322_v42  ;;  %v2325_v49 = vmul.f32 0.125, %v2317_v52 }
 0x9b4   :  { %v2326_v50 = vmul.f32 0.125, %v2324_v48  ;;  %v2327_v17 = vmul.f32 %v2325_v49, %v2325_v49  ;;  %v2330_v55 = vsub.f32 %v2311_v26, %v2325_v49 }
 0x9b6   :  { %v2328_v22 = vsub.f32 %v2326_v50, %v2327_v17 }
 0x9b8   :  { %v2329_v53 = vmax.f32 %v2328_v22, 0.0 }
 0x9ba   :  { %v2331_v54 = vadd.f32 1e-05, %v2329_v53  ;;  %v2485_v53 = vrot.slane %v5960_v23, %v5853_v14 }
 0x9bc   :  { %4860 = vrsqrt.f32 %v2331_v54 }
 0x9c9   :  { %v4861_v58 = vpop.eup %4860 }
 0x9ca   :  { %v2333_v59 = vmul.f32 %v4861_v58, %v2330_v55 }
 0x9cc   :  { %v2338_v61 = vmul.f32 %v2337_v56, %v2333_v59  ;;  %v2490_v56 = vrot.slane %v5960_v23, %v5856_v16  ;;  %v4766_v23 = vld [vmem:[#allocation26 + $0x18] sm:$0xff]  }
 0x9ce   :  { %v2343_v62 = vadd.f32 %v2342_v60, %v2338_v61  ;;  %v4762_v61 = vld [vmem:[#allocation26 + $0x38] sm:$0xff]  }
 0x9d0   :  { %v2344_v63 = vadd.f32 %v2343_v62, %v5802_v40  ;;  %v4758_v40 = vld [vmem:[#allocation25 + $0x18] sm:$0xff]   ;;  %v4763_v62 = vld [vmem:[#allocation26 + $0x30] sm:$0xff]  }
 0x9d1   :  { %4519 = vmatpush3.bf16.msra.mxu1 %v4758_v40 }
 0x9d2   :  { %v2349_v1 = vadd.f32 %v2348_v11, %v2344_v63  ;;  %4520 = vmatprep.subr.bf16.mxu1 %v5466_v3  ;;  %v4764_v11 = vld [vmem:[#allocation26 + $0x28] sm:$0xff]   ;;  %v4765_v63 = vld [vmem:[#allocation26 + $0x20] sm:$0xff]  }
 0x9d4   :  { %v2350_v2 = vpack.c.bf16 %v2349_v1, %v2349_v1  ;;  %v4767_v1 = vld [vmem:[#allocation26 + $0x10] sm:$0xff]  }
 0x9d5   :  { %4521 = vmatpush3.bf16.msra.mxu1 %v4759_v8 }
 0x9d6   :  { %4507 = vmatmul.mubr.bf16.vlgmr.msra.gmra.mxu0 %v2350_v2  ;;  %4522 = vmatprep.subr.bf16.mxu1 %v5466_v3  ;;  %v4768_v2 = vld [vmem:[#allocation26 + $0x8] sm:$0xff]  }
 0x9d7   :  { %4546 = vmatprep.mubr.msk.bf16.mxu0 %vm5467_vm0, %v5466_v3  ;;  %4531 = vmatpush3.bf16.msra.mxu0 %v4762_v61  ;;  %v4773_v61 = vld [vmem:[#allocation29 + $0x30] sm:$0xff]  }
 0x9d8   :  { %4532 = vmatprep.subr.bf16.mxu0 %v5466_v3 }
 0x9d9   :  { %4523 = vmatpush3.bf16.msra.mxu1 %v4760_v30 }
 0x9da   :  { %4524 = vmatprep.subr.bf16.mxu1 %v5466_v3 }
 0x9db   :  { %4533 = vmatpush3.bf16.msra.mxu0 %v4763_v62  ;;  %v4774_v62 = vld [vmem:[#allocation29 + $0x68] sm:$0xff]  }
 0x9dc   :  { %4534 = vmatprep.subr.bf16.mxu0 %v5466_v3 }
 0x9dd   :  { %4525 = vmatpush3.bf16.msra.mxu1 %v4761_v9 }
 0x9df   :  { %4535 = vmatpush3.bf16.msra.mxu0 %v4764_v11  ;;  %v4775_v11 = vld [vmem:[#allocation29 + $0x28] sm:$0xff]  }
 0x9e0   :  { %4536 = vmatprep.subr.bf16.mxu0 %v5466_v3 }
 0x9e3   :  { %4537 = vmatpush3.bf16.msra.mxu0 %v4765_v63  ;;  %v4776_v63 = vld [vmem:[#allocation29 + $0x60] sm:$0xff]  }
 0x9e4   :  { %4538 = vmatprep.subr.bf16.mxu0 %v5466_v3 }
 0x9e7   :  { %4539 = vmatpush3.bf16.msra.mxu0 %v4766_v23  ;;  %v4778_v23 = vld [vmem:[#allocation29 + $0x58] sm:$0xff]  }
 0x9e8   :  { %4540 = vmatprep.subr.bf16.mxu0 %v5466_v3 }
 0x9eb   :  { %4541 = vmatpush3.bf16.msra.mxu0 %v4767_v1  ;;  %v4779_v1 = vld [vmem:[#allocation29 + $0x18] sm:$0xff]  }
 0x9ec   :  { %4542 = vmatprep.subr.bf16.mxu0 %v5466_v3 }
 0x9ef   :  { %4543 = vmatpush3.bf16.msra.mxu0 %v4768_v2  ;;  %v4780_v2 = vld [vmem:[#allocation29 + $0x50] sm:$0xff]  }
 0x9f0   :  { %4544 = vmatprep.subr.bf16.mxu0 %v5466_v3 }
 0x9f3   :  { %4545 = vmatpush3.bf16.msra.mxu0 %v4769_v4  ;;  %v4781_v4 = vld [vmem:[#allocation29 + $0x10] sm:$0xff]  }
 0x9f4   :  { %4550 = vmatprep.subr.bf16.mxu0 %v5466_v3 }
 0xa96   :  { %v2453_v13 = vpop.f32.mrf.mxu0 }
 0xa97   :  { %v2454_v21 = vadd.f32 %v2453_v13, %v2370_v10 }
 0xa98   :  { %v4508_v38 = vpop.f32.mrf.mxu0 }
 0xa99   :  { %v2459_v24 = vmax.f32 %v2454_v21, 0.0 }
 0xa9a   :  { %v2456_v36 = vpop.f32.mrf.mxu0 }
 0xa9b   :  { %v2460_v25 = vrot.slane %v2459_v24, 4  ;;  %v2466_v26 = vmul.f32 %v2459_v24, %v2459_v24 }
 0xa9c   :  { %v4509_v28 = vpop.f32.mrf.mxu0 }
 0xa9d   :  { %v2461_v51 = vadd.f32 %v2460_v25, %v2459_v24  ;;  %v2467_v31 = vrot.slane %v2466_v26, 4 }
 0xa9f   :  { %v2462_v39 = vrot.slane %v2461_v51, 2  ;;  %v2468_v15 = vadd.f32 %v2467_v31, %v2466_v26 }
 0xaa1   :  { %v2463_v32 = vadd.f32 %v2462_v39, %v2461_v51  ;;  %v2469_v33 = vrot.slane %v2468_v15, 2 }
 0xaa3   :  { %v2464_v34 = vrot.slane %v2463_v32, 1  ;;  %v2470_v35 = vadd.f32 %v2469_v33, %v2468_v15 }
 0xaa5   :  { %v2465_v41 = vadd.f32 %v2464_v34, %v2463_v32  ;;  %v2471_v37 = vrot.slane %v2470_v35, 1 }
 0xaa7   :  { %v2472_v42 = vadd.f32 %v2471_v37, %v2470_v35  ;;  %v2473_v52 = vmul.f32 0.125, %v2465_v41 }
 0xaa9   :  { %v2474_v43 = vmul.f32 0.125, %v2472_v42  ;;  %v2475_v48 = vmul.f32 %v2473_v52, %v2473_v52  ;;  %v2478_v22 = vsub.f32 %v2459_v24, %v2473_v52 }
 0xaab   :  { %v2476_v49 = vsub.f32 %v2474_v43, %v2475_v48  ;;  %v2627_v43 = vrot.slane %v5994_v5, %v5823_v19 }
 0xaad   :  { %v2477_v50 = vmax.f32 %v2476_v49, 0.0 }
 0xaaf   :  { %v2479_v17 = vadd.f32 1e-05, %v2477_v50  ;;  %v2632_v50 = vrot.slane %v5994_v5, %v5826_v20 }
 0xab1   :  { %4862 = vrsqrt.f32 %v2479_v17 }
 0xabe   :  { %v4863_v54 = vpop.eup %4862 }
 0xabf   :  { %v2481_v55 = vmul.f32 %v4863_v54, %v2478_v22 }
 0xac1   :  { %v2486_v58 = vmul.f32 %v2485_v53, %v2481_v55  ;;  %v2638_v53 = vrot.slane %v5994_v5, %v5833_v27 }
 0xac3   :  { %v2491_v59 = vadd.f32 %v2490_v56, %v2486_v58  ;;  %v4770_v58 = vld [vmem:[#allocation29 + $0x78] sm:$0xff]  }
 0xac4   :  { %4237 = vmatprep.subr.bf16.mxu1 %v4770_v58 }
 0xac5   :  { %v2492_v60 = vpack.c.bf16 %v2491_v59, %v2491_v59  ;;  %v4771_v59 = vld [vmem:[#allocation29 + $0x38] sm:$0xff]  }
 0xac7   :  { %4527 = vmatmul.mubr.bf16.vlgmr.msra.gmra.mxu1 %v2492_v60  ;;  %v4772_v60 = vld [vmem:[#allocation29 + $0x70] sm:$0xff]  }
 0xac8   :  { %4238 = vmatpush3.bf16.msra.mxu1 %v4771_v59  ;;  %v4786_v59 = vld [vmem:[#allocation31 + $0x38] sm:$0xff]  }
 0xac9   :  { %4239 = vmatprep.subr.bf16.mxu1 %v4772_v60  ;;  %v4787_v60 = vld [vmem:[#allocation31 + $0x30] sm:$0xff]  }
 0xacc   :  { %4240 = vmatpush3.bf16.msra.mxu1 %v4773_v61  ;;  %v4788_v61 = vld [vmem:[#allocation31 + $0x28] sm:$0xff]  }
 0xacd   :  { %4241 = vmatprep.subr.bf16.mxu1 %v4774_v62  ;;  %v4790_v62 = vld [vmem:[#allocation31 + $0x18] sm:$0xff]  }
 0xad0   :  { %4242 = vmatpush3.bf16.msra.mxu1 %v4775_v11  ;;  %v4792_v11 = vld [vmem:[#allocation31 + $0x8] sm:$0xff]  }
 0xad1   :  { %4243 = vmatprep.subr.bf16.mxu1 %v4776_v63  ;;  %v4793_v63 = vld [vmem:[#allocation31] sm:$0xff]  }
 0xb87   :  { %v2595_v7 = vpop.f32.mrf.mxu1 }
 0xb88   :  { %v2596_v40 = vadd.f32 %v2595_v7, %v2512_v6  ;;  %v4782_v6 = vld [vmem:[#allocation29 + $0x48] sm:$0xff]  }
 0xb89   :  { %v4528_v8 = vpop.f32.mrf.mxu1  ;;  %v4783_v7 = vld [vmem:[#allocation29 + $0x8] sm:$0xff]  }
 0xb8a   :  { %v2601_v30 = vmax.f32 %v2596_v40, 0.0  ;;  %v4784_v40 = vld [vmem:[#allocation29 + $0x40] sm:$0xff]  }
 0xb8b   :  { %v2598_v9 = vpop.f32.mrf.mxu1  ;;  %v4785_v8 = vld [vmem:[#allocation29] sm:$0xff]  }
 0xb8c   :  { %v2602_v10 = vrot.slane %v2601_v30, 4  ;;  %v2608_v13 = vmul.f32 %v2601_v30, %v2601_v30 }
 0xb8d   :  { %v4529_v21 = vpop.f32.mrf.mxu1 }
 0xb8e   :  { %v2603_v38 = vadd.f32 %v2602_v10, %v2601_v30  ;;  %v2609_v24 = vrot.slane %v2608_v13, 4 }
 0xb90   :  { %v2604_v36 = vrot.slane %v2603_v38, 2  ;;  %v2610_v25 = vadd.f32 %v2609_v24, %v2608_v13 }
 0xb92   :  { %v2605_v26 = vadd.f32 %v2604_v36, %v2603_v38  ;;  %v2611_v28 = vrot.slane %v2610_v25, 2 }
 0xb94   :  { %v2606_v51 = vrot.slane %v2605_v26, 1  ;;  %v2612_v31 = vadd.f32 %v2611_v28, %v2610_v25 }
 0xb96   :  { %v2607_v39 = vadd.f32 %v2606_v51, %v2605_v26  ;;  %v2613_v15 = vrot.slane %v2612_v31, 1 }
 0xb98   :  { %v2614_v32 = vadd.f32 %v2613_v15, %v2612_v31  ;;  %v2615_v33 = vmul.f32 0.125, %v2607_v39 }
 0xb9a   :  { %v2616_v34 = vmul.f32 0.125, %v2614_v32  ;;  %v2617_v35 = vmul.f32 %v2615_v33, %v2615_v33  ;;  %v2620_v52 = vsub.f32 %v2601_v30, %v2615_v33  ;;  %v2660_v30 = vrot.slane %v5994_v5, %v5848_v47 }
 0xb9c   :  { %v2618_v41 = vsub.f32 %v2616_v34, %v2617_v35 }
 0xb9e   :  { %v2619_v37 = vmax.f32 %v2618_v41, 0.0 }
 0xba0   :  { %v2621_v42 = vadd.f32 1e-05, %v2619_v37 }
 0xba2   :  { %4864 = vrsqrt.f32 %v2621_v42 }
 0xbaf   :  { %v4865_v48 = vpop.eup %4864 }
 0xbb0   :  { %v2623_v49 = vmul.f32 %v4865_v48, %v2620_v52 }
 0xbb2   :  { %v2628_v17 = vmul.f32 %v2627_v43, %v2623_v49 }
 0xbb4   :  { %v2633_v22 = vadd.f32 %v2632_v50, %v2628_v17  ;;  %v2775_v17 = vrot.slane %v5994_v5, %v5853_v14 }
 0xbb6   :  { %v2634_v54 = vadd.f32 %v2633_v22, %v5804_v44  ;;  %v4777_v44 = vld [vmem:[#allocation29 + $0x20] sm:$0xff]  }
 0xbb7   :  { %4244 = vmatpush3.bf16.msra.mxu1 %v4777_v44  ;;  %v6023_v44 = vld [vmem:[%s6122_s28] sm:$0xff] }
 0xbb8   :  { %v2639_v55 = vadd.f32 %v2638_v53, %v2634_v54  ;;  %4245 = vmatprep.subr.bf16.mxu1 %v4778_v23  ;;  %v2780_v54 = vrot.slane %v5994_v5, %v5856_v16  ;;  %v4789_v5 = vld [vmem:[#allocation31 + $0x20] sm:$0xff]  }
 0xbba   :  { %v2640_v56 = vpack.c.bf16 %v2639_v55, %v2639_v55 }
 0xbbb   :  { %4246 = vmatpush3.bf16.msra.mxu1 %v4779_v1  ;;  %v2818_v1 = vrot.slane %v6023_v44, %v5816_v0 }
 0xbbc   :  { %4547 = vmatmul.mubr.bf16.vlgmr.msra.gmra.mxu0 %v2640_v56  ;;  %4247 = vmatprep.subr.bf16.mxu1 %v4780_v2 }
 0xbbd   :  { %4566 = vmatprep.mubr.msk.bf16.mxu0 %vm5467_vm0, %v5466_v3  ;;  %4551 = vmatpush3.bf16.msra.mxu0 %v4786_v59  ;;  %v4798_v59 = vld [vmem:[#allocation32 + $0x68] sm:$0xff]  }
 0xbbe   :  { %4552 = vmatprep.subr.bf16.mxu0 %v5466_v3 }
 0xbbf   :  { %4248 = vmatpush3.bf16.msra.mxu1 %v4781_v4 }
 0xbc0   :  { %4249 = vmatprep.subr.bf16.mxu1 %v4782_v6 }
 0xbc1   :  { %4553 = vmatpush3.bf16.msra.mxu0 %v4787_v60  ;;  %v4799_v60 = vld [vmem:[#allocation32 + $0x28] sm:$0xff]  }
 0xbc2   :  { %4554 = vmatprep.subr.bf16.mxu0 %v5466_v3 }
 0xbc3   :  { %4250 = vmatpush3.bf16.msra.mxu1 %v4783_v7 }
 0xbc4   :  { %4251 = vmatprep.subr.bf16.mxu1 %v4784_v40 }
 0xbc5   :  { %4555 = vmatpush3.bf16.msra.mxu0 %v4788_v61  ;;  %v4800_v61 = vld [vmem:[#allocation32 + $0x60] sm:$0xff]  }
 0xbc6   :  { %4556 = vmatprep.subr.bf16.mxu0 %v5466_v3 }
 0xbc7   :  { %4252 = vmatpush3.bf16.msra.mxu1 %v4785_v8 }
 0xbc9   :  { %4557 = vmatpush3.bf16.msra.mxu0 %v4789_v5  ;;  %v4802_v5 = vld [vmem:[#allocation32 + $0x58] sm:$0xff]  }
 0xbca   :  { %4558 = vmatprep.subr.bf16.mxu0 %v5466_v3 }
 0xbcd   :  { %4559 = vmatpush3.bf16.msra.mxu0 %v4790_v62  ;;  %v4803_v62 = vld [vmem:[#allocation32 + $0x18] sm:$0xff]  }
 0xbce   :  { %4560 = vmatprep.subr.bf16.mxu0 %v5466_v3 }
 0xc7c   :  { %v2743_v9 = vpop.f32.mrf.mxu0 }
 0xc7d   :  { %v2744_v10 = vadd.f32 %v2743_v9, %v2660_v30 }
 0xc7e   :  { %v4548_v13 = vpop.f32.mrf.mxu0 }
 0xc7f   :  { %v2749_v21 = vmax.f32 %v2744_v10, 0.0 }
 0xc80   :  { %v2746_v38 = vpop.f32.mrf.mxu0 }
 0xc81   :  { %v2750_v24 = vrot.slane %v2749_v21, 4  ;;  %v2756_v36 = vmul.f32 %v2749_v21, %v2749_v21 }
 0xc82   :  { %v4549_v25 = vpop.f32.mrf.mxu0 }
 0xc83   :  { %v2751_v26 = vadd.f32 %v2750_v24, %v2749_v21  ;;  %v2757_v28 = vrot.slane %v2756_v36, 4 }
 0xc85   :  { %v2752_v51 = vrot.slane %v2751_v26, 2  ;;  %v2758_v31 = vadd.f32 %v2757_v28, %v2756_v36 }
 0xc87   :  { %v2753_v39 = vadd.f32 %v2752_v51, %v2751_v26  ;;  %v2759_v15 = vrot.slane %v2758_v31, 2 }
 0xc89   :  { %v2754_v32 = vrot.slane %v2753_v39, 1  ;;  %v2760_v33 = vadd.f32 %v2759_v15, %v2758_v31 }
 0xc8b   :  { %v2755_v34 = vadd.f32 %v2754_v32, %v2753_v39  ;;  %v2761_v35 = vrot.slane %v2760_v33, 1 }
 0xc8d   :  { %v2762_v41 = vadd.f32 %v2761_v35, %v2760_v33  ;;  %v2763_v37 = vmul.f32 0.125, %v2755_v34 }
 0xc8f   :  { %v2764_v42 = vmul.f32 0.125, %v2762_v41  ;;  %v2765_v52 = vmul.f32 %v2763_v37, %v2763_v37  ;;  %v2768_v50 = vsub.f32 %v2749_v21, %v2763_v37  ;;  %v2981_v37 = vrot.slane %v6023_v44, %v5823_v19 }
 0xc91   :  { %v2766_v43 = vsub.f32 %v2764_v42, %v2765_v52 }
 0xc93   :  { %v2767_v48 = vmax.f32 %v2766_v43, 0.0  ;;  %v2986_v43 = vrot.slane %v6023_v44, %v5826_v20 }
 0xc95   :  { %v2769_v49 = vadd.f32 1e-05, %v2767_v48 }
 0xc97   :  { %4866 = vrsqrt.f32 %v2769_v49 }
 0xca4   :  { %v4867_v22 = vpop.eup %4866 }
 0xca5   :  { %v2771_v53 = vmul.f32 %v4867_v22, %v2768_v50  ;;  %v2992_v50 = vrot.slane %v6023_v44, %v5833_v27 }
 0xca7   :  { %v2776_v55 = vmul.f32 %v2775_v17, %v2771_v53 }
 0xca9   :  { %v2781_v56 = vadd.f32 %v2780_v54, %v2776_v55  ;;  %v4794_v54 = vld [vmem:[#allocation32 + $0x78] sm:$0xff]  }
 0xcaa   :  { %v4795_v55 = vld [vmem:[#allocation32 + $0x38] sm:$0xff]   ;;  %4268 = vmatprep.subr.bf16.mxu1 %v4794_v54  ;;  %v4811_v54 = vld [vmem:[#allocation34 + $0x30] sm:$0xff]  }
 0xcab   :  { %v2782_v58 = vpack.c.bf16 %v2781_v56, %v2781_v56  ;;  %v4796_v56 = vld [vmem:[#allocation32 + $0x70] sm:$0xff]  }
 0xcad   :  { %2947 = vmatprep.mubr.bf16.mxu1 %v2782_v58  ;;  %v4797_v58 = vld [vmem:[#allocation32 + $0x30] sm:$0xff]  }
 0xcae   :  { %2948 = vmatmul.mubr.bf16.vlgmr.msra.gmra.mxu1 %v5902_v18  ;;  %v4791_v18 = vld [vmem:[#allocation31 + $0x10] sm:$0xff]  }
 0xcaf   :  { %4561 = vmatpush3.bf16.msra.mxu0 %v4791_v18  ;;  %4269 = vmatpush3.bf16.msra.mxu1 %v4795_v55  ;;  %v4804_v18 = vld [vmem:[#allocation32 + $0x50] sm:$0xff]   ;;  %v4812_v55 = vld [vmem:[#allocation34 + $0x28] sm:$0xff]  }
 0xcb0   :  { %4562 = vmatprep.subr.bf16.mxu0 %v5466_v3  ;;  %4270 = vmatprep.subr.bf16.mxu1 %v4796_v56  ;;  %v4813_v56 = vld [vmem:[#allocation34 + $0x20] sm:$0xff]  }
 0xcb3   :  { %4563 = vmatpush3.bf16.msra.mxu0 %v4792_v11  ;;  %4271 = vmatpush3.bf16.msra.mxu1 %v4797_v58  ;;  %v4805_v11 = vld [vmem:[#allocation32 + $0x10] sm:$0xff]   ;;  %v4816_v58 = vld [vmem:[#allocation34 + $0x8] sm:$0xff]  }
 0xcb4   :  { %4564 = vmatprep.subr.bf16.mxu0 %v5466_v3  ;;  %4272 = vmatprep.subr.bf16.mxu1 %v4798_v59  ;;  %v4817_v59 = vld [vmem:[#allocation34] sm:$0xff]  }
 0xcb7   :  { %4565 = vmatpush3.bf16.msra.mxu0 %v4793_v63  ;;  %4273 = vmatpush3.bf16.msra.mxu1 %v4799_v60  ;;  %v4806_v63 = vld [vmem:[#allocation32 + $0x48] sm:$0xff]   ;;  %v6051_v60 = vld [vmem:[#allocation35] sm:$0xff] }
 0xcb8   :  { %4570 = vmatprep.subr.bf16.mxu0 %v5466_v3  ;;  %4274 = vmatprep.subr.bf16.mxu1 %v4800_v61 }
 0xd6e   :  { %v4253_v23 = vpop.f32.mrf.mxu1 }
 0xd70   :  { %v4254_v2 = vpop.f32.mrf.mxu1 }
 0xd71   :  { %v4255_v4 = vadd.f32 %v4254_v2, %v4253_v23  ;;  %v4807_v23 = vld [vmem:[#allocation32 + $0x8] sm:$0xff]   ;;  %v4809_v2 = vld [vmem:[#allocation32] sm:$0xff]  }
 0xd72   :  { %v4256_v6 = vpop.f32.mrf.mxu1 }
 0xd73   :  { %v2950_v7 = vadd.f32 %v4255_v4, %v2818_v1  ;;  %v4808_v1 = vld [vmem:[#allocation32 + $0x40] sm:$0xff]   ;;  %v3014_v4 = vrot.slane %v6023_v44, %v5848_v47 }
 0xd74   :  { %v4257_v40 = vpop.f32.mrf.mxu1 }
 0xd75   :  { %v2955_v8 = vmax.f32 %v2950_v7, 0.0 }
 0xd77   :  { %v2956_v30 = vrot.slane %v2955_v8, 4  ;;  %v2962_v9 = vmul.f32 %v2955_v8, %v2955_v8 }
 0xd79   :  { %v2957_v10 = vadd.f32 %v2956_v30, %v2955_v8  ;;  %v2963_v13 = vrot.slane %v2962_v9, 4 }
 0xd7b   :  { %v2958_v21 = vrot.slane %v2957_v10, 2  ;;  %v2964_v38 = vadd.f32 %v2963_v13, %v2962_v9 }
 0xd7d   :  { %v2959_v24 = vadd.f32 %v2958_v21, %v2957_v10  ;;  %v2965_v36 = vrot.slane %v2964_v38, 2 }
 0xd7f   :  { %v2960_v25 = vrot.slane %v2959_v24, 1  ;;  %v2966_v26 = vadd.f32 %v2965_v36, %v2964_v38 }
 0xd81   :  { %v2961_v28 = vadd.f32 %v2960_v25, %v2959_v24  ;;  %v2967_v51 = vrot.slane %v2966_v26, 1 }
 0xd83   :  { %v2968_v31 = vadd.f32 %v2967_v51, %v2966_v26  ;;  %v2969_v39 = vmul.f32 0.125, %v2961_v28 }
 0xd85   :  { %v2970_v15 = vmul.f32 0.125, %v2968_v31  ;;  %v2971_v32 = vmul.f32 %v2969_v39, %v2969_v39  ;;  %v2974_v41 = vsub.f32 %v2955_v8, %v2969_v39 }
 0xd87   :  { %v2972_v33 = vsub.f32 %v2970_v15, %v2971_v32 }
 0xd89   :  { %v2973_v34 = vmax.f32 %v2972_v33, 0.0 }
 0xd8b   :  { %v2975_v35 = vadd.f32 1e-05, %v2973_v34 }
 0xd8d   :  { %4868 = vrsqrt.f32 %v2975_v35 }
 0xd9a   :  { %v4869_v42 = vpop.eup %4868 }
 0xd9b   :  { %v2977_v52 = vmul.f32 %v4869_v42, %v2974_v41 }
 0xd9d   :  { %v2982_v48 = vmul.f32 %v2981_v37, %v2977_v52  ;;  %v3129_v52 = vrot.slane %v6023_v44, %v5853_v14 }
 0xd9f   :  { %v2987_v49 = vadd.f32 %v2986_v43, %v2982_v48 }
 0xda1   :  { %v2988_v17 = vadd.f32 %v2987_v49, %v5808_v12  ;;  %v4801_v12 = vld [vmem:[#allocation32 + $0x20] sm:$0xff]   ;;  %v3134_v49 = vrot.slane %v6023_v44, %v5856_v16  ;;  %v4814_v44 = vld [vmem:[#allocation34 + $0x18] sm:$0xff]  }
 0xda2   :  { %4275 = vmatpush3.bf16.msra.mxu1 %v4801_v12  ;;  %v3172_v12 = vrot.slane %v6051_v60, %v5816_v0 }
 0xda3   :  { %v2993_v22 = vadd.f32 %v2992_v50, %v2988_v17  ;;  %4276 = vmatprep.subr.bf16.mxu1 %v4802_v5 }
 0xda5   :  { %v2994_v53 = vpack.c.bf16 %v2993_v22, %v2993_v22 }
 0xda6   :  { %4277 = vmatpush3.bf16.msra.mxu1 %v4803_v62 }
 0xda7   :  { %4567 = vmatmul.mubr.bf16.vlgmr.msra.gmra.mxu0 %v2994_v53  ;;  %4278 = vmatprep.subr.bf16.mxu1 %v4804_v18  ;;  %v4810_v53 = vld [vmem:[#allocation34 + $0x38] sm:$0xff]  }
 0xda8   :  { %4586 = vmatprep.mubr.msk.bf16.mxu0 %vm5467_vm0, %v5466_v3  ;;  %4571 = vmatpush3.bf16.msra.mxu0 %v4810_v53  ;;  %v4824_v53 = vld [vmem:[#allocation37 + $0x60] sm:$0xff]  }
 0xda9   :  { %4572 = vmatprep.subr.bf16.mxu0 %v5466_v3 }
 0xdaa   :  { %4279 = vmatpush3.bf16.msra.mxu1 %v4805_v11 }
 0xdab   :  { %4280 = vmatprep.subr.bf16.mxu1 %v4806_v63 }
 0xdac   :  { %4573 = vmatpush3.bf16.msra.mxu0 %v4811_v54  ;;  %v4826_v54 = vld [vmem:[#allocation37 + $0x58] sm:$0xff]  }
 0xdad   :  { %4574 = vmatprep.subr.bf16.mxu0 %v5466_v3 }
 0xdae   :  { %4281 = vmatpush3.bf16.msra.mxu1 %v4807_v23 }
 0xdaf   :  { %4282 = vmatprep.subr.bf16.mxu1 %v4808_v1 }
 0xdb0   :  { %4575 = vmatpush3.bf16.msra.mxu0 %v4812_v55  ;;  %v4827_v55 = vld [vmem:[#allocation37 + $0x18] sm:$0xff]  }
 0xdb1   :  { %4576 = vmatprep.subr.bf16.mxu0 %v5466_v3 }
 0xdb2   :  { %4283 = vmatpush3.bf16.msra.mxu1 %v4809_v2 }
 0xdb4   :  { %4577 = vmatpush3.bf16.msra.mxu0 %v4813_v56  ;;  %v4828_v56 = vld [vmem:[#allocation37 + $0x50] sm:$0xff]  }
 0xdb5   :  { %4578 = vmatprep.subr.bf16.mxu0 %v5466_v3 }
 0xdb8   :  { %4579 = vmatpush3.bf16.msra.mxu0 %v4814_v44  ;;  %v4829_v44 = vld [vmem:[#allocation37 + $0x10] sm:$0xff]  }
 0xdb9   :  { %4580 = vmatprep.subr.bf16.mxu0 %v5466_v3 }
 0xe67   :  { %v3097_v6 = vpop.f32.mrf.mxu0 }
 0xe68   :  { %v3098_v7 = vadd.f32 %v3097_v6, %v3014_v4 }
 0xe69   :  { %v4568_v40 = vpop.f32.mrf.mxu0 }
 0xe6a   :  { %v3103_v8 = vmax.f32 %v3098_v7, 0.0 }
 0xe6b   :  { %v3100_v30 = vpop.f32.mrf.mxu0 }
 0xe6c   :  { %v3104_v9 = vrot.slane %v3103_v8, 4  ;;  %v3110_v10 = vmul.f32 %v3103_v8, %v3103_v8 }
 0xe6d   :  { %v4569_v13 = vpop.f32.mrf.mxu0 }
 0xe6e   :  { %v3105_v21 = vadd.f32 %v3104_v9, %v3103_v8  ;;  %v3111_v38 = vrot.slane %v3110_v10, 4 }
 0xe70   :  { %v3106_v24 = vrot.slane %v3105_v21, 2  ;;  %v3112_v36 = vadd.f32 %v3111_v38, %v3110_v10 }
 0xe72   :  { %v3107_v25 = vadd.f32 %v3106_v24, %v3105_v21  ;;  %v3113_v26 = vrot.slane %v3112_v36, 2 }
 0xe74   :  { %v3108_v28 = vrot.slane %v3107_v25, 1  ;;  %v3114_v51 = vadd.f32 %v3113_v26, %v3112_v36 }
 0xe76   :  { %v3109_v31 = vadd.f32 %v3108_v28, %v3107_v25  ;;  %v3115_v39 = vrot.slane %v3114_v51, 1 }
 0xe78   :  { %v3116_v15 = vadd.f32 %v3115_v39, %v3114_v51  ;;  %v3117_v32 = vmul.f32 0.125, %v3109_v31  ;;  %v3335_v39 = vrot.slane %v6051_v60, %v5823_v19 }
 0xe7a   :  { %v3118_v33 = vmul.f32 0.125, %v3116_v15  ;;  %v3119_v34 = vmul.f32 %v3117_v32, %v3117_v32  ;;  %v3122_v42 = vsub.f32 %v3103_v8, %v3117_v32 }
 0xe7c   :  { %v3120_v35 = vsub.f32 %v3118_v33, %v3119_v34  ;;  %v3340_v33 = vrot.slane %v6051_v60, %v5826_v20 }
 0xe7e   :  { %v3121_v41 = vmax.f32 %v3120_v35, 0.0 }
 0xe80   :  { %v3123_v37 = vadd.f32 1e-05, %v3121_v41  ;;  %v3346_v41 = vrot.slane %v6051_v60, %v5833_v27 }
 0xe82   :  { %4870 = vrsqrt.f32 %v3123_v37 }
 0xe8f   :  { %v4871_v43 = vpop.eup %4870 }
 0xe90   :  { %v3125_v48 = vmul.f32 %v4871_v43, %v3122_v42  ;;  %v4818_v43 = vld [vmem:[#allocation37 + $0x78] sm:$0xff]  }
 0xe91   :  { %4299 = vmatprep.subr.bf16.mxu1 %v4818_v43  ;;  %v4838_v43 = vld [vmem:[#allocation38 + $0x18] sm:$0xff]  }
 0xe92   :  { %v3130_v50 = vmul.f32 %v3129_v52, %v3125_v48  ;;  %v4819_v48 = vld [vmem:[#allocation37 + $0x38] sm:$0xff]  }
 0xe94   :  { %v3135_v17 = vadd.f32 %v3134_v49, %v3130_v50  ;;  %v4820_v49 = vld [vmem:[#allocation37 + $0x70] sm:$0xff]  }
 0xe95   :  { %v4821_v50 = vld [vmem:[#allocation37 + $0x30] sm:$0xff]  }
 0xe96   :  { %v3136_v22 = vpack.c.bf16 %v3135_v17, %v3135_v17  ;;  %v4822_v17 = vld [vmem:[#allocation37 + $0x68] sm:$0xff]  }
 0xe98   :  { %3301 = vmatprep.mubr.bf16.mxu1 %v3136_v22  ;;  %v4823_v22 = vld [vmem:[#allocation37 + $0x28] sm:$0xff]  }
 0xe99   :  { %3302 = vmatmul.mubr.bf16.vlgmr.msra.gmra.mxu1 %v5862_v29  ;;  %v4815_v29 = vld [vmem:[#allocation34 + $0x10] sm:$0xff]  }
 0xe9a   :  { %4581 = vmatpush3.bf16.msra.mxu0 %v4815_v29  ;;  %4300 = vmatpush3.bf16.msra.mxu1 %v4819_v48  ;;  %v4830_v29 = vld [vmem:[#allocation37 + $0x48] sm:$0xff]  }
 0xe9b   :  { %4582 = vmatprep.subr.bf16.mxu0 %v5466_v3  ;;  %4301 = vmatprep.subr.bf16.mxu1 %v4820_v49  ;;  %v4840_v48 = vld [vmem:[#allocation38 + $0x8] sm:$0xff]   ;;  %v4841_v49 = vld [vmem:[#allocation38] sm:$0xff]  }
 0xe9e   :  { %4583 = vmatpush3.bf16.msra.mxu0 %v4816_v58  ;;  %4302 = vmatpush3.bf16.msra.mxu1 %v4821_v50  ;;  %v4831_v58 = vld [vmem:[#allocation37 + $0x8] sm:$0xff]  }
 0xe9f   :  { %4584 = vmatprep.subr.bf16.mxu0 %v5466_v3  ;;  %4303 = vmatprep.subr.bf16.mxu1 %v4822_v17  ;;  %v6079_v50 = vld [vmem:[%s5623_s30] sm:$0xff]  ;;  %s5474_s30 = smov [#allocation40]  }
 0xea0   :  { %s3851_s12 = sshll.u32 %s5474_s30, 4  ;;  %s3852_s12 = int_to_ptr.vmem [resolvable:$true] %s3851_s12 }
 0xea1   :  { %s5360_s5 = scalar_lea.vmem %s3852_s12, 128  ;;  %p5365_p9 = scmp.lt.s32.totalorder %s3852_s12, %s3852_s12 }
 0xea2   :  { %4585 = vmatpush3.bf16.msra.mxu0 %v4817_v59  ;;  %4304 = vmatpush3.bf16.msra.mxu1 %v4823_v22  ;;  %v4832_v59 = vld [vmem:[#allocation37 + $0x40] sm:$0xff]   ;;  %v3526_v22 = vrot.slane %v6079_v50, %v5816_v0  ;;  %p5361_p8 = scmp.ne.s32.totalorder %s3852_s12, %s5360_s5  ;;  %p5366_p10 = scmp.lt.s32.totalorder %s5360_s5, %s5360_s5 }
 0xea3   :  { %4590 = vmatprep.subr.bf16.mxu0 %v5466_v3  ;;  %4305 = vmatprep.subr.bf16.mxu1 %v4824_v53 }
 0xea4   :  { %p5367_p11 = por %p5366_p10, %p5365_p9 }
 0xea6   :  { %p5368_p12 = pnand %p5367_p11, %p5361_p8 }
 0xf59   :  { %v4284_v61 = vpop.f32.mrf.mxu1 }
 0xf5b   :  { %v4285_v5 = vpop.f32.mrf.mxu1 }
 0xf5c   :  { %v4286_v62 = vadd.f32 %v4285_v5, %v4284_v61  ;;  %v4833_v61 = vld [vmem:[#allocation37] sm:$0xff]  }
 0xf5d   :  { %v4287_v18 = vpop.f32.mrf.mxu1 }
 0xf5e   :  { %v3304_v11 = vadd.f32 %v4286_v62, %v3172_v12  ;;  %v3368_v12 = vrot.slane %v6051_v60, %v5848_v47 }
 0xf5f   :  { %v4288_v63 = vpop.f32.mrf.mxu1 }
 0xf60   :  { %v3309_v23 = vmax.f32 %v3304_v11, 0.0 }
 0xf62   :  { %v3310_v1 = vrot.slane %v3309_v23, 4  ;;  %v3316_v2 = vmul.f32 %v3309_v23, %v3309_v23 }
 0xf64   :  { %v3311_v4 = vadd.f32 %v3310_v1, %v3309_v23  ;;  %v3317_v6 = vrot.slane %v3316_v2, 4 }
 0xf66   :  { %v3312_v7 = vrot.slane %v3311_v4, 2  ;;  %v3318_v40 = vadd.f32 %v3317_v6, %v3316_v2 }
 0xf68   :  { %v3313_v8 = vadd.f32 %v3312_v7, %v3311_v4  ;;  %v3319_v30 = vrot.slane %v3318_v40, 2 }
 0xf6a   :  { %v3314_v9 = vrot.slane %v3313_v8, 1  ;;  %v3320_v10 = vadd.f32 %v3319_v30, %v3318_v40 }
 0xf6c   :  { %v3315_v13 = vadd.f32 %v3314_v9, %v3313_v8  ;;  %v3321_v21 = vrot.slane %v3320_v10, 1 }
 0xf6e   :  { %v3322_v38 = vadd.f32 %v3321_v21, %v3320_v10  ;;  %v3323_v24 = vmul.f32 0.125, %v3315_v13 }
 0xf70   :  { %v3324_v36 = vmul.f32 0.125, %v3322_v38  ;;  %v3325_v25 = vmul.f32 %v3323_v24, %v3323_v24  ;;  %v3328_v31 = vsub.f32 %v3309_v23, %v3323_v24 }
 0xf72   :  { %v3326_v26 = vsub.f32 %v3324_v36, %v3325_v25 }
 0xf74   :  { %v3327_v28 = vmax.f32 %v3326_v26, 0.0 }
 0xf76   :  { %v3329_v51 = vadd.f32 1e-05, %v3327_v28 }
 0xf78   :  { %4872 = vrsqrt.f32 %v3329_v51 }
 0xf85   :  { %v4873_v15 = vpop.eup %4872 }
 0xf86   :  { %v3331_v32 = vmul.f32 %v4873_v15, %v3328_v31 }
 0xf88   :  { %v3336_v34 = vmul.f32 %v3335_v39, %v3331_v32  ;;  %v3483_v39 = vrot.slane %v6051_v60, %v5853_v14 }
 0xf8a   :  { %v3341_v35 = vadd.f32 %v3340_v33, %v3336_v34  ;;  %v3488_v33 = vrot.slane %v6051_v60, %v5856_v16  ;;  %v4837_v60 = vld [vmem:[#allocation38 + $0x20] sm:$0xff]  }
 0xf8c   :  { %v3342_v37 = vadd.f32 %v3341_v35, %v5806_v45  ;;  %v4825_v45 = vld [vmem:[#allocation37 + $0x20] sm:$0xff]  }
 0xf8d   :  { %4306 = vmatpush3.bf16.msra.mxu1 %v4825_v45 }
 0xf8e   :  { %v3347_v42 = vadd.f32 %v3346_v41, %v3342_v37  ;;  %4307 = vmatprep.subr.bf16.mxu1 %v4826_v54  ;;  %v4834_v37 = vld [vmem:[#allocation38 + $0x38] sm:$0xff]  }
 0xf90   :  { %v3348_v52 = vpack.c.bf16 %v3347_v42, %v3347_v42  ;;  %v4835_v42 = vld [vmem:[#allocation38 + $0x30] sm:$0xff]  }
 0xf91   :  { %4308 = vmatpush3.bf16.msra.mxu1 %v4827_v55 }
 0xf92   :  { %4587 = vmatmul.mubr.bf16.vlgmr.msra.gmra.mxu0 %v3348_v52  ;;  %4309 = vmatprep.subr.bf16.mxu1 %v4828_v56  ;;  %v4836_v52 = vld [vmem:[#allocation38 + $0x28] sm:$0xff]  }
 0xf93   :  { %4606 = vmatprep.mubr.msk.bf16.mxu0 %vm5467_vm0, %v5466_v3  ;;  %4591 = vmatpush3.bf16.msra.mxu0 %v4834_v37 }
 0xf94   :  { %4592 = vmatprep.subr.bf16.mxu0 %v5466_v3 }
 0xf95   :  { %4310 = vmatpush3.bf16.msra.mxu1 %v4829_v44 }
 0xf96   :  { %4311 = vmatprep.subr.bf16.mxu1 %v4830_v29 }
 0xf97   :  { %4593 = vmatpush3.bf16.msra.mxu0 %v4835_v42 }
 0xf98   :  { %4594 = vmatprep.subr.bf16.mxu0 %v5466_v3 }
 0xf99   :  { %4312 = vmatpush3.bf16.msra.mxu1 %v4831_v58 }
 0xf9a   :  { %4313 = vmatprep.subr.bf16.mxu1 %v4832_v59 }
 0xf9b   :  { %4595 = vmatpush3.bf16.msra.mxu0 %v4836_v52 }
 0xf9c   :  { %4596 = vmatprep.subr.bf16.mxu0 %v5466_v3 }
 0xf9d   :  { %4314 = vmatpush3.bf16.msra.mxu1 %v4833_v61 }
 0xf9f   :  { %4597 = vmatpush3.bf16.msra.mxu0 %v4837_v60 }
 0xfa0   :  { %4598 = vmatprep.subr.bf16.mxu0 %v5466_v3 }
 0xfa3   :  { %4599 = vmatpush3.bf16.msra.mxu0 %v4838_v43 }
 0xfa4   :  { %4600 = vmatprep.subr.bf16.mxu0 %v5466_v3 }
0x1052   :  { %v3451_v5 = vpop.f32.mrf.mxu0 }
0x1053   :  { %v3452_v62 = vadd.f32 %v3451_v5, %v3368_v12 }
0x1054   :  { %v4588_v18 = vpop.f32.mrf.mxu0 }
0x1055   :  { %v3457_v11 = vmax.f32 %v3452_v62, 0.0 }
0x1056   :  { %v3454_v63 = vpop.f32.mrf.mxu0 }
0x1057   :  { %v3458_v23 = vrot.slane %v3457_v11, 4  ;;  %v3464_v1 = vmul.f32 %v3457_v11, %v3457_v11 }
0x1058   :  { %v4589_v2 = vpop.f32.mrf.mxu0 }
0x1059   :  { %v3459_v4 = vadd.f32 %v3458_v23, %v3457_v11  ;;  %v3465_v6 = vrot.slane %v3464_v1, 4 }
0x105b   :  { %v3460_v7 = vrot.slane %v3459_v4, 2  ;;  %v3466_v40 = vadd.f32 %v3465_v6, %v3464_v1 }
0x105d   :  { %v3461_v8 = vadd.f32 %v3460_v7, %v3459_v4  ;;  %v3467_v30 = vrot.slane %v3466_v40, 2 }
0x105f   :  { %v3462_v9 = vrot.slane %v3461_v8, 1  ;;  %v3468_v10 = vadd.f32 %v3467_v30, %v3466_v40  ;;  %v3689_v30 = vrot.slane %v6079_v50, %v5823_v19 }
0x1061   :  { %v3463_v13 = vadd.f32 %v3462_v9, %v3461_v8  ;;  %v3469_v21 = vrot.slane %v3468_v10, 1 }
0x1063   :  { %v3470_v38 = vadd.f32 %v3469_v21, %v3468_v10  ;;  %v3471_v24 = vmul.f32 0.125, %v3463_v13  ;;  %v3694_v13 = vrot.slane %v6079_v50, %v5826_v20 }
0x1065   :  { %v3472_v36 = vmul.f32 0.125, %v3470_v38  ;;  %v3473_v25 = vmul.f32 %v3471_v24, %v3471_v24  ;;  %v3476_v31 = vsub.f32 %v3457_v11, %v3471_v24  ;;  %v3700_v24 = vrot.slane %v6079_v50, %v5833_v27 }
0x1067   :  { %v3474_v26 = vsub.f32 %v3472_v36, %v3473_v25 }
0x1069   :  { %v3475_v28 = vmax.f32 %v3474_v26, 0.0 }
0x106b   :  { %v3477_v51 = vadd.f32 1e-05, %v3475_v28  ;;  %v3722_v28 = vrot.slane %v6079_v50, %v5848_v47 }
0x106d   :  { %4874 = vrsqrt.f32 %v3477_v51 }
0x107a   :  { %v4875_v15 = vpop.eup %4874 }
0x107b   :  { %v3479_v32 = vmul.f32 %v4875_v15, %v3476_v31 }
0x107d   :  { %v3484_v34 = vmul.f32 %v3483_v39, %v3479_v32 }
0x107f   :  { %v3489_v35 = vadd.f32 %v3488_v33, %v3484_v34 }
0x1081   :  { %v3490_v41 = vpack.c.bf16 %v3489_v35, %v3489_v35 }
0x1083   :  { %3655 = vmatprep.mubr.bf16.mxu1 %v3490_v41 }
0x1084   :  { %3656 = vmatmul.mubr.bf16.vlgmr.msra.gmra.mxu1 %v5784_v57  ;;  %v4839_v57 = vld [vmem:[#allocation38 + $0x10] sm:$0xff]  }
0x1085   :  { %4601 = vmatpush3.bf16.msra.mxu0 %v4839_v57 }
0x1086   :  { %4602 = vmatprep.subr.bf16.mxu0 %v5466_v3 }
0x1089   :  { %4603 = vmatpush3.bf16.msra.mxu0 %v4840_v48 }
0x108a   :  { %4604 = vmatprep.subr.bf16.mxu0 %v5466_v3 }
0x108d   :  { %4605 = vmatpush3.bf16.msra.mxu0 %v4841_v49 }
0x1144   :  { %v4315_v17 = vpop.f32.mrf.mxu1 }
0x1146   :  { %v4316_v53 = vpop.f32.mrf.mxu1 }
0x1147   :  { %v4317_v45 = vadd.f32 %v4316_v53, %v4315_v17 }
0x1148   :  { %v4318_v54 = vpop.f32.mrf.mxu1 }
0x1149   :  { %v3658_v55 = vadd.f32 %v4317_v45, %v3526_v22  ;;  %v3837_v54 = vrot.slane %v6079_v50, %v5853_v14 }
0x114a   :  { %v4319_v56 = vpop.f32.mrf.mxu1 }
0x114b   :  { %v3663_v44 = vmax.f32 %v3658_v55, 0.0 }
0x114d   :  { %v3664_v29 = vrot.slane %v3663_v44, 4  ;;  %v3670_v58 = vmul.f32 %v3663_v44, %v3663_v44 }
0x114f   :  { %v3665_v59 = vadd.f32 %v3664_v29, %v3663_v44  ;;  %v3671_v61 = vrot.slane %v3670_v58, 4 }
0x1151   :  { %v3666_v12 = vrot.slane %v3665_v59, 2  ;;  %v3672_v5 = vadd.f32 %v3671_v61, %v3670_v58 }
0x1153   :  { %v3667_v3 = vadd.f32 %v3666_v12, %v3665_v59  ;;  %v3673_v62 = vrot.slane %v3672_v5, 2 }
0x1155   :  { %v3668_v18 = vrot.slane %v3667_v3, 1  ;;  %v3674_v11 = vadd.f32 %v3673_v62, %v3672_v5 }
0x1157   :  { %v3669_v63 = vadd.f32 %v3668_v18, %v3667_v3  ;;  %v3675_v23 = vrot.slane %v3674_v11, 1 }
0x1159   :  { %v3676_v1 = vadd.f32 %v3675_v23, %v3674_v11  ;;  %v3677_v0 = vmul.f32 0.125, %v3669_v63 }
0x115b   :  { %v3678_v2 = vmul.f32 0.125, %v3676_v1  ;;  %v3679_v4 = vmul.f32 %v3677_v0, %v3677_v0  ;;  %v3682_v8 = vsub.f32 %v3663_v44, %v3677_v0  ;;  %v3842_v44 = vrot.slane %v6079_v50, %v5856_v16 }
0x115d   :  { %v3680_v6 = vsub.f32 %v3678_v2, %v3679_v4 }
0x115f   :  { %v3681_v7 = vmax.f32 %v3680_v6, 0.0 }
0x1161   :  { %v3683_v40 = vadd.f32 1e-05, %v3681_v7 }
0x1163   :  { %4876 = vrsqrt.f32 %v3683_v40 }
0x1170   :  { %v4877_v9 = vpop.eup %4876 }
0x1171   :  { %v3685_v10 = vmul.f32 %v4877_v9, %v3682_v8 }
0x1173   :  { %v3690_v21 = vmul.f32 %v3689_v30, %v3685_v10 }
0x1175   :  { %v3695_v38 = vadd.f32 %v3694_v13, %v3690_v21 }
0x1177   :  { %v3696_v36 = vadd.f32 %v3695_v38, %v5810_v46 }
0x1179   :  { %v3701_v25 = vadd.f32 %v3700_v24, %v3696_v36 }
0x117b   :  { %v3702_v26 = vpack.c.bf16 %v3701_v25, %v3701_v25 }
0x117d   :  { %4607 = vmatmul.mubr.bf16.vlgmr.msra.gmra.mxu0 %v3702_v26 }
0x123d   :  { %v3805_v51 = vpop.f32.mrf.mxu0 }
0x123e   :  { %v3806_v19 = vadd.f32 %v3805_v51, %v3722_v28 }
0x123f   :  { %v4608_v31 = vpop.f32.mrf.mxu0 }
0x1240   :  { %v3811_v39 = vmax.f32 %v3806_v19, 0.0 }
0x1241   :  { %v3808_v15 = vpop.f32.mrf.mxu0 }
0x1242   :  { %v3812_v32 = vrot.slane %v3811_v39, 4  ;;  %v3818_v20 = vmul.f32 %v3811_v39, %v3811_v39 }
0x1243   :  { %v4609_v33 = vpop.f32.mrf.mxu0 }
0x1244   :  { %v3813_v34 = vadd.f32 %v3812_v32, %v3811_v39  ;;  %v3819_v35 = vrot.slane %v3818_v20, 4 }
0x1246   :  { %v3814_v41 = vrot.slane %v3813_v34, 2  ;;  %v3820_v27 = vadd.f32 %v3819_v35, %v3818_v20 }
0x1248   :  { %v3815_v37 = vadd.f32 %v3814_v41, %v3813_v34  ;;  %v3821_v46 = vrot.slane %v3820_v27, 2 }
0x124a   :  { %v3816_v42 = vrot.slane %v3815_v37, 1  ;;  %v3822_v52 = vadd.f32 %v3821_v46, %v3820_v27 }
0x124c   :  { %v3817_v60 = vadd.f32 %v3816_v42, %v3815_v37  ;;  %v3823_v43 = vrot.slane %v3822_v52, 1 }
0x124e   :  { %v3824_v57 = vadd.f32 %v3823_v43, %v3822_v52  ;;  %v3825_v47 = vmul.f32 0.125, %v3817_v60 }
0x1250   :  { %v3826_v48 = vmul.f32 0.125, %v3824_v57  ;;  %v3827_v49 = vmul.f32 %v3825_v47, %v3825_v47  ;;  %v3830_v45 = vsub.f32 %v3811_v39, %v3825_v47 }
0x1252   :  { %v3828_v17 = vsub.f32 %v3826_v48, %v3827_v49 }
0x1254   :  { %v3829_v22 = vmax.f32 %v3828_v17, 0.0 }
0x1256   :  { %v3831_v53 = vadd.f32 1e-05, %v3829_v22 }
0x1258   :  { %4878 = vrsqrt.f32 %v3831_v53 }
0x1265   :  { %v4879_v55 = vpop.eup %4878 }
0x1266   :  { %v3833_v56 = vmul.f32 %v4879_v55, %v3830_v45 }
0x1268   :  { %v3838_v29 = vmul.f32 %v3837_v54, %v3833_v56 }
0x126a   :  { %v3843_v58 = vadd.f32 %v3842_v44, %v3838_v29 }
0x126c   :  { %3844 = vst [vmem:[#allocation40] sm:$0xff] %v3843_v58 }
0x126d   :  { %5371 = shalt.err (!%p5368_p12)
}
0x126e   :  { %3854 = dma.vmem_to_hbm [thread:$0]  %s3852_s12, 128, %s5628_s8, [#allocation4]  }
0x126f   :  { %5406 = dma.done.wait [#allocation4], 128  }
0x1270   :  { %5407 = vsyncadd [#allocation4], 4294967168 }
0x1271   :  { %3858 = vsyncpa [#allocation3], 1 }
0x1272   :  { %3859 = vsyncpa [#allocation6], 1 }
0x1273   :  { %3860 = vsyncpa [#allocation9], 1 }
0x1274   :  { %3861 = vsyncpa [#allocation12], 1 }
0x1275   :  { %3862 = vsyncpa [#allocation15], 1 }
0x1276   :  { %3863 = vsyncpa [#allocation18], 1 }
0x1277   :  { %3864 = vsyncpa [#allocation21], 1 }
0x1278   :  { %3865 = vsyncpa [#allocation24], 1 }
0x1279   :  { %3866 = vsyncpa [#allocation27], 1 }
0x127a   :  { %3867 = vsyncpa [#allocation30], 1 }
0x127b   :  { %3868 = vsyncpa [#allocation33], 1 }
0x127c   :  { %3869 = vsyncpa [#allocation36], 1 }
0x127d   :  { %3870 = vsyncpa [#allocation39], 1 }
0x127e   :  { %3871 = vsyncpa [#allocation4], 1 }

</bundles_post_ra>
